<compile_context>
chip_gen: v7x
topology: tpu7x:2x2x1
jax: 0.10.0
libtpu: 0.0.40
codegen_flags: <defaults>
</compile_context>

<pallas_src>
import jax
import jax.numpy as jnp
from jax.experimental import pallas as pl
from jax.experimental.pallas import tpu as pltpu


# ----------------------------------------------------------------------------
# Fused kernel
# ----------------------------------------------------------------------------
def seq2seq_kernel(tf_ref,                       # SMEM (T_out,) int32
                   x_ref, y_ref,
                   emb_w_ref, emb_b_ref,
                   wih_fb_ref, bih_fb_ref,
                   whh_fb_ref, bhh_fb_ref,
                   act_w_ref, act_b_ref,
                   attn_ws_ref, attn_we_ref, v_col_ref,
                   p_ref, sel_ref,
                   demb_w_ref, demb_b_ref,
                   wih_d_ref, bih_d_ref, whh_d_ref, bhh_d_ref,
                   fc_col_ref, fc_b_ref,
                   preds_ref,
                   enc_scr):
    f32 = jnp.float32
    bf16 = jnp.bfloat16

    B, T_out = y_ref.shape
    TB, _ = x_ref.shape
    T = TB // B
    H = whh_d_ref.shape[0]

    def mm(a, w_bf16):
        # bf16 MXU matmul (weights pre-cast on host), f32 accumulation.
        return jnp.dot(a.astype(bf16), w_bf16, preferred_element_type=f32)

    def gru_gates(gx_t, gh_t, h_prev):
        # gx_t/gh_t: (B, 3H) in [r|z|n] order; r and z fused into one sigmoid.
        rz = jax.nn.sigmoid(gx_t[:, 0:2 * H] + gh_t[:, 0:2 * H])
        r, z = rz[:, 0:H], rz[:, H:2 * H]
        n = jnp.tanh(gx_t[:, 2 * H:3 * H] + r * gh_t[:, 2 * H:3 * H])
        return n + z * (h_prev - n)          # == (1-z)*n + z*h

    # -------- loop-invariant weight loads (exactly once in the trace) --------
    emb_w = emb_w_ref[...]
    wih_fb = wih_fb_ref[...]
    whh_fb = whh_fb_ref[...]
    act_w = act_w_ref[...]
    attn_ws = attn_ws_ref[...]
    attn_we = attn_we_ref[...]
    v_col = v_col_ref[...]
    P = p_ref[...]                            # (T*B, T*B) block-diag ones, f32
    sel = sel_ref[...]                        # (B, T*B) batch-selection, f32
    demb_w = demb_w_ref[...]
    demb_b = demb_b_ref[...]
    wih_d = wih_d_ref[...]
    whh_d = whh_d_ref[...]
    fc_col = fc_col_ref[...]
    emb_b = emb_b_ref[...]
    bih_fb = bih_fb_ref[...]
    bhh_fb = bhh_fb_ref[...]
    act_b = act_b_ref[...]
    bih_d = bih_d_ref[...]
    bhh_d = bhh_d_ref[...]
    fc_b = fc_b_ref[...]
    y = y_ref[...]                            # (B, T_out)

    # ----------------------------- encoder -----------------------------
    x2d = x_ref[...]                                              # (T*B, F)
    emb = jnp.maximum(mm(x2d, emb_w) + emb_b, 0.0)                # (T*B, E)
    # fused fwd|bwd input-to-gate projection (hoisted out of the recurrence)
    gx = mm(emb, wih_fb) + bih_fb                                 # (T*B, 6H)

    # h_fb = [h_fwd | h_bwd]; one block-diagonal matmul drives both directions.
    h_fb = jnp.zeros((B, 2 * H), f32)
    for step in range(T):                 # fully unrolled, interleaved fwd/bwd
        t, tb = step, T - 1 - step
        gh = mm(h_fb, whh_fb) + bhh_fb                            # (B, 6H)
        h_f = gru_gates(gx[t * B:(t + 1) * B, 0:3 * H],
                        gh[:, 0:3 * H], h_fb[:, 0:H])
        h_b = gru_gates(gx[tb * B:(tb + 1) * B, 3 * H:6 * H],
                        gh[:, 3 * H:6 * H], h_fb[:, H:2 * H])
        h_fb = jnp.concatenate([h_f, h_b], axis=1)
        # write encoder outputs straight into the packed (T*B, 2H) scratch
        enc_scr[t * B:(t + 1) * B, 0:H] = h_f
        enc_scr[tb * B:(tb + 1) * B, H:2 * H] = h_b

    enc = enc_scr[...]                                            # (T*B, 2H)
    # cat(hidden[-2], hidden[-1]) == h_fb after the last step
    s = jnp.tanh(mm(h_fb, act_w) + act_b)                         # (B, H)

    # ------------------- decoder (fully unrolled loop) -------------------
    # loop-invariant half of the additive-attention energy
    A2 = mm(enc, attn_we)                                         # (T*B, H)

    dec_in = x2d[(T - 1) * B:T * B, 0:1]                          # (B, 1)
    preds = []
    for i in range(T_out):
        # ---- attention: score / softmax entirely in the (T*B, 1) column ----
        A1 = mm(s, attn_ws)                                       # (B, H)
        energy = jnp.tanh(jnp.concatenate([A1] * T, axis=0) + A2)  # (T*B, H)
        score = mm(energy, v_col)                                 # (T*B, 1)
        # softmax over the *batch* axis at each time step (as the reference):
        # shift by the global max (shift-invariant), pair-sum via block-diag P.
        m = jnp.max(score, axis=0, keepdims=True)                 # (1, 1)
        e = jnp.exp(score - m)                                    # (T*B, 1)
        denom = jnp.dot(P, e, preferred_element_type=f32)         # (T*B, 1)
        a = e / denom                                             # exact div
        # ctx[b] = sum_t a[t*B+b] * enc[t*B+b, :]  (one tiny selection matmul)
        ctx = jnp.dot(sel, a * enc, preferred_element_type=f32)   # (B, 2H)

        # ---- decoder-input embedding (output_size == 1 -> outer product) ----
        embedded = jnp.maximum(dec_in * demb_w + demb_b, 0.0)     # (B, E)

        # ---- GRU cell: fused [embedded|ctx] input projection ----
        rnn_in = jnp.concatenate([embedded, ctx], axis=1)         # (B, E+2H)
        gx_d = mm(rnn_in, wih_d) + bih_d                          # (B, 3H)
        gh_d = mm(s, whh_d) + bhh_d                               # (B, 3H)
        s = gru_gates(gx_d, gh_d, s)                              # (B, H)

        # ---- output head: single MXU matvec over [s | ctx | embedded] ----
        cat = jnp.concatenate([s, ctx, embedded], axis=1)         # (B, 3H+E)
        pred = mm(cat, fc_col) + fc_b                             # (B, 1)
        preds.append(pred)

        # ---- teacher forcing (deterministic mask read from SMEM) ----
        tf = (tf_ref[i] != 0).astype(f32)
        dec_in = tf * y[:, i:i + 1] + (1.0 - tf) * pred

    # single final store of all predictions
    preds_ref[...] = jnp.concatenate(preds, axis=1)               # (B, T_out)


# ----------------------------------------------------------------------------
# Host-side wrapper
# ----------------------------------------------------------------------------
def _vmem():
    return pl.BlockSpec(memory_space=pltpu.MemorySpace.VMEM)


@jax.jit
def seq2seq_att_forward(x, y, tf_mask, params):
    """x: (B, T_in, F_in), y: (B, T_out, 1), tf_mask: (T_out,) int32."""
    B, T_in, F_in = x.shape
    _, T_out, n_out = y.shape
    H = params["whh_f"].shape[0]           # enc_hid == dec_hid
    assert n_out == 1                      # decoder embedding / head assume output_size == 1

    f32, bf16 = jnp.float32, jnp.bfloat16

    # time-major 2-D activation layout (rows ordered t*B + b)
    x2d = jnp.transpose(x, (1, 0, 2)).reshape(T_in * B, F_in)
    y_bt = y[:, :, 0]                                             # (B, T_out)

    # ---------------- one-time weight fusion / reshaping ----------------
    # fused fwd|bwd input projection
    wih_fb = jnp.concatenate([params["wih_f"], params["wih_b"]], axis=1)   # (E, 6H)
    bih_fb = jnp.concatenate([params["bih_f"], params["bih_b"]], axis=1)   # (1, 6H)
    # block-diagonal fused recurrence weight: [h_f|h_b] @ whh_fb -> [gh_f|gh_b]
    whh_fb = jnp.zeros((2 * H, 6 * H), f32)
    whh_fb = whh_fb.at[:H, :3 * H].set(params["whh_f"])
    whh_fb = whh_fb.at[H:, 3 * H:].set(params["whh_b"])
    bhh_fb = jnp.concatenate([params["bhh_f"], params["bhh_b"]], axis=1)   # (1, 6H)
    # attention (input order [s, enc_out]); v as a column for the MXU matvec
    attn_ws = params["attn_w"][:H]                                 # (H, H)
    attn_we = params["attn_w"][H:]                                 # (2H, H)
    v_col = params["v_w"].T                                        # (H, 1)
    # fc head as a single column ([s | ctx | embedded] order)
    fc_col = params["fc_w"].T                                      # (3H+E, 1)
    # constant combinatorial matrices for the batch-axis softmax / context
    grp = jnp.arange(T_in * B) // B
    P = (grp[None, :] == grp[:, None]).astype(f32)                 # (T*B, T*B)
    sel = (jnp.arange(T_in * B)[None, :] % B ==
           jnp.arange(B)[:, None]).astype(f32)                     # (B, T*B)

    c = lambda w: w.astype(bf16)           # bf16 matmul operands, f32 biases

    inputs = (tf_mask, x2d, y_bt,
              c(params["emb_w"]), params["emb_b"],
              c(wih_fb), bih_fb,
              c(whh_fb), bhh_fb,
              c(params["act_w"]), params["act_b"],
              c(attn_ws), c(attn_we), c(v_col),
              P, sel,
              params["demb_w"], params["demb_b"],
              c(params["wih_d"]), params["bih_d"],
              c(params["whh_d"]), params["bhh_d"],
              c(fc_col), params["fc_b"])

    in_specs = ([pl.BlockSpec(memory_space=pltpu.MemorySpace.SMEM)]
                + [_vmem()] * (len(inputs) - 1))

    preds_bt = pl.pallas_call(
        seq2seq_kernel,
        out_shape=jax.ShapeDtypeStruct((B, T_out), f32),
        in_specs=in_specs,
        out_specs=_vmem(),
        scratch_shapes=[pltpu.VMEM((T_in * B, 2 * H), f32)],
    )(*inputs)

    return preds_bt[:, :, None]            # (B, T_out, 1)


def init_params(key, f_in, n_out, emb, hid):
    """Deterministic parameter init (PyTorch-style uniform fan-in scaling)."""
    H, E = hid, emb
    shapes = {
        # encoder
        "emb_w": (f_in, E), "emb_b": (1, E),
        "wih_f": (E, 3 * H), "whh_f": (H, 3 * H),
        "bih_f": (1, 3 * H), "bhh_f": (1, 3 * H),
        "wih_b": (E, 3 * H), "whh_b": (H, 3 * H),
        "bih_b": (1, 3 * H), "bhh_b": (1, 3 * H),
        "act_w": (2 * H, H), "act_b": (1, H),
        # attention (no biases in the reference module)
        "attn_w": (3 * H, H),       # input order: [s (H), enc_out (2H)]
        "v_w": (1, H),
        # decoder
        "demb_w": (1, E), "demb_b": (1, E),
        "wih_d": (E + 2 * H, 3 * H), "whh_d": (H, 3 * H),
        "bih_d": (1, 3 * H), "bhh_d": (1, 3 * H),
        "fc_w": (1, H + 2 * H + E), "fc_b": (1, 1),
    }
    params = {}
    keys = jax.random.split(key, len(shapes))
    for k, (name, shape) in zip(keys, sorted(shapes.items())):
        fan_in = shape[0] if shape[0] > 1 else shape[-1]
        bound = 1.0 / jnp.sqrt(jnp.float32(max(fan_in, 1)))
        params[name] = jax.random.uniform(
            k, shape, jnp.float32, minval=-bound, maxval=bound)
    return params


if __name__ == "__main__":
    key = jax.random.PRNGKey(0)
    k_x, k_y, k_tf, k_p = jax.random.split(key, 4)

    B, T_in, T_out = 2, 8, 4
    F_in, n_out, emb, hid = 4, 1, 16, 32
    teacher_forcing_ratio = 0.5

    x = jax.random.normal(k_x, (B, T_in, F_in), jnp.float32)
    y = jax.random.normal(k_y, (B, T_out, n_out), jnp.float32)
    # deterministic stand-in for the per-step random.random() < ratio draw
    tf_mask = (jax.random.uniform(k_tf, (T_out,)) <
               teacher_forcing_ratio).astype(jnp.int32)

    params = init_params(k_p, F_in, n_out, emb, hid)

    out = seq2seq_att_forward(x, y, tf_mask, params)
    jax.block_until_ready(out)
    assert out.shape == (B, T_out, n_out) and out.dtype == jnp.float32
    print("KERNEL_OK")
</pallas_src>

<mosaic_0001>
module attributes {stable_mosaic.version = 11 : i64} {
  func.func @seq2seq_kernel(%arg0: memref<4xi32, #tpu.memory_space<smem>>, %arg1: memref<16x4xf32, #tpu.memory_space<vmem>>, %arg2: memref<2x4xf32, #tpu.memory_space<vmem>>, %arg3: memref<4x16xbf16, #tpu.memory_space<vmem>>, %arg4: memref<1x16xf32, #tpu.memory_space<vmem>>, %arg5: memref<16x192xbf16, #tpu.memory_space<vmem>>, %arg6: memref<1x192xf32, #tpu.memory_space<vmem>>, %arg7: memref<64x192xbf16, #tpu.memory_space<vmem>>, %arg8: memref<1x192xf32, #tpu.memory_space<vmem>>, %arg9: memref<64x32xbf16, #tpu.memory_space<vmem>>, %arg10: memref<1x32xf32, #tpu.memory_space<vmem>>, %arg11: memref<32x32xbf16, #tpu.memory_space<vmem>>, %arg12: memref<64x32xbf16, #tpu.memory_space<vmem>>, %arg13: memref<32x1xbf16, #tpu.memory_space<vmem>>, %arg14: memref<16x16xf32, #tpu.memory_space<vmem>>, %arg15: memref<2x16xf32, #tpu.memory_space<vmem>>, %arg16: memref<1x16xf32, #tpu.memory_space<vmem>>, %arg17: memref<1x16xf32, #tpu.memory_space<vmem>>, %arg18: memref<80x96xbf16, #tpu.memory_space<vmem>>, %arg19: memref<1x96xf32, #tpu.memory_space<vmem>>, %arg20: memref<32x96xbf16, #tpu.memory_space<vmem>>, %arg21: memref<1x96xf32, #tpu.memory_space<vmem>>, %arg22: memref<112x1xbf16, #tpu.memory_space<vmem>>, %arg23: memref<1x1xf32, #tpu.memory_space<vmem>>, %arg24: memref<2x4xf32, #tpu.memory_space<vmem>>, %arg25: memref<16x64xf32, #tpu.memory_space<vmem>>) attributes {dimension_semantics = [], scalar_prefetch = 0 : i64, scratch_operands = 1 : i64, tpu.core_type = #tpu.core_type<tc>} {
    %c0 = arith.constant 0 : index
    %c0_0 = arith.constant 0 : index
    %0 = vector.load %arg3[%c0, %c0_0] : memref<4x16xbf16, #tpu.memory_space<vmem>>, vector<4x16xbf16>
    %c0_1 = arith.constant 0 : index
    %c0_2 = arith.constant 0 : index
    %1 = vector.load %arg5[%c0_1, %c0_2] : memref<16x192xbf16, #tpu.memory_space<vmem>>, vector<16x192xbf16>
    %c0_3 = arith.constant 0 : index
    %c0_4 = arith.constant 0 : index
    %2 = vector.load %arg7[%c0_3, %c0_4] : memref<64x192xbf16, #tpu.memory_space<vmem>>, vector<64x192xbf16>
    %c0_5 = arith.constant 0 : index
    %c0_6 = arith.constant 0 : index
    %3 = vector.load %arg9[%c0_5, %c0_6] : memref<64x32xbf16, #tpu.memory_space<vmem>>, vector<64x32xbf16>
    %c0_7 = arith.constant 0 : index
    %c0_8 = arith.constant 0 : index
    %4 = vector.load %arg11[%c0_7, %c0_8] : memref<32x32xbf16, #tpu.memory_space<vmem>>, vector<32x32xbf16>
    %c0_9 = arith.constant 0 : index
    %c0_10 = arith.constant 0 : index
    %5 = vector.load %arg12[%c0_9, %c0_10] : memref<64x32xbf16, #tpu.memory_space<vmem>>, vector<64x32xbf16>
    %c0_11 = arith.constant 0 : index
    %c0_12 = arith.constant 0 : index
    %6 = vector.load %arg13[%c0_11, %c0_12] : memref<32x1xbf16, #tpu.memory_space<vmem>>, vector<32x1xbf16>
    %c0_13 = arith.constant 0 : index
    %c0_14 = arith.constant 0 : index
    %7 = vector.load %arg14[%c0_13, %c0_14] : memref<16x16xf32, #tpu.memory_space<vmem>>, vector<16x16xf32>
    %c0_15 = arith.constant 0 : index
    %c0_16 = arith.constant 0 : index
    %8 = vector.load %arg15[%c0_15, %c0_16] : memref<2x16xf32, #tpu.memory_space<vmem>>, vector<2x16xf32>
    %c0_17 = arith.constant 0 : index
    %c0_18 = arith.constant 0 : index
    %9 = vector.load %arg16[%c0_17, %c0_18] : memref<1x16xf32, #tpu.memory_space<vmem>>, vector<1x16xf32>
    %c0_19 = arith.constant 0 : index
    %c0_20 = arith.constant 0 : index
    %10 = vector.load %arg17[%c0_19, %c0_20] : memref<1x16xf32, #tpu.memory_space<vmem>>, vector<1x16xf32>
    %c0_21 = arith.constant 0 : index
    %c0_22 = arith.constant 0 : index
    %11 = vector.load %arg18[%c0_21, %c0_22] : memref<80x96xbf16, #tpu.memory_space<vmem>>, vector<80x96xbf16>
    %c0_23 = arith.constant 0 : index
    %c0_24 = arith.constant 0 : index
    %12 = vector.load %arg20[%c0_23, %c0_24] : memref<32x96xbf16, #tpu.memory_space<vmem>>, vector<32x96xbf16>
    %c0_25 = arith.constant 0 : index
    %c0_26 = arith.constant 0 : index
    %13 = vector.load %arg22[%c0_25, %c0_26] : memref<112x1xbf16, #tpu.memory_space<vmem>>, vector<112x1xbf16>
    %c0_27 = arith.constant 0 : index
    %c0_28 = arith.constant 0 : index
    %14 = vector.load %arg4[%c0_27, %c0_28] : memref<1x16xf32, #tpu.memory_space<vmem>>, vector<1x16xf32>
    %c0_29 = arith.constant 0 : index
    %c0_30 = arith.constant 0 : index
    %15 = vector.load %arg6[%c0_29, %c0_30] : memref<1x192xf32, #tpu.memory_space<vmem>>, vector<1x192xf32>
    %c0_31 = arith.constant 0 : index
    %c0_32 = arith.constant 0 : index
    %16 = vector.load %arg8[%c0_31, %c0_32] : memref<1x192xf32, #tpu.memory_space<vmem>>, vector<1x192xf32>
    %c0_33 = arith.constant 0 : index
    %c0_34 = arith.constant 0 : index
    %17 = vector.load %arg10[%c0_33, %c0_34] : memref<1x32xf32, #tpu.memory_space<vmem>>, vector<1x32xf32>
    %c0_35 = arith.constant 0 : index
    %c0_36 = arith.constant 0 : index
    %18 = vector.load %arg19[%c0_35, %c0_36] : memref<1x96xf32, #tpu.memory_space<vmem>>, vector<1x96xf32>
    %c0_37 = arith.constant 0 : index
    %c0_38 = arith.constant 0 : index
    %19 = vector.load %arg21[%c0_37, %c0_38] : memref<1x96xf32, #tpu.memory_space<vmem>>, vector<1x96xf32>
    %c0_39 = arith.constant 0 : index
    %c0_40 = arith.constant 0 : index
    %20 = vector.load %arg23[%c0_39, %c0_40] : memref<1x1xf32, #tpu.memory_space<vmem>>, vector<1x1xf32>
    %c0_41 = arith.constant 0 : index
    %c0_42 = arith.constant 0 : index
    %21 = vector.load %arg2[%c0_41, %c0_42] : memref<2x4xf32, #tpu.memory_space<vmem>>, vector<2x4xf32>
    %c0_43 = arith.constant 0 : index
    %c0_44 = arith.constant 0 : index
    %22 = vector.load %arg1[%c0_43, %c0_44] : memref<16x4xf32, #tpu.memory_space<vmem>>, vector<16x4xf32>
    %23 = arith.truncf %22 : vector<16x4xf32> to vector<16x4xbf16>
    %cst = arith.constant dense<0.000000e+00> : vector<16x16xf32>
    %24 = tpu.matmul %23, %0, %cst {dimension_numbers = #tpu.dot_dimension_numbers<[1], [0], [0], [1], [0, 0, 1, 1], [], []>} : vector<16x4xbf16>, vector<4x16xbf16>, vector<16x16xf32> -> vector<16x16xf32>
    %25 = vector.broadcast %14 : vector<1x16xf32> to vector<16x16xf32>
    %26 = arith.addf %24, %25 : vector<16x16xf32>
    %cst_45 = arith.constant 0.000000e+00 : f32
    %27 = vector.broadcast %cst_45 : f32 to vector<16x16xf32>
    %28 = arith.maximumf %26, %27 : vector<16x16xf32>
    %29 = arith.truncf %28 : vector<16x16xf32> to vector<16x16xbf16>
    %cst_46 = arith.constant dense<0.000000e+00> : vector<16x192xf32>
    %30 = tpu.matmul %29, %1, %cst_46 {dimension_numbers = #tpu.dot_dimension_numbers<[1], [0], [0], [1], [0, 0, 1, 1], [], []>} : vector<16x16xbf16>, vector<16x192xbf16>, vector<16x192xf32> -> vector<16x192xf32>
    %31 = vector.broadcast %15 : vector<1x192xf32> to vector<16x192xf32>
    %32 = arith.addf %30, %31 : vector<16x192xf32>
    %cst_47 = arith.constant 0.000000e+00 : f32
    %33 = vector.broadcast %cst_47 : f32 to vector<2x64xf32>
    %34 = arith.truncf %33 : vector<2x64xf32> to vector<2x64xbf16>
    %cst_48 = arith.constant dense<0.000000e+00> : vector<2x192xf32>
    %35 = tpu.matmul %34, %2, %cst_48 {dimension_numbers = #tpu.dot_dimension_numbers<[1], [0], [0], [1], [0, 0, 1, 1], [], []>} : vector<2x64xbf16>, vector<64x192xbf16>, vector<2x192xf32> -> vector<2x192xf32>
    %36 = vector.broadcast %16 : vector<1x192xf32> to vector<2x192xf32>
    %37 = arith.addf %35, %36 : vector<2x192xf32>
    %38 = vector.extract_strided_slice %32 {offsets = [0, 0], sizes = [2, 96], strides = [1, 1]} : vector<16x192xf32> to vector<2x96xf32>
    %39 = vector.extract_strided_slice %37 {offsets = [0, 0], sizes = [2, 96], strides = [1, 1]} : vector<2x192xf32> to vector<2x96xf32>
    %40 = vector.extract_strided_slice %33 {offsets = [0, 0], sizes = [2, 32], strides = [1, 1]} : vector<2x64xf32> to vector<2x32xf32>
    %41 = vector.extract_strided_slice %38 {offsets = [0, 0], sizes = [2, 64], strides = [1, 1]} : vector<2x96xf32> to vector<2x64xf32>
    %42 = vector.extract_strided_slice %39 {offsets = [0, 0], sizes = [2, 64], strides = [1, 1]} : vector<2x96xf32> to vector<2x64xf32>
    %43 = arith.addf %41, %42 : vector<2x64xf32>
    %44 = arith.negf %43 : vector<2x64xf32>
    %45 = math.exp %44 : vector<2x64xf32>
    %cst_49 = arith.constant 1.000000e+00 : f32
    %46 = vector.broadcast %cst_49 : f32 to vector<2x64xf32>
    %47 = arith.addf %46, %45 : vector<2x64xf32>
    %48 = arith.divf %46, %47 : vector<2x64xf32>
    %49 = vector.extract_strided_slice %48 {offsets = [0, 0], sizes = [2, 32], strides = [1, 1]} : vector<2x64xf32> to vector<2x32xf32>
    %50 = vector.extract_strided_slice %48 {offsets = [0, 32], sizes = [2, 32], strides = [1, 1]} : vector<2x64xf32> to vector<2x32xf32>
    %51 = vector.extract_strided_slice %38 {offsets = [0, 64], sizes = [2, 32], strides = [1, 1]} : vector<2x96xf32> to vector<2x32xf32>
    %52 = vector.extract_strided_slice %39 {offsets = [0, 64], sizes = [2, 32], strides = [1, 1]} : vector<2x96xf32> to vector<2x32xf32>
    %53 = arith.mulf %49, %52 : vector<2x32xf32>
    %54 = arith.addf %51, %53 : vector<2x32xf32>
    %55 = math.tanh %54 : vector<2x32xf32>
    %56 = arith.subf %40, %55 : vector<2x32xf32>
    %57 = arith.mulf %50, %56 : vector<2x32xf32>
    %58 = arith.addf %55, %57 : vector<2x32xf32>
    %59 = vector.extract_strided_slice %32 {offsets = [14, 96], sizes = [2, 96], strides = [1, 1]} : vector<16x192xf32> to vector<2x96xf32>
    %60 = vector.extract_strided_slice %37 {offsets = [0, 96], sizes = [2, 96], strides = [1, 1]} : vector<2x192xf32> to vector<2x96xf32>
    %61 = vector.extract_strided_slice %33 {offsets = [0, 32], sizes = [2, 32], strides = [1, 1]} : vector<2x64xf32> to vector<2x32xf32>
    %62 = vector.extract_strided_slice %59 {offsets = [0, 0], sizes = [2, 64], strides = [1, 1]} : vector<2x96xf32> to vector<2x64xf32>
    %63 = vector.extract_strided_slice %60 {offsets = [0, 0], sizes = [2, 64], strides = [1, 1]} : vector<2x96xf32> to vector<2x64xf32>
    %64 = arith.addf %62, %63 : vector<2x64xf32>
    %65 = arith.negf %64 : vector<2x64xf32>
    %66 = math.exp %65 : vector<2x64xf32>
    %cst_50 = arith.constant 1.000000e+00 : f32
    %67 = vector.broadcast %cst_50 : f32 to vector<2x64xf32>
    %68 = arith.addf %67, %66 : vector<2x64xf32>
    %69 = arith.divf %67, %68 : vector<2x64xf32>
    %70 = vector.extract_strided_slice %69 {offsets = [0, 0], sizes = [2, 32], strides = [1, 1]} : vector<2x64xf32> to vector<2x32xf32>
    %71 = vector.extract_strided_slice %69 {offsets = [0, 32], sizes = [2, 32], strides = [1, 1]} : vector<2x64xf32> to vector<2x32xf32>
    %72 = vector.extract_strided_slice %59 {offsets = [0, 64], sizes = [2, 32], strides = [1, 1]} : vector<2x96xf32> to vector<2x32xf32>
    %73 = vector.extract_strided_slice %60 {offsets = [0, 64], sizes = [2, 32], strides = [1, 1]} : vector<2x96xf32> to vector<2x32xf32>
    %74 = arith.mulf %70, %73 : vector<2x32xf32>
    %75 = arith.addf %72, %74 : vector<2x32xf32>
    %76 = math.tanh %75 : vector<2x32xf32>
    %77 = arith.subf %61, %76 : vector<2x32xf32>
    %78 = arith.mulf %71, %77 : vector<2x32xf32>
    %79 = arith.addf %76, %78 : vector<2x32xf32>
    %80 = tpu.concatenate %58, %79 in 1 : vector<2x32xf32>, vector<2x32xf32> -> vector<2x64xf32>
    %c0_51 = arith.constant 0 : index
    %c0_52 = arith.constant 0 : index
    %81 = vector.load %arg25[%c0_51, %c0_52] : memref<16x64xf32, #tpu.memory_space<vmem>>, vector<2x32xf32>
    tpu.vector_store %arg25[%c0_51, %c0_52], %58 {strides = array<i32>} : memref<16x64xf32, #tpu.memory_space<vmem>>, vector<2x32xf32>,
    %c14 = arith.constant 14 : index
    %c32 = arith.constant 32 : index
    %82 = vector.load %arg25[%c14, %c32] : memref<16x64xf32, #tpu.memory_space<vmem>>, vector<2x32xf32>
    tpu.vector_store %arg25[%c14, %c32], %79 {strides = array<i32>} : memref<16x64xf32, #tpu.memory_space<vmem>>, vector<2x32xf32>,
    %83 = arith.truncf %80 : vector<2x64xf32> to vector<2x64xbf16>
    %cst_53 = arith.constant dense<0.000000e+00> : vector<2x192xf32>
    %84 = tpu.matmul %83, %2, %cst_53 {dimension_numbers = #tpu.dot_dimension_numbers<[1], [0], [0], [1], [0, 0, 1, 1], [], []>} : vector<2x64xbf16>, vector<64x192xbf16>, vector<2x192xf32> -> vector<2x192xf32>
    %85 = vector.broadcast %16 : vector<1x192xf32> to vector<2x192xf32>
    %86 = arith.addf %84, %85 : vector<2x192xf32>
    %87 = vector.extract_strided_slice %32 {offsets = [2, 0], sizes = [2, 96], strides = [1, 1]} : vector<16x192xf32> to vector<2x96xf32>
    %88 = vector.extract_strided_slice %86 {offsets = [0, 0], sizes = [2, 96], strides = [1, 1]} : vector<2x192xf32> to vector<2x96xf32>
    %89 = vector.extract_strided_slice %80 {offsets = [0, 0], sizes = [2, 32], strides = [1, 1]} : vector<2x64xf32> to vector<2x32xf32>
    %90 = vector.extract_strided_slice %87 {offsets = [0, 0], sizes = [2, 64], strides = [1, 1]} : vector<2x96xf32> to vector<2x64xf32>
    %91 = vector.extract_strided_slice %88 {offsets = [0, 0], sizes = [2, 64], strides = [1, 1]} : vector<2x96xf32> to vector<2x64xf32>
    %92 = arith.addf %90, %91 : vector<2x64xf32>
    %93 = arith.negf %92 : vector<2x64xf32>
    %94 = math.exp %93 : vector<2x64xf32>
    %cst_54 = arith.constant 1.000000e+00 : f32
    %95 = vector.broadcast %cst_54 : f32 to vector<2x64xf32>
    %96 = arith.addf %95, %94 : vector<2x64xf32>
    %97 = arith.divf %95, %96 : vector<2x64xf32>
    %98 = vector.extract_strided_slice %97 {offsets = [0, 0], sizes = [2, 32], strides = [1, 1]} : vector<2x64xf32> to vector<2x32xf32>
    %99 = vector.extract_strided_slice %97 {offsets = [0, 32], sizes = [2, 32], strides = [1, 1]} : vector<2x64xf32> to vector<2x32xf32>
    %100 = vector.extract_strided_slice %87 {offsets = [0, 64], sizes = [2, 32], strides = [1, 1]} : vector<2x96xf32> to vector<2x32xf32>
    %101 = vector.extract_strided_slice %88 {offsets = [0, 64], sizes = [2, 32], strides = [1, 1]} : vector<2x96xf32> to vector<2x32xf32>
    %102 = arith.mulf %98, %101 : vector<2x32xf32>
    %103 = arith.addf %100, %102 : vector<2x32xf32>
    %104 = math.tanh %103 : vector<2x32xf32>
    %105 = arith.subf %89, %104 : vector<2x32xf32>
    %106 = arith.mulf %99, %105 : vector<2x32xf32>
    %107 = arith.addf %104, %106 : vector<2x32xf32>
    %108 = vector.extract_strided_slice %32 {offsets = [12, 96], sizes = [2, 96], strides = [1, 1]} : vector<16x192xf32> to vector<2x96xf32>
    %109 = vector.extract_strided_slice %86 {offsets = [0, 96], sizes = [2, 96], strides = [1, 1]} : vector<2x192xf32> to vector<2x96xf32>
    %110 = vector.extract_strided_slice %80 {offsets = [0, 32], sizes = [2, 32], strides = [1, 1]} : vector<2x64xf32> to vector<2x32xf32>
    %111 = vector.extract_strided_slice %108 {offsets = [0, 0], sizes = [2, 64], strides = [1, 1]} : vector<2x96xf32> to vector<2x64xf32>
    %112 = vector.extract_strided_slice %109 {offsets = [0, 0], sizes = [2, 64], strides = [1, 1]} : vector<2x96xf32> to vector<2x64xf32>
    %113 = arith.addf %111, %112 : vector<2x64xf32>
    %114 = arith.negf %113 : vector<2x64xf32>
    %115 = math.exp %114 : vector<2x64xf32>
    %cst_55 = arith.constant 1.000000e+00 : f32
    %116 = vector.broadcast %cst_55 : f32 to vector<2x64xf32>
    %117 = arith.addf %116, %115 : vector<2x64xf32>
    %118 = arith.divf %116, %117 : vector<2x64xf32>
    %119 = vector.extract_strided_slice %118 {offsets = [0, 0], sizes = [2, 32], strides = [1, 1]} : vector<2x64xf32> to vector<2x32xf32>
    %120 = vector.extract_strided_slice %118 {offsets = [0, 32], sizes = [2, 32], strides = [1, 1]} : vector<2x64xf32> to vector<2x32xf32>
    %121 = vector.extract_strided_slice %108 {offsets = [0, 64], sizes = [2, 32], strides = [1, 1]} : vector<2x96xf32> to vector<2x32xf32>
    %122 = vector.extract_strided_slice %109 {offsets = [0, 64], sizes = [2, 32], strides = [1, 1]} : vector<2x96xf32> to vector<2x32xf32>
    %123 = arith.mulf %119, %122 : vector<2x32xf32>
    %124 = arith.addf %121, %123 : vector<2x32xf32>
    %125 = math.tanh %124 : vector<2x32xf32>
    %126 = arith.subf %110, %125 : vector<2x32xf32>
    %127 = arith.mulf %120, %126 : vector<2x32xf32>
    %128 = arith.addf %125, %127 : vector<2x32xf32>
    %129 = tpu.concatenate %107, %128 in 1 : vector<2x32xf32>, vector<2x32xf32> -> vector<2x64xf32>
    %c2 = arith.constant 2 : index
    %c0_56 = arith.constant 0 : index
    %130 = vector.load %arg25[%c2, %c0_56] : memref<16x64xf32, #tpu.memory_space<vmem>>, vector<2x32xf32>
    tpu.vector_store %arg25[%c2, %c0_56], %107 {strides = array<i32>} : memref<16x64xf32, #tpu.memory_space<vmem>>, vector<2x32xf32>,
    %c12 = arith.constant 12 : index
    %c32_57 = arith.constant 32 : index
    %131 = vector.load %arg25[%c12, %c32_57] : memref<16x64xf32, #tpu.memory_space<vmem>>, vector<2x32xf32>
    tpu.vector_store %arg25[%c12, %c32_57], %128 {strides = array<i32>} : memref<16x64xf32, #tpu.memory_space<vmem>>, vector<2x32xf32>,
    %132 = arith.truncf %129 : vector<2x64xf32> to vector<2x64xbf16>
    %cst_58 = arith.constant dense<0.000000e+00> : vector<2x192xf32>
    %133 = tpu.matmul %132, %2, %cst_58 {dimension_numbers = #tpu.dot_dimension_numbers<[1], [0], [0], [1], [0, 0, 1, 1], [], []>} : vector<2x64xbf16>, vector<64x192xbf16>, vector<2x192xf32> -> vector<2x192xf32>
    %134 = vector.broadcast %16 : vector<1x192xf32> to vector<2x192xf32>
    %135 = arith.addf %133, %134 : vector<2x192xf32>
    %136 = vector.extract_strided_slice %32 {offsets = [4, 0], sizes = [2, 96], strides = [1, 1]} : vector<16x192xf32> to vector<2x96xf32>
    %137 = vector.extract_strided_slice %135 {offsets = [0, 0], sizes = [2, 96], strides = [1, 1]} : vector<2x192xf32> to vector<2x96xf32>
    %138 = vector.extract_strided_slice %129 {offsets = [0, 0], sizes = [2, 32], strides = [1, 1]} : vector<2x64xf32> to vector<2x32xf32>
    %139 = vector.extract_strided_slice %136 {offsets = [0, 0], sizes = [2, 64], strides = [1, 1]} : vector<2x96xf32> to vector<2x64xf32>
    %140 = vector.extract_strided_slice %137 {offsets = [0, 0], sizes = [2, 64], strides = [1, 1]} : vector<2x96xf32> to vector<2x64xf32>
    %141 = arith.addf %139, %140 : vector<2x64xf32>
    %142 = arith.negf %141 : vector<2x64xf32>
    %143 = math.exp %142 : vector<2x64xf32>
    %cst_59 = arith.constant 1.000000e+00 : f32
    %144 = vector.broadcast %cst_59 : f32 to vector<2x64xf32>
    %145 = arith.addf %144, %143 : vector<2x64xf32>
    %146 = arith.divf %144, %145 : vector<2x64xf32>
    %147 = vector.extract_strided_slice %146 {offsets = [0, 0], sizes = [2, 32], strides = [1, 1]} : vector<2x64xf32> to vector<2x32xf32>
    %148 = vector.extract_strided_slice %146 {offsets = [0, 32], sizes = [2, 32], strides = [1, 1]} : vector<2x64xf32> to vector<2x32xf32>
    %149 = vector.extract_strided_slice %136 {offsets = [0, 64], sizes = [2, 32], strides = [1, 1]} : vector<2x96xf32> to vector<2x32xf32>
    %150 = vector.extract_strided_slice %137 {offsets = [0, 64], sizes = [2, 32], strides = [1, 1]} : vector<2x96xf32> to vector<2x32xf32>
    %151 = arith.mulf %147, %150 : vector<2x32xf32>
    %152 = arith.addf %149, %151 : vector<2x32xf32>
    %153 = math.tanh %152 : vector<2x32xf32>
    %154 = arith.subf %138, %153 : vector<2x32xf32>
    %155 = arith.mulf %148, %154 : vector<2x32xf32>
    %156 = arith.addf %153, %155 : vector<2x32xf32>
    %157 = vector.extract_strided_slice %32 {offsets = [10, 96], sizes = [2, 96], strides = [1, 1]} : vector<16x192xf32> to vector<2x96xf32>
    %158 = vector.extract_strided_slice %135 {offsets = [0, 96], sizes = [2, 96], strides = [1, 1]} : vector<2x192xf32> to vector<2x96xf32>
    %159 = vector.extract_strided_slice %129 {offsets = [0, 32], sizes = [2, 32], strides = [1, 1]} : vector<2x64xf32> to vector<2x32xf32>
    %160 = vector.extract_strided_slice %157 {offsets = [0, 0], sizes = [2, 64], strides = [1, 1]} : vector<2x96xf32> to vector<2x64xf32>
    %161 = vector.extract_strided_slice %158 {offsets = [0, 0], sizes = [2, 64], strides = [1, 1]} : vector<2x96xf32> to vector<2x64xf32>
    %162 = arith.addf %160, %161 : vector<2x64xf32>
    %163 = arith.negf %162 : vector<2x64xf32>
    %164 = math.exp %163 : vector<2x64xf32>
    %cst_60 = arith.constant 1.000000e+00 : f32
    %165 = vector.broadcast %cst_60 : f32 to vector<2x64xf32>
    %166 = arith.addf %165, %164 : vector<2x64xf32>
    %167 = arith.divf %165, %166 : vector<2x64xf32>
    %168 = vector.extract_strided_slice %167 {offsets = [0, 0], sizes = [2, 32], strides = [1, 1]} : vector<2x64xf32> to vector<2x32xf32>
    %169 = vector.extract_strided_slice %167 {offsets = [0, 32], sizes = [2, 32], strides = [1, 1]} : vector<2x64xf32> to vector<2x32xf32>
    %170 = vector.extract_strided_slice %157 {offsets = [0, 64], sizes = [2, 32], strides = [1, 1]} : vector<2x96xf32> to vector<2x32xf32>
    %171 = vector.extract_strided_slice %158 {offsets = [0, 64], sizes = [2, 32], strides = [1, 1]} : vector<2x96xf32> to vector<2x32xf32>
    %172 = arith.mulf %168, %171 : vector<2x32xf32>
    %173 = arith.addf %170, %172 : vector<2x32xf32>
    %174 = math.tanh %173 : vector<2x32xf32>
    %175 = arith.subf %159, %174 : vector<2x32xf32>
    %176 = arith.mulf %169, %175 : vector<2x32xf32>
    %177 = arith.addf %174, %176 : vector<2x32xf32>
    %178 = tpu.concatenate %156, %177 in 1 : vector<2x32xf32>, vector<2x32xf32> -> vector<2x64xf32>
    %c4 = arith.constant 4 : index
    %c0_61 = arith.constant 0 : index
    %179 = vector.load %arg25[%c4, %c0_61] : memref<16x64xf32, #tpu.memory_space<vmem>>, vector<2x32xf32>
    tpu.vector_store %arg25[%c4, %c0_61], %156 {strides = array<i32>} : memref<16x64xf32, #tpu.memory_space<vmem>>, vector<2x32xf32>,
    %c10 = arith.constant 10 : index
    %c32_62 = arith.constant 32 : index
    %180 = vector.load %arg25[%c10, %c32_62] : memref<16x64xf32, #tpu.memory_space<vmem>>, vector<2x32xf32>
    tpu.vector_store %arg25[%c10, %c32_62], %177 {strides = array<i32>} : memref<16x64xf32, #tpu.memory_space<vmem>>, vector<2x32xf32>,
    %181 = arith.truncf %178 : vector<2x64xf32> to vector<2x64xbf16>
    %cst_63 = arith.constant dense<0.000000e+00> : vector<2x192xf32>
    %182 = tpu.matmul %181, %2, %cst_63 {dimension_numbers = #tpu.dot_dimension_numbers<[1], [0], [0], [1], [0, 0, 1, 1], [], []>} : vector<2x64xbf16>, vector<64x192xbf16>, vector<2x192xf32> -> vector<2x192xf32>
    %183 = vector.broadcast %16 : vector<1x192xf32> to vector<2x192xf32>
    %184 = arith.addf %182, %183 : vector<2x192xf32>
    %185 = vector.extract_strided_slice %32 {offsets = [6, 0], sizes = [2, 96], strides = [1, 1]} : vector<16x192xf32> to vector<2x96xf32>
    %186 = vector.extract_strided_slice %184 {offsets = [0, 0], sizes = [2, 96], strides = [1, 1]} : vector<2x192xf32> to vector<2x96xf32>
    %187 = vector.extract_strided_slice %178 {offsets = [0, 0], sizes = [2, 32], strides = [1, 1]} : vector<2x64xf32> to vector<2x32xf32>
    %188 = vector.extract_strided_slice %185 {offsets = [0, 0], sizes = [2, 64], strides = [1, 1]} : vector<2x96xf32> to vector<2x64xf32>
    %189 = vector.extract_strided_slice %186 {offsets = [0, 0], sizes = [2, 64], strides = [1, 1]} : vector<2x96xf32> to vector<2x64xf32>
    %190 = arith.addf %188, %189 : vector<2x64xf32>
    %191 = arith.negf %190 : vector<2x64xf32>
    %192 = math.exp %191 : vector<2x64xf32>
    %cst_64 = arith.constant 1.000000e+00 : f32
    %193 = vector.broadcast %cst_64 : f32 to vector<2x64xf32>
    %194 = arith.addf %193, %192 : vector<2x64xf32>
    %195 = arith.divf %193, %194 : vector<2x64xf32>
    %196 = vector.extract_strided_slice %195 {offsets = [0, 0], sizes = [2, 32], strides = [1, 1]} : vector<2x64xf32> to vector<2x32xf32>
    %197 = vector.extract_strided_slice %195 {offsets = [0, 32], sizes = [2, 32], strides = [1, 1]} : vector<2x64xf32> to vector<2x32xf32>
    %198 = vector.extract_strided_slice %185 {offsets = [0, 64], sizes = [2, 32], strides = [1, 1]} : vector<2x96xf32> to vector<2x32xf32>
    %199 = vector.extract_strided_slice %186 {offsets = [0, 64], sizes = [2, 32], strides = [1, 1]} : vector<2x96xf32> to vector<2x32xf32>
    %200 = arith.mulf %196, %199 : vector<2x32xf32>
    %201 = arith.addf %198, %200 : vector<2x32xf32>
    %202 = math.tanh %201 : vector<2x32xf32>
    %203 = arith.subf %187, %202 : vector<2x32xf32>
    %204 = arith.mulf %197, %203 : vector<2x32xf32>
    %205 = arith.addf %202, %204 : vector<2x32xf32>
    %206 = vector.extract_strided_slice %32 {offsets = [8, 96], sizes = [2, 96], strides = [1, 1]} : vector<16x192xf32> to vector<2x96xf32>
    %207 = vector.extract_strided_slice %184 {offsets = [0, 96], sizes = [2, 96], strides = [1, 1]} : vector<2x192xf32> to vector<2x96xf32>
    %208 = vector.extract_strided_slice %178 {offsets = [0, 32], sizes = [2, 32], strides = [1, 1]} : vector<2x64xf32> to vector<2x32xf32>
    %209 = vector.extract_strided_slice %206 {offsets = [0, 0], sizes = [2, 64], strides = [1, 1]} : vector<2x96xf32> to vector<2x64xf32>
    %210 = vector.extract_strided_slice %207 {offsets = [0, 0], sizes = [2, 64], strides = [1, 1]} : vector<2x96xf32> to vector<2x64xf32>
    %211 = arith.addf %209, %210 : vector<2x64xf32>
    %212 = arith.negf %211 : vector<2x64xf32>
    %213 = math.exp %212 : vector<2x64xf32>
    %cst_65 = arith.constant 1.000000e+00 : f32
    %214 = vector.broadcast %cst_65 : f32 to vector<2x64xf32>
    %215 = arith.addf %214, %213 : vector<2x64xf32>
    %216 = arith.divf %214, %215 : vector<2x64xf32>
    %217 = vector.extract_strided_slice %216 {offsets = [0, 0], sizes = [2, 32], strides = [1, 1]} : vector<2x64xf32> to vector<2x32xf32>
    %218 = vector.extract_strided_slice %216 {offsets = [0, 32], sizes = [2, 32], strides = [1, 1]} : vector<2x64xf32> to vector<2x32xf32>
    %219 = vector.extract_strided_slice %206 {offsets = [0, 64], sizes = [2, 32], strides = [1, 1]} : vector<2x96xf32> to vector<2x32xf32>
    %220 = vector.extract_strided_slice %207 {offsets = [0, 64], sizes = [2, 32], strides = [1, 1]} : vector<2x96xf32> to vector<2x32xf32>
    %221 = arith.mulf %217, %220 : vector<2x32xf32>
    %222 = arith.addf %219, %221 : vector<2x32xf32>
    %223 = math.tanh %222 : vector<2x32xf32>
    %224 = arith.subf %208, %223 : vector<2x32xf32>
    %225 = arith.mulf %218, %224 : vector<2x32xf32>
    %226 = arith.addf %223, %225 : vector<2x32xf32>
    %227 = tpu.concatenate %205, %226 in 1 : vector<2x32xf32>, vector<2x32xf32> -> vector<2x64xf32>
    %c6 = arith.constant 6 : index
    %c0_66 = arith.constant 0 : index
    %228 = vector.load %arg25[%c6, %c0_66] : memref<16x64xf32, #tpu.memory_space<vmem>>, vector<2x32xf32>
    tpu.vector_store %arg25[%c6, %c0_66], %205 {strides = array<i32>} : memref<16x64xf32, #tpu.memory_space<vmem>>, vector<2x32xf32>,
    %c8 = arith.constant 8 : index
    %c32_67 = arith.constant 32 : index
    %229 = vector.load %arg25[%c8, %c32_67] : memref<16x64xf32, #tpu.memory_space<vmem>>, vector<2x32xf32>
    tpu.vector_store %arg25[%c8, %c32_67], %226 {strides = array<i32>} : memref<16x64xf32, #tpu.memory_space<vmem>>, vector<2x32xf32>,
    %230 = arith.truncf %227 : vector<2x64xf32> to vector<2x64xbf16>
    %cst_68 = arith.constant dense<0.000000e+00> : vector<2x192xf32>
    %231 = tpu.matmul %230, %2, %cst_68 {dimension_numbers = #tpu.dot_dimension_numbers<[1], [0], [0], [1], [0, 0, 1, 1], [], []>} : vector<2x64xbf16>, vector<64x192xbf16>, vector<2x192xf32> -> vector<2x192xf32>
    %232 = vector.broadcast %16 : vector<1x192xf32> to vector<2x192xf32>
    %233 = arith.addf %231, %232 : vector<2x192xf32>
    %234 = vector.extract_strided_slice %32 {offsets = [8, 0], sizes = [2, 96], strides = [1, 1]} : vector<16x192xf32> to vector<2x96xf32>
    %235 = vector.extract_strided_slice %233 {offsets = [0, 0], sizes = [2, 96], strides = [1, 1]} : vector<2x192xf32> to vector<2x96xf32>
    %236 = vector.extract_strided_slice %227 {offsets = [0, 0], sizes = [2, 32], strides = [1, 1]} : vector<2x64xf32> to vector<2x32xf32>
    %237 = vector.extract_strided_slice %234 {offsets = [0, 0], sizes = [2, 64], strides = [1, 1]} : vector<2x96xf32> to vector<2x64xf32>
    %238 = vector.extract_strided_slice %235 {offsets = [0, 0], sizes = [2, 64], strides = [1, 1]} : vector<2x96xf32> to vector<2x64xf32>
    %239 = arith.addf %237, %238 : vector<2x64xf32>
    %240 = arith.negf %239 : vector<2x64xf32>
    %241 = math.exp %240 : vector<2x64xf32>
    %cst_69 = arith.constant 1.000000e+00 : f32
    %242 = vector.broadcast %cst_69 : f32 to vector<2x64xf32>
    %243 = arith.addf %242, %241 : vector<2x64xf32>
    %244 = arith.divf %242, %243 : vector<2x64xf32>
    %245 = vector.extract_strided_slice %244 {offsets = [0, 0], sizes = [2, 32], strides = [1, 1]} : vector<2x64xf32> to vector<2x32xf32>
    %246 = vector.extract_strided_slice %244 {offsets = [0, 32], sizes = [2, 32], strides = [1, 1]} : vector<2x64xf32> to vector<2x32xf32>
    %247 = vector.extract_strided_slice %234 {offsets = [0, 64], sizes = [2, 32], strides = [1, 1]} : vector<2x96xf32> to vector<2x32xf32>
    %248 = vector.extract_strided_slice %235 {offsets = [0, 64], sizes = [2, 32], strides = [1, 1]} : vector<2x96xf32> to vector<2x32xf32>
    %249 = arith.mulf %245, %248 : vector<2x32xf32>
    %250 = arith.addf %247, %249 : vector<2x32xf32>
    %251 = math.tanh %250 : vector<2x32xf32>
    %252 = arith.subf %236, %251 : vector<2x32xf32>
    %253 = arith.mulf %246, %252 : vector<2x32xf32>
    %254 = arith.addf %251, %253 : vector<2x32xf32>
    %255 = vector.extract_strided_slice %32 {offsets = [6, 96], sizes = [2, 96], strides = [1, 1]} : vector<16x192xf32> to vector<2x96xf32>
    %256 = vector.extract_strided_slice %233 {offsets = [0, 96], sizes = [2, 96], strides = [1, 1]} : vector<2x192xf32> to vector<2x96xf32>
    %257 = vector.extract_strided_slice %227 {offsets = [0, 32], sizes = [2, 32], strides = [1, 1]} : vector<2x64xf32> to vector<2x32xf32>
    %258 = vector.extract_strided_slice %255 {offsets = [0, 0], sizes = [2, 64], strides = [1, 1]} : vector<2x96xf32> to vector<2x64xf32>
    %259 = vector.extract_strided_slice %256 {offsets = [0, 0], sizes = [2, 64], strides = [1, 1]} : vector<2x96xf32> to vector<2x64xf32>
    %260 = arith.addf %258, %259 : vector<2x64xf32>
    %261 = arith.negf %260 : vector<2x64xf32>
    %262 = math.exp %261 : vector<2x64xf32>
    %cst_70 = arith.constant 1.000000e+00 : f32
    %263 = vector.broadcast %cst_70 : f32 to vector<2x64xf32>
    %264 = arith.addf %263, %262 : vector<2x64xf32>
    %265 = arith.divf %263, %264 : vector<2x64xf32>
    %266 = vector.extract_strided_slice %265 {offsets = [0, 0], sizes = [2, 32], strides = [1, 1]} : vector<2x64xf32> to vector<2x32xf32>
    %267 = vector.extract_strided_slice %265 {offsets = [0, 32], sizes = [2, 32], strides = [1, 1]} : vector<2x64xf32> to vector<2x32xf32>
    %268 = vector.extract_strided_slice %255 {offsets = [0, 64], sizes = [2, 32], strides = [1, 1]} : vector<2x96xf32> to vector<2x32xf32>
    %269 = vector.extract_strided_slice %256 {offsets = [0, 64], sizes = [2, 32], strides = [1, 1]} : vector<2x96xf32> to vector<2x32xf32>
    %270 = arith.mulf %266, %269 : vector<2x32xf32>
    %271 = arith.addf %268, %270 : vector<2x32xf32>
    %272 = math.tanh %271 : vector<2x32xf32>
    %273 = arith.subf %257, %272 : vector<2x32xf32>
    %274 = arith.mulf %267, %273 : vector<2x32xf32>
    %275 = arith.addf %272, %274 : vector<2x32xf32>
    %276 = tpu.concatenate %254, %275 in 1 : vector<2x32xf32>, vector<2x32xf32> -> vector<2x64xf32>
    %c8_71 = arith.constant 8 : index
    %c0_72 = arith.constant 0 : index
    %277 = vector.load %arg25[%c8_71, %c0_72] : memref<16x64xf32, #tpu.memory_space<vmem>>, vector<2x32xf32>
    tpu.vector_store %arg25[%c8_71, %c0_72], %254 {strides = array<i32>} : memref<16x64xf32, #tpu.memory_space<vmem>>, vector<2x32xf32>,
    %c6_73 = arith.constant 6 : index
    %c32_74 = arith.constant 32 : index
    %278 = vector.load %arg25[%c6_73, %c32_74] : memref<16x64xf32, #tpu.memory_space<vmem>>, vector<2x32xf32>
    tpu.vector_store %arg25[%c6_73, %c32_74], %275 {strides = array<i32>} : memref<16x64xf32, #tpu.memory_space<vmem>>, vector<2x32xf32>,
    %279 = arith.truncf %276 : vector<2x64xf32> to vector<2x64xbf16>
    %cst_75 = arith.constant dense<0.000000e+00> : vector<2x192xf32>
    %280 = tpu.matmul %279, %2, %cst_75 {dimension_numbers = #tpu.dot_dimension_numbers<[1], [0], [0], [1], [0, 0, 1, 1], [], []>} : vector<2x64xbf16>, vector<64x192xbf16>, vector<2x192xf32> -> vector<2x192xf32>
    %281 = vector.broadcast %16 : vector<1x192xf32> to vector<2x192xf32>
    %282 = arith.addf %280, %281 : vector<2x192xf32>
    %283 = vector.extract_strided_slice %32 {offsets = [10, 0], sizes = [2, 96], strides = [1, 1]} : vector<16x192xf32> to vector<2x96xf32>
    %284 = vector.extract_strided_slice %282 {offsets = [0, 0], sizes = [2, 96], strides = [1, 1]} : vector<2x192xf32> to vector<2x96xf32>
    %285 = vector.extract_strided_slice %276 {offsets = [0, 0], sizes = [2, 32], strides = [1, 1]} : vector<2x64xf32> to vector<2x32xf32>
    %286 = vector.extract_strided_slice %283 {offsets = [0, 0], sizes = [2, 64], strides = [1, 1]} : vector<2x96xf32> to vector<2x64xf32>
    %287 = vector.extract_strided_slice %284 {offsets = [0, 0], sizes = [2, 64], strides = [1, 1]} : vector<2x96xf32> to vector<2x64xf32>
    %288 = arith.addf %286, %287 : vector<2x64xf32>
    %289 = arith.negf %288 : vector<2x64xf32>
    %290 = math.exp %289 : vector<2x64xf32>
    %cst_76 = arith.constant 1.000000e+00 : f32
    %291 = vector.broadcast %cst_76 : f32 to vector<2x64xf32>
    %292 = arith.addf %291, %290 : vector<2x64xf32>
    %293 = arith.divf %291, %292 : vector<2x64xf32>
    %294 = vector.extract_strided_slice %293 {offsets = [0, 0], sizes = [2, 32], strides = [1, 1]} : vector<2x64xf32> to vector<2x32xf32>
    %295 = vector.extract_strided_slice %293 {offsets = [0, 32], sizes = [2, 32], strides = [1, 1]} : vector<2x64xf32> to vector<2x32xf32>
    %296 = vector.extract_strided_slice %283 {offsets = [0, 64], sizes = [2, 32], strides = [1, 1]} : vector<2x96xf32> to vector<2x32xf32>
    %297 = vector.extract_strided_slice %284 {offsets = [0, 64], sizes = [2, 32], strides = [1, 1]} : vector<2x96xf32> to vector<2x32xf32>
    %298 = arith.mulf %294, %297 : vector<2x32xf32>
    %299 = arith.addf %296, %298 : vector<2x32xf32>
    %300 = math.tanh %299 : vector<2x32xf32>
    %301 = arith.subf %285, %300 : vector<2x32xf32>
    %302 = arith.mulf %295, %301 : vector<2x32xf32>
    %303 = arith.addf %300, %302 : vector<2x32xf32>
    %304 = vector.extract_strided_slice %32 {offsets = [4, 96], sizes = [2, 96], strides = [1, 1]} : vector<16x192xf32> to vector<2x96xf32>
    %305 = vector.extract_strided_slice %282 {offsets = [0, 96], sizes = [2, 96], strides = [1, 1]} : vector<2x192xf32> to vector<2x96xf32>
    %306 = vector.extract_strided_slice %276 {offsets = [0, 32], sizes = [2, 32], strides = [1, 1]} : vector<2x64xf32> to vector<2x32xf32>
    %307 = vector.extract_strided_slice %304 {offsets = [0, 0], sizes = [2, 64], strides = [1, 1]} : vector<2x96xf32> to vector<2x64xf32>
    %308 = vector.extract_strided_slice %305 {offsets = [0, 0], sizes = [2, 64], strides = [1, 1]} : vector<2x96xf32> to vector<2x64xf32>
    %309 = arith.addf %307, %308 : vector<2x64xf32>
    %310 = arith.negf %309 : vector<2x64xf32>
    %311 = math.exp %310 : vector<2x64xf32>
    %cst_77 = arith.constant 1.000000e+00 : f32
    %312 = vector.broadcast %cst_77 : f32 to vector<2x64xf32>
    %313 = arith.addf %312, %311 : vector<2x64xf32>
    %314 = arith.divf %312, %313 : vector<2x64xf32>
    %315 = vector.extract_strided_slice %314 {offsets = [0, 0], sizes = [2, 32], strides = [1, 1]} : vector<2x64xf32> to vector<2x32xf32>
    %316 = vector.extract_strided_slice %314 {offsets = [0, 32], sizes = [2, 32], strides = [1, 1]} : vector<2x64xf32> to vector<2x32xf32>
    %317 = vector.extract_strided_slice %304 {offsets = [0, 64], sizes = [2, 32], strides = [1, 1]} : vector<2x96xf32> to vector<2x32xf32>
    %318 = vector.extract_strided_slice %305 {offsets = [0, 64], sizes = [2, 32], strides = [1, 1]} : vector<2x96xf32> to vector<2x32xf32>
    %319 = arith.mulf %315, %318 : vector<2x32xf32>
    %320 = arith.addf %317, %319 : vector<2x32xf32>
    %321 = math.tanh %320 : vector<2x32xf32>
    %322 = arith.subf %306, %321 : vector<2x32xf32>
    %323 = arith.mulf %316, %322 : vector<2x32xf32>
    %324 = arith.addf %321, %323 : vector<2x32xf32>
    %325 = tpu.concatenate %303, %324 in 1 : vector<2x32xf32>, vector<2x32xf32> -> vector<2x64xf32>
    %c10_78 = arith.constant 10 : index
    %c0_79 = arith.constant 0 : index
    %326 = vector.load %arg25[%c10_78, %c0_79] : memref<16x64xf32, #tpu.memory_space<vmem>>, vector<2x32xf32>
    tpu.vector_store %arg25[%c10_78, %c0_79], %303 {strides = array<i32>} : memref<16x64xf32, #tpu.memory_space<vmem>>, vector<2x32xf32>,
    %c4_80 = arith.constant 4 : index
    %c32_81 = arith.constant 32 : index
    %327 = vector.load %arg25[%c4_80, %c32_81] : memref<16x64xf32, #tpu.memory_space<vmem>>, vector<2x32xf32>
    tpu.vector_store %arg25[%c4_80, %c32_81], %324 {strides = array<i32>} : memref<16x64xf32, #tpu.memory_space<vmem>>, vector<2x32xf32>,
    %328 = arith.truncf %325 : vector<2x64xf32> to vector<2x64xbf16>
    %cst_82 = arith.constant dense<0.000000e+00> : vector<2x192xf32>
    %329 = tpu.matmul %328, %2, %cst_82 {dimension_numbers = #tpu.dot_dimension_numbers<[1], [0], [0], [1], [0, 0, 1, 1], [], []>} : vector<2x64xbf16>, vector<64x192xbf16>, vector<2x192xf32> -> vector<2x192xf32>
    %330 = vector.broadcast %16 : vector<1x192xf32> to vector<2x192xf32>
    %331 = arith.addf %329, %330 : vector<2x192xf32>
    %332 = vector.extract_strided_slice %32 {offsets = [12, 0], sizes = [2, 96], strides = [1, 1]} : vector<16x192xf32> to vector<2x96xf32>
    %333 = vector.extract_strided_slice %331 {offsets = [0, 0], sizes = [2, 96], strides = [1, 1]} : vector<2x192xf32> to vector<2x96xf32>
    %334 = vector.extract_strided_slice %325 {offsets = [0, 0], sizes = [2, 32], strides = [1, 1]} : vector<2x64xf32> to vector<2x32xf32>
    %335 = vector.extract_strided_slice %332 {offsets = [0, 0], sizes = [2, 64], strides = [1, 1]} : vector<2x96xf32> to vector<2x64xf32>
    %336 = vector.extract_strided_slice %333 {offsets = [0, 0], sizes = [2, 64], strides = [1, 1]} : vector<2x96xf32> to vector<2x64xf32>
    %337 = arith.addf %335, %336 : vector<2x64xf32>
    %338 = arith.negf %337 : vector<2x64xf32>
    %339 = math.exp %338 : vector<2x64xf32>
    %cst_83 = arith.constant 1.000000e+00 : f32
    %340 = vector.broadcast %cst_83 : f32 to vector<2x64xf32>
    %341 = arith.addf %340, %339 : vector<2x64xf32>
    %342 = arith.divf %340, %341 : vector<2x64xf32>
    %343 = vector.extract_strided_slice %342 {offsets = [0, 0], sizes = [2, 32], strides = [1, 1]} : vector<2x64xf32> to vector<2x32xf32>
    %344 = vector.extract_strided_slice %342 {offsets = [0, 32], sizes = [2, 32], strides = [1, 1]} : vector<2x64xf32> to vector<2x32xf32>
    %345 = vector.extract_strided_slice %332 {offsets = [0, 64], sizes = [2, 32], strides = [1, 1]} : vector<2x96xf32> to vector<2x32xf32>
    %346 = vector.extract_strided_slice %333 {offsets = [0, 64], sizes = [2, 32], strides = [1, 1]} : vector<2x96xf32> to vector<2x32xf32>
    %347 = arith.mulf %343, %346 : vector<2x32xf32>
    %348 = arith.addf %345, %347 : vector<2x32xf32>
    %349 = math.tanh %348 : vector<2x32xf32>
    %350 = arith.subf %334, %349 : vector<2x32xf32>
    %351 = arith.mulf %344, %350 : vector<2x32xf32>
    %352 = arith.addf %349, %351 : vector<2x32xf32>
    %353 = vector.extract_strided_slice %32 {offsets = [2, 96], sizes = [2, 96], strides = [1, 1]} : vector<16x192xf32> to vector<2x96xf32>
    %354 = vector.extract_strided_slice %331 {offsets = [0, 96], sizes = [2, 96], strides = [1, 1]} : vector<2x192xf32> to vector<2x96xf32>
    %355 = vector.extract_strided_slice %325 {offsets = [0, 32], sizes = [2, 32], strides = [1, 1]} : vector<2x64xf32> to vector<2x32xf32>
    %356 = vector.extract_strided_slice %353 {offsets = [0, 0], sizes = [2, 64], strides = [1, 1]} : vector<2x96xf32> to vector<2x64xf32>
    %357 = vector.extract_strided_slice %354 {offsets = [0, 0], sizes = [2, 64], strides = [1, 1]} : vector<2x96xf32> to vector<2x64xf32>
    %358 = arith.addf %356, %357 : vector<2x64xf32>
    %359 = arith.negf %358 : vector<2x64xf32>
    %360 = math.exp %359 : vector<2x64xf32>
    %cst_84 = arith.constant 1.000000e+00 : f32
    %361 = vector.broadcast %cst_84 : f32 to vector<2x64xf32>
    %362 = arith.addf %361, %360 : vector<2x64xf32>
    %363 = arith.divf %361, %362 : vector<2x64xf32>
    %364 = vector.extract_strided_slice %363 {offsets = [0, 0], sizes = [2, 32], strides = [1, 1]} : vector<2x64xf32> to vector<2x32xf32>
    %365 = vector.extract_strided_slice %363 {offsets = [0, 32], sizes = [2, 32], strides = [1, 1]} : vector<2x64xf32> to vector<2x32xf32>
    %366 = vector.extract_strided_slice %353 {offsets = [0, 64], sizes = [2, 32], strides = [1, 1]} : vector<2x96xf32> to vector<2x32xf32>
    %367 = vector.extract_strided_slice %354 {offsets = [0, 64], sizes = [2, 32], strides = [1, 1]} : vector<2x96xf32> to vector<2x32xf32>
    %368 = arith.mulf %364, %367 : vector<2x32xf32>
    %369 = arith.addf %366, %368 : vector<2x32xf32>
    %370 = math.tanh %369 : vector<2x32xf32>
    %371 = arith.subf %355, %370 : vector<2x32xf32>
    %372 = arith.mulf %365, %371 : vector<2x32xf32>
    %373 = arith.addf %370, %372 : vector<2x32xf32>
    %374 = tpu.concatenate %352, %373 in 1 : vector<2x32xf32>, vector<2x32xf32> -> vector<2x64xf32>
    %c12_85 = arith.constant 12 : index
    %c0_86 = arith.constant 0 : index
    %375 = vector.load %arg25[%c12_85, %c0_86] : memref<16x64xf32, #tpu.memory_space<vmem>>, vector<2x32xf32>
    tpu.vector_store %arg25[%c12_85, %c0_86], %352 {strides = array<i32>} : memref<16x64xf32, #tpu.memory_space<vmem>>, vector<2x32xf32>,
    %c2_87 = arith.constant 2 : index
    %c32_88 = arith.constant 32 : index
    %376 = vector.load %arg25[%c2_87, %c32_88] : memref<16x64xf32, #tpu.memory_space<vmem>>, vector<2x32xf32>
    tpu.vector_store %arg25[%c2_87, %c32_88], %373 {strides = array<i32>} : memref<16x64xf32, #tpu.memory_space<vmem>>, vector<2x32xf32>,
    %377 = arith.truncf %374 : vector<2x64xf32> to vector<2x64xbf16>
    %cst_89 = arith.constant dense<0.000000e+00> : vector<2x192xf32>
    %378 = tpu.matmul %377, %2, %cst_89 {dimension_numbers = #tpu.dot_dimension_numbers<[1], [0], [0], [1], [0, 0, 1, 1], [], []>} : vector<2x64xbf16>, vector<64x192xbf16>, vector<2x192xf32> -> vector<2x192xf32>
    %379 = vector.broadcast %16 : vector<1x192xf32> to vector<2x192xf32>
    %380 = arith.addf %378, %379 : vector<2x192xf32>
    %381 = vector.extract_strided_slice %32 {offsets = [14, 0], sizes = [2, 96], strides = [1, 1]} : vector<16x192xf32> to vector<2x96xf32>
    %382 = vector.extract_strided_slice %380 {offsets = [0, 0], sizes = [2, 96], strides = [1, 1]} : vector<2x192xf32> to vector<2x96xf32>
    %383 = vector.extract_strided_slice %374 {offsets = [0, 0], sizes = [2, 32], strides = [1, 1]} : vector<2x64xf32> to vector<2x32xf32>
    %384 = vector.extract_strided_slice %381 {offsets = [0, 0], sizes = [2, 64], strides = [1, 1]} : vector<2x96xf32> to vector<2x64xf32>
    %385 = vector.extract_strided_slice %382 {offsets = [0, 0], sizes = [2, 64], strides = [1, 1]} : vector<2x96xf32> to vector<2x64xf32>
    %386 = arith.addf %384, %385 : vector<2x64xf32>
    %387 = arith.negf %386 : vector<2x64xf32>
    %388 = math.exp %387 : vector<2x64xf32>
    %cst_90 = arith.constant 1.000000e+00 : f32
    %389 = vector.broadcast %cst_90 : f32 to vector<2x64xf32>
    %390 = arith.addf %389, %388 : vector<2x64xf32>
    %391 = arith.divf %389, %390 : vector<2x64xf32>
    %392 = vector.extract_strided_slice %391 {offsets = [0, 0], sizes = [2, 32], strides = [1, 1]} : vector<2x64xf32> to vector<2x32xf32>
    %393 = vector.extract_strided_slice %391 {offsets = [0, 32], sizes = [2, 32], strides = [1, 1]} : vector<2x64xf32> to vector<2x32xf32>
    %394 = vector.extract_strided_slice %381 {offsets = [0, 64], sizes = [2, 32], strides = [1, 1]} : vector<2x96xf32> to vector<2x32xf32>
    %395 = vector.extract_strided_slice %382 {offsets = [0, 64], sizes = [2, 32], strides = [1, 1]} : vector<2x96xf32> to vector<2x32xf32>
    %396 = arith.mulf %392, %395 : vector<2x32xf32>
    %397 = arith.addf %394, %396 : vector<2x32xf32>
    %398 = math.tanh %397 : vector<2x32xf32>
    %399 = arith.subf %383, %398 : vector<2x32xf32>
    %400 = arith.mulf %393, %399 : vector<2x32xf32>
    %401 = arith.addf %398, %400 : vector<2x32xf32>
    %402 = vector.extract_strided_slice %32 {offsets = [0, 96], sizes = [2, 96], strides = [1, 1]} : vector<16x192xf32> to vector<2x96xf32>
    %403 = vector.extract_strided_slice %380 {offsets = [0, 96], sizes = [2, 96], strides = [1, 1]} : vector<2x192xf32> to vector<2x96xf32>
    %404 = vector.extract_strided_slice %374 {offsets = [0, 32], sizes = [2, 32], strides = [1, 1]} : vector<2x64xf32> to vector<2x32xf32>
    %405 = vector.extract_strided_slice %402 {offsets = [0, 0], sizes = [2, 64], strides = [1, 1]} : vector<2x96xf32> to vector<2x64xf32>
    %406 = vector.extract_strided_slice %403 {offsets = [0, 0], sizes = [2, 64], strides = [1, 1]} : vector<2x96xf32> to vector<2x64xf32>
    %407 = arith.addf %405, %406 : vector<2x64xf32>
    %408 = arith.negf %407 : vector<2x64xf32>
    %409 = math.exp %408 : vector<2x64xf32>
    %cst_91 = arith.constant 1.000000e+00 : f32
    %410 = vector.broadcast %cst_91 : f32 to vector<2x64xf32>
    %411 = arith.addf %410, %409 : vector<2x64xf32>
    %412 = arith.divf %410, %411 : vector<2x64xf32>
    %413 = vector.extract_strided_slice %412 {offsets = [0, 0], sizes = [2, 32], strides = [1, 1]} : vector<2x64xf32> to vector<2x32xf32>
    %414 = vector.extract_strided_slice %412 {offsets = [0, 32], sizes = [2, 32], strides = [1, 1]} : vector<2x64xf32> to vector<2x32xf32>
    %415 = vector.extract_strided_slice %402 {offsets = [0, 64], sizes = [2, 32], strides = [1, 1]} : vector<2x96xf32> to vector<2x32xf32>
    %416 = vector.extract_strided_slice %403 {offsets = [0, 64], sizes = [2, 32], strides = [1, 1]} : vector<2x96xf32> to vector<2x32xf32>
    %417 = arith.mulf %413, %416 : vector<2x32xf32>
    %418 = arith.addf %415, %417 : vector<2x32xf32>
    %419 = math.tanh %418 : vector<2x32xf32>
    %420 = arith.subf %404, %419 : vector<2x32xf32>
    %421 = arith.mulf %414, %420 : vector<2x32xf32>
    %422 = arith.addf %419, %421 : vector<2x32xf32>
    %423 = tpu.concatenate %401, %422 in 1 : vector<2x32xf32>, vector<2x32xf32> -> vector<2x64xf32>
    %c14_92 = arith.constant 14 : index
    %c0_93 = arith.constant 0 : index
    %424 = vector.load %arg25[%c14_92, %c0_93] : memref<16x64xf32, #tpu.memory_space<vmem>>, vector<2x32xf32>
    tpu.vector_store %arg25[%c14_92, %c0_93], %401 {strides = array<i32>} : memref<16x64xf32, #tpu.memory_space<vmem>>, vector<2x32xf32>,
    %c0_94 = arith.constant 0 : index
    %c32_95 = arith.constant 32 : index
    %425 = vector.load %arg25[%c0_94, %c32_95] : memref<16x64xf32, #tpu.memory_space<vmem>>, vector<2x32xf32>
    tpu.vector_store %arg25[%c0_94, %c32_95], %422 {strides = array<i32>} : memref<16x64xf32, #tpu.memory_space<vmem>>, vector<2x32xf32>,
    %c0_96 = arith.constant 0 : index
    %c0_97 = arith.constant 0 : index
    %426 = vector.load %arg25[%c0_96, %c0_97] : memref<16x64xf32, #tpu.memory_space<vmem>>, vector<16x64xf32>
    %427 = arith.truncf %423 : vector<2x64xf32> to vector<2x64xbf16>
    %cst_98 = arith.constant dense<0.000000e+00> : vector<2x32xf32>
    %428 = tpu.matmul %427, %3, %cst_98 {dimension_numbers = #tpu.dot_dimension_numbers<[1], [0], [0], [1], [0, 0, 1, 1], [], []>} : vector<2x64xbf16>, vector<64x32xbf16>, vector<2x32xf32> -> vector<2x32xf32>
    %429 = vector.broadcast %17 : vector<1x32xf32> to vector<2x32xf32>
    %430 = arith.addf %428, %429 : vector<2x32xf32>
    %431 = math.tanh %430 : vector<2x32xf32>
    %432 = arith.truncf %426 : vector<16x64xf32> to vector<16x64xbf16>
    %cst_99 = arith.constant dense<0.000000e+00> : vector<16x32xf32>
    %433 = tpu.matmul %432, %5, %cst_99 {dimension_numbers = #tpu.dot_dimension_numbers<[1], [0], [0], [1], [0, 0, 1, 1], [], []>} : vector<16x64xbf16>, vector<64x32xbf16>, vector<16x32xf32> -> vector<16x32xf32>
    %434 = vector.extract_strided_slice %22 {offsets = [14, 0], sizes = [2, 1], strides = [1, 1]} : vector<16x4xf32> to vector<2x1xf32>
    %435 = arith.truncf %431 : vector<2x32xf32> to vector<2x32xbf16>
    %cst_100 = arith.constant dense<0.000000e+00> : vector<2x32xf32>
    %436 = tpu.matmul %435, %4, %cst_100 {dimension_numbers = #tpu.dot_dimension_numbers<[1], [0], [0], [1], [0, 0, 1, 1], [], []>} : vector<2x32xbf16>, vector<32x32xbf16>, vector<2x32xf32> -> vector<2x32xf32>
    %437 = tpu.concatenate %436, %436, %436, %436, %436, %436, %436, %436 in 0 : vector<2x32xf32>, vector<2x32xf32>, vector<2x32xf32>, vector<2x32xf32>, vector<2x32xf32>, vector<2x32xf32>, vector<2x32xf32>, vector<2x32xf32> -> vector<16x32xf32>
    %438 = arith.addf %437, %433 : vector<16x32xf32>
    %439 = math.tanh %438 : vector<16x32xf32>
    %440 = arith.truncf %439 : vector<16x32xf32> to vector<16x32xbf16>
    %cst_101 = arith.constant dense<0.000000e+00> : vector<16x1xf32>
    %441 = tpu.matmul %440, %6, %cst_101 {dimension_numbers = #tpu.dot_dimension_numbers<[1], [0], [0], [1], [0, 0, 1, 1], [], []>} : vector<16x32xbf16>, vector<32x1xbf16>, vector<16x1xf32> -> vector<16x1xf32>
    %cst_102 = arith.constant dense<0xFF800000> : vector<1xf32>
    %442 = vector.multi_reduction <maximumf>, %441, %cst_102 [0] : vector<16x1xf32> to vector<1xf32>
    %443 = vector.shape_cast %442 : vector<1xf32> to vector<1x1xf32>
    %444 = vector.broadcast %443 : vector<1x1xf32> to vector<16x1xf32>
    %445 = arith.subf %441, %444 : vector<16x1xf32>
    %446 = math.exp %445 : vector<16x1xf32>
    %cst_103 = arith.constant dense<0.000000e+00> : vector<16x1xf32>
    %447 = tpu.matmul %7, %446, %cst_103 {dimension_numbers = #tpu.dot_dimension_numbers<[1], [0], [0], [1], [0, 0, 1, 1], [], []>} : vector<16x16xf32>, vector<16x1xf32>, vector<16x1xf32> -> vector<16x1xf32>
    %448 = arith.divf %446, %447 : vector<16x1xf32>
    %449 = vector.broadcast %448 : vector<16x1xf32> to vector<16x64xf32>
    %450 = arith.mulf %449, %426 : vector<16x64xf32>
    %cst_104 = arith.constant dense<0.000000e+00> : vector<2x64xf32>
    %451 = tpu.matmul %8, %450, %cst_104 {dimension_numbers = #tpu.dot_dimension_numbers<[1], [0], [0], [1], [0, 0, 1, 1], [], []>} : vector<2x16xf32>, vector<16x64xf32>, vector<2x64xf32> -> vector<2x64xf32>
    %452 = vector.broadcast %434 : vector<2x1xf32> to vector<2x16xf32>
    %453 = vector.broadcast %9 : vector<1x16xf32> to vector<2x16xf32>
    %454 = arith.mulf %452, %453 : vector<2x16xf32>
    %455 = vector.broadcast %10 : vector<1x16xf32> to vector<2x16xf32>
    %456 = arith.addf %454, %455 : vector<2x16xf32>
    %cst_105 = arith.constant 0.000000e+00 : f32
    %457 = vector.broadcast %cst_105 : f32 to vector<2x16xf32>
    %458 = arith.maximumf %456, %457 : vector<2x16xf32>
    %459 = tpu.concatenate %458, %451 in 1 : vector<2x16xf32>, vector<2x64xf32> -> vector<2x80xf32>
    %460 = arith.truncf %459 : vector<2x80xf32> to vector<2x80xbf16>
    %cst_106 = arith.constant dense<0.000000e+00> : vector<2x96xf32>
    %461 = tpu.matmul %460, %11, %cst_106 {dimension_numbers = #tpu.dot_dimension_numbers<[1], [0], [0], [1], [0, 0, 1, 1], [], []>} : vector<2x80xbf16>, vector<80x96xbf16>, vector<2x96xf32> -> vector<2x96xf32>
    %462 = vector.broadcast %18 : vector<1x96xf32> to vector<2x96xf32>
    %463 = arith.addf %461, %462 : vector<2x96xf32>
    %464 = arith.truncf %431 : vector<2x32xf32> to vector<2x32xbf16>
    %cst_107 = arith.constant dense<0.000000e+00> : vector<2x96xf32>
    %465 = tpu.matmul %464, %12, %cst_107 {dimension_numbers = #tpu.dot_dimension_numbers<[1], [0], [0], [1], [0, 0, 1, 1], [], []>} : vector<2x32xbf16>, vector<32x96xbf16>, vector<2x96xf32> -> vector<2x96xf32>
    %466 = vector.broadcast %19 : vector<1x96xf32> to vector<2x96xf32>
    %467 = arith.addf %465, %466 : vector<2x96xf32>
    %468 = vector.extract_strided_slice %463 {offsets = [0, 0], sizes = [2, 64], strides = [1, 1]} : vector<2x96xf32> to vector<2x64xf32>
    %469 = vector.extract_strided_slice %467 {offsets = [0, 0], sizes = [2, 64], strides = [1, 1]} : vector<2x96xf32> to vector<2x64xf32>
    %470 = arith.addf %468, %469 : vector<2x64xf32>
    %471 = arith.negf %470 : vector<2x64xf32>
    %472 = math.exp %471 : vector<2x64xf32>
    %cst_108 = arith.constant 1.000000e+00 : f32
    %473 = vector.broadcast %cst_108 : f32 to vector<2x64xf32>
    %474 = arith.addf %473, %472 : vector<2x64xf32>
    %475 = arith.divf %473, %474 : vector<2x64xf32>
    %476 = vector.extract_strided_slice %475 {offsets = [0, 0], sizes = [2, 32], strides = [1, 1]} : vector<2x64xf32> to vector<2x32xf32>
    %477 = vector.extract_strided_slice %475 {offsets = [0, 32], sizes = [2, 32], strides = [1, 1]} : vector<2x64xf32> to vector<2x32xf32>
    %478 = vector.extract_strided_slice %463 {offsets = [0, 64], sizes = [2, 32], strides = [1, 1]} : vector<2x96xf32> to vector<2x32xf32>
    %479 = vector.extract_strided_slice %467 {offsets = [0, 64], sizes = [2, 32], strides = [1, 1]} : vector<2x96xf32> to vector<2x32xf32>
    %480 = arith.mulf %476, %479 : vector<2x32xf32>
    %481 = arith.addf %478, %480 : vector<2x32xf32>
    %482 = math.tanh %481 : vector<2x32xf32>
    %483 = arith.subf %431, %482 : vector<2x32xf32>
    %484 = arith.mulf %477, %483 : vector<2x32xf32>
    %485 = arith.addf %482, %484 : vector<2x32xf32>
    %486 = tpu.concatenate %485, %451, %458 in 1 : vector<2x32xf32>, vector<2x64xf32>, vector<2x16xf32> -> vector<2x112xf32>
    %487 = arith.truncf %486 : vector<2x112xf32> to vector<2x112xbf16>
    %cst_109 = arith.constant dense<0.000000e+00> : vector<2x1xf32>
    %488 = tpu.matmul %487, %13, %cst_109 {dimension_numbers = #tpu.dot_dimension_numbers<[1], [0], [0], [1], [0, 0, 1, 1], [], []>} : vector<2x112xbf16>, vector<112x1xbf16>, vector<2x1xf32> -> vector<2x1xf32>
    %489 = vector.broadcast %20 : vector<1x1xf32> to vector<2x1xf32>
    %490 = arith.addf %488, %489 : vector<2x1xf32>
    %c0_110 = arith.constant 0 : index
    %491 = memref.load %arg0[%c0_110] : memref<4xi32, #tpu.memory_space<smem>>
    %c0_i32 = arith.constant 0 : i32
    %492 = arith.cmpi ne, %491, %c0_i32 : i32
    %493 = arith.extui %492 : i1 to i32
    %494 = arith.sitofp %493 : i32 to f32
    %495 = vector.extract_strided_slice %21 {offsets = [0, 0], sizes = [2, 1], strides = [1, 1]} : vector<2x4xf32> to vector<2x1xf32>
    %496 = vector.broadcast %494 : f32 to vector<2x1xf32>
    %497 = arith.mulf %496, %495 : vector<2x1xf32>
    %cst_111 = arith.constant 1.000000e+00 : f32
    %498 = arith.subf %cst_111, %494 : f32
    %499 = vector.broadcast %498 : f32 to vector<2x1xf32>
    %500 = arith.mulf %499, %490 : vector<2x1xf32>
    %501 = arith.addf %497, %500 : vector<2x1xf32>
    %502 = arith.truncf %485 : vector<2x32xf32> to vector<2x32xbf16>
    %cst_112 = arith.constant dense<0.000000e+00> : vector<2x32xf32>
    %503 = tpu.matmul %502, %4, %cst_112 {dimension_numbers = #tpu.dot_dimension_numbers<[1], [0], [0], [1], [0, 0, 1, 1], [], []>} : vector<2x32xbf16>, vector<32x32xbf16>, vector<2x32xf32> -> vector<2x32xf32>
    %504 = tpu.concatenate %503, %503, %503, %503, %503, %503, %503, %503 in 0 : vector<2x32xf32>, vector<2x32xf32>, vector<2x32xf32>, vector<2x32xf32>, vector<2x32xf32>, vector<2x32xf32>, vector<2x32xf32>, vector<2x32xf32> -> vector<16x32xf32>
    %505 = arith.addf %504, %433 : vector<16x32xf32>
    %506 = math.tanh %505 : vector<16x32xf32>
    %507 = arith.truncf %506 : vector<16x32xf32> to vector<16x32xbf16>
    %cst_113 = arith.constant dense<0.000000e+00> : vector<16x1xf32>
    %508 = tpu.matmul %507, %6, %cst_113 {dimension_numbers = #tpu.dot_dimension_numbers<[1], [0], [0], [1], [0, 0, 1, 1], [], []>} : vector<16x32xbf16>, vector<32x1xbf16>, vector<16x1xf32> -> vector<16x1xf32>
    %cst_114 = arith.constant dense<0xFF800000> : vector<1xf32>
    %509 = vector.multi_reduction <maximumf>, %508, %cst_114 [0] : vector<16x1xf32> to vector<1xf32>
    %510 = vector.shape_cast %509 : vector<1xf32> to vector<1x1xf32>
    %511 = vector.broadcast %510 : vector<1x1xf32> to vector<16x1xf32>
    %512 = arith.subf %508, %511 : vector<16x1xf32>
    %513 = math.exp %512 : vector<16x1xf32>
    %cst_115 = arith.constant dense<0.000000e+00> : vector<16x1xf32>
    %514 = tpu.matmul %7, %513, %cst_115 {dimension_numbers = #tpu.dot_dimension_numbers<[1], [0], [0], [1], [0, 0, 1, 1], [], []>} : vector<16x16xf32>, vector<16x1xf32>, vector<16x1xf32> -> vector<16x1xf32>
    %515 = arith.divf %513, %514 : vector<16x1xf32>
    %516 = vector.broadcast %515 : vector<16x1xf32> to vector<16x64xf32>
    %517 = arith.mulf %516, %426 : vector<16x64xf32>
    %cst_116 = arith.constant dense<0.000000e+00> : vector<2x64xf32>
    %518 = tpu.matmul %8, %517, %cst_116 {dimension_numbers = #tpu.dot_dimension_numbers<[1], [0], [0], [1], [0, 0, 1, 1], [], []>} : vector<2x16xf32>, vector<16x64xf32>, vector<2x64xf32> -> vector<2x64xf32>
    %519 = vector.broadcast %501 : vector<2x1xf32> to vector<2x16xf32>
    %520 = vector.broadcast %9 : vector<1x16xf32> to vector<2x16xf32>
    %521 = arith.mulf %519, %520 : vector<2x16xf32>
    %522 = vector.broadcast %10 : vector<1x16xf32> to vector<2x16xf32>
    %523 = arith.addf %521, %522 : vector<2x16xf32>
    %cst_117 = arith.constant 0.000000e+00 : f32
    %524 = vector.broadcast %cst_117 : f32 to vector<2x16xf32>
    %525 = arith.maximumf %523, %524 : vector<2x16xf32>
    %526 = tpu.concatenate %525, %518 in 1 : vector<2x16xf32>, vector<2x64xf32> -> vector<2x80xf32>
    %527 = arith.truncf %526 : vector<2x80xf32> to vector<2x80xbf16>
    %cst_118 = arith.constant dense<0.000000e+00> : vector<2x96xf32>
    %528 = tpu.matmul %527, %11, %cst_118 {dimension_numbers = #tpu.dot_dimension_numbers<[1], [0], [0], [1], [0, 0, 1, 1], [], []>} : vector<2x80xbf16>, vector<80x96xbf16>, vector<2x96xf32> -> vector<2x96xf32>
    %529 = vector.broadcast %18 : vector<1x96xf32> to vector<2x96xf32>
    %530 = arith.addf %528, %529 : vector<2x96xf32>
    %531 = arith.truncf %485 : vector<2x32xf32> to vector<2x32xbf16>
    %cst_119 = arith.constant dense<0.000000e+00> : vector<2x96xf32>
    %532 = tpu.matmul %531, %12, %cst_119 {dimension_numbers = #tpu.dot_dimension_numbers<[1], [0], [0], [1], [0, 0, 1, 1], [], []>} : vector<2x32xbf16>, vector<32x96xbf16>, vector<2x96xf32> -> vector<2x96xf32>
    %533 = vector.broadcast %19 : vector<1x96xf32> to vector<2x96xf32>
    %534 = arith.addf %532, %533 : vector<2x96xf32>
    %535 = vector.extract_strided_slice %530 {offsets = [0, 0], sizes = [2, 64], strides = [1, 1]} : vector<2x96xf32> to vector<2x64xf32>
    %536 = vector.extract_strided_slice %534 {offsets = [0, 0], sizes = [2, 64], strides = [1, 1]} : vector<2x96xf32> to vector<2x64xf32>
    %537 = arith.addf %535, %536 : vector<2x64xf32>
    %538 = arith.negf %537 : vector<2x64xf32>
    %539 = math.exp %538 : vector<2x64xf32>
    %cst_120 = arith.constant 1.000000e+00 : f32
    %540 = vector.broadcast %cst_120 : f32 to vector<2x64xf32>
    %541 = arith.addf %540, %539 : vector<2x64xf32>
    %542 = arith.divf %540, %541 : vector<2x64xf32>
    %543 = vector.extract_strided_slice %542 {offsets = [0, 0], sizes = [2, 32], strides = [1, 1]} : vector<2x64xf32> to vector<2x32xf32>
    %544 = vector.extract_strided_slice %542 {offsets = [0, 32], sizes = [2, 32], strides = [1, 1]} : vector<2x64xf32> to vector<2x32xf32>
    %545 = vector.extract_strided_slice %530 {offsets = [0, 64], sizes = [2, 32], strides = [1, 1]} : vector<2x96xf32> to vector<2x32xf32>
    %546 = vector.extract_strided_slice %534 {offsets = [0, 64], sizes = [2, 32], strides = [1, 1]} : vector<2x96xf32> to vector<2x32xf32>
    %547 = arith.mulf %543, %546 : vector<2x32xf32>
    %548 = arith.addf %545, %547 : vector<2x32xf32>
    %549 = math.tanh %548 : vector<2x32xf32>
    %550 = arith.subf %485, %549 : vector<2x32xf32>
    %551 = arith.mulf %544, %550 : vector<2x32xf32>
    %552 = arith.addf %549, %551 : vector<2x32xf32>
    %553 = tpu.concatenate %552, %518, %525 in 1 : vector<2x32xf32>, vector<2x64xf32>, vector<2x16xf32> -> vector<2x112xf32>
    %554 = arith.truncf %553 : vector<2x112xf32> to vector<2x112xbf16>
    %cst_121 = arith.constant dense<0.000000e+00> : vector<2x1xf32>
    %555 = tpu.matmul %554, %13, %cst_121 {dimension_numbers = #tpu.dot_dimension_numbers<[1], [0], [0], [1], [0, 0, 1, 1], [], []>} : vector<2x112xbf16>, vector<112x1xbf16>, vector<2x1xf32> -> vector<2x1xf32>
    %556 = vector.broadcast %20 : vector<1x1xf32> to vector<2x1xf32>
    %557 = arith.addf %555, %556 : vector<2x1xf32>
    %c1 = arith.constant 1 : index
    %558 = memref.load %arg0[%c1] : memref<4xi32, #tpu.memory_space<smem>>
    %c0_i32_122 = arith.constant 0 : i32
    %559 = arith.cmpi ne, %558, %c0_i32_122 : i32
    %560 = arith.extui %559 : i1 to i32
    %561 = arith.sitofp %560 : i32 to f32
    %562 = vector.extract_strided_slice %21 {offsets = [0, 1], sizes = [2, 1], strides = [1, 1]} : vector<2x4xf32> to vector<2x1xf32>
    %563 = vector.broadcast %561 : f32 to vector<2x1xf32>
    %564 = arith.mulf %563, %562 : vector<2x1xf32>
    %cst_123 = arith.constant 1.000000e+00 : f32
    %565 = arith.subf %cst_123, %561 : f32
    %566 = vector.broadcast %565 : f32 to vector<2x1xf32>
    %567 = arith.mulf %566, %557 : vector<2x1xf32>
    %568 = arith.addf %564, %567 : vector<2x1xf32>
    %569 = arith.truncf %552 : vector<2x32xf32> to vector<2x32xbf16>
    %cst_124 = arith.constant dense<0.000000e+00> : vector<2x32xf32>
    %570 = tpu.matmul %569, %4, %cst_124 {dimension_numbers = #tpu.dot_dimension_numbers<[1], [0], [0], [1], [0, 0, 1, 1], [], []>} : vector<2x32xbf16>, vector<32x32xbf16>, vector<2x32xf32> -> vector<2x32xf32>
    %571 = tpu.concatenate %570, %570, %570, %570, %570, %570, %570, %570 in 0 : vector<2x32xf32>, vector<2x32xf32>, vector<2x32xf32>, vector<2x32xf32>, vector<2x32xf32>, vector<2x32xf32>, vector<2x32xf32>, vector<2x32xf32> -> vector<16x32xf32>
    %572 = arith.addf %571, %433 : vector<16x32xf32>
    %573 = math.tanh %572 : vector<16x32xf32>
    %574 = arith.truncf %573 : vector<16x32xf32> to vector<16x32xbf16>
    %cst_125 = arith.constant dense<0.000000e+00> : vector<16x1xf32>
    %575 = tpu.matmul %574, %6, %cst_125 {dimension_numbers = #tpu.dot_dimension_numbers<[1], [0], [0], [1], [0, 0, 1, 1], [], []>} : vector<16x32xbf16>, vector<32x1xbf16>, vector<16x1xf32> -> vector<16x1xf32>
    %cst_126 = arith.constant dense<0xFF800000> : vector<1xf32>
    %576 = vector.multi_reduction <maximumf>, %575, %cst_126 [0] : vector<16x1xf32> to vector<1xf32>
    %577 = vector.shape_cast %576 : vector<1xf32> to vector<1x1xf32>
    %578 = vector.broadcast %577 : vector<1x1xf32> to vector<16x1xf32>
    %579 = arith.subf %575, %578 : vector<16x1xf32>
    %580 = math.exp %579 : vector<16x1xf32>
    %cst_127 = arith.constant dense<0.000000e+00> : vector<16x1xf32>
    %581 = tpu.matmul %7, %580, %cst_127 {dimension_numbers = #tpu.dot_dimension_numbers<[1], [0], [0], [1], [0, 0, 1, 1], [], []>} : vector<16x16xf32>, vector<16x1xf32>, vector<16x1xf32> -> vector<16x1xf32>
    %582 = arith.divf %580, %581 : vector<16x1xf32>
    %583 = vector.broadcast %582 : vector<16x1xf32> to vector<16x64xf32>
    %584 = arith.mulf %583, %426 : vector<16x64xf32>
    %cst_128 = arith.constant dense<0.000000e+00> : vector<2x64xf32>
    %585 = tpu.matmul %8, %584, %cst_128 {dimension_numbers = #tpu.dot_dimension_numbers<[1], [0], [0], [1], [0, 0, 1, 1], [], []>} : vector<2x16xf32>, vector<16x64xf32>, vector<2x64xf32> -> vector<2x64xf32>
    %586 = vector.broadcast %568 : vector<2x1xf32> to vector<2x16xf32>
    %587 = vector.broadcast %9 : vector<1x16xf32> to vector<2x16xf32>
    %588 = arith.mulf %586, %587 : vector<2x16xf32>
    %589 = vector.broadcast %10 : vector<1x16xf32> to vector<2x16xf32>
    %590 = arith.addf %588, %589 : vector<2x16xf32>
    %cst_129 = arith.constant 0.000000e+00 : f32
    %591 = vector.broadcast %cst_129 : f32 to vector<2x16xf32>
    %592 = arith.maximumf %590, %591 : vector<2x16xf32>
    %593 = tpu.concatenate %592, %585 in 1 : vector<2x16xf32>, vector<2x64xf32> -> vector<2x80xf32>
    %594 = arith.truncf %593 : vector<2x80xf32> to vector<2x80xbf16>
    %cst_130 = arith.constant dense<0.000000e+00> : vector<2x96xf32>
    %595 = tpu.matmul %594, %11, %cst_130 {dimension_numbers = #tpu.dot_dimension_numbers<[1], [0], [0], [1], [0, 0, 1, 1], [], []>} : vector<2x80xbf16>, vector<80x96xbf16>, vector<2x96xf32> -> vector<2x96xf32>
    %596 = vector.broadcast %18 : vector<1x96xf32> to vector<2x96xf32>
    %597 = arith.addf %595, %596 : vector<2x96xf32>
    %598 = arith.truncf %552 : vector<2x32xf32> to vector<2x32xbf16>
    %cst_131 = arith.constant dense<0.000000e+00> : vector<2x96xf32>
    %599 = tpu.matmul %598, %12, %cst_131 {dimension_numbers = #tpu.dot_dimension_numbers<[1], [0], [0], [1], [0, 0, 1, 1], [], []>} : vector<2x32xbf16>, vector<32x96xbf16>, vector<2x96xf32> -> vector<2x96xf32>
    %600 = vector.broadcast %19 : vector<1x96xf32> to vector<2x96xf32>
    %601 = arith.addf %599, %600 : vector<2x96xf32>
    %602 = vector.extract_strided_slice %597 {offsets = [0, 0], sizes = [2, 64], strides = [1, 1]} : vector<2x96xf32> to vector<2x64xf32>
    %603 = vector.extract_strided_slice %601 {offsets = [0, 0], sizes = [2, 64], strides = [1, 1]} : vector<2x96xf32> to vector<2x64xf32>
    %604 = arith.addf %602, %603 : vector<2x64xf32>
    %605 = arith.negf %604 : vector<2x64xf32>
    %606 = math.exp %605 : vector<2x64xf32>
    %cst_132 = arith.constant 1.000000e+00 : f32
    %607 = vector.broadcast %cst_132 : f32 to vector<2x64xf32>
    %608 = arith.addf %607, %606 : vector<2x64xf32>
    %609 = arith.divf %607, %608 : vector<2x64xf32>
    %610 = vector.extract_strided_slice %609 {offsets = [0, 0], sizes = [2, 32], strides = [1, 1]} : vector<2x64xf32> to vector<2x32xf32>
    %611 = vector.extract_strided_slice %609 {offsets = [0, 32], sizes = [2, 32], strides = [1, 1]} : vector<2x64xf32> to vector<2x32xf32>
    %612 = vector.extract_strided_slice %597 {offsets = [0, 64], sizes = [2, 32], strides = [1, 1]} : vector<2x96xf32> to vector<2x32xf32>
    %613 = vector.extract_strided_slice %601 {offsets = [0, 64], sizes = [2, 32], strides = [1, 1]} : vector<2x96xf32> to vector<2x32xf32>
    %614 = arith.mulf %610, %613 : vector<2x32xf32>
    %615 = arith.addf %612, %614 : vector<2x32xf32>
    %616 = math.tanh %615 : vector<2x32xf32>
    %617 = arith.subf %552, %616 : vector<2x32xf32>
    %618 = arith.mulf %611, %617 : vector<2x32xf32>
    %619 = arith.addf %616, %618 : vector<2x32xf32>
    %620 = tpu.concatenate %619, %585, %592 in 1 : vector<2x32xf32>, vector<2x64xf32>, vector<2x16xf32> -> vector<2x112xf32>
    %621 = arith.truncf %620 : vector<2x112xf32> to vector<2x112xbf16>
    %cst_133 = arith.constant dense<0.000000e+00> : vector<2x1xf32>
    %622 = tpu.matmul %621, %13, %cst_133 {dimension_numbers = #tpu.dot_dimension_numbers<[1], [0], [0], [1], [0, 0, 1, 1], [], []>} : vector<2x112xbf16>, vector<112x1xbf16>, vector<2x1xf32> -> vector<2x1xf32>
    %623 = vector.broadcast %20 : vector<1x1xf32> to vector<2x1xf32>
    %624 = arith.addf %622, %623 : vector<2x1xf32>
    %c2_134 = arith.constant 2 : index
    %625 = memref.load %arg0[%c2_134] : memref<4xi32, #tpu.memory_space<smem>>
    %c0_i32_135 = arith.constant 0 : i32
    %626 = arith.cmpi ne, %625, %c0_i32_135 : i32
    %627 = arith.extui %626 : i1 to i32
    %628 = arith.sitofp %627 : i32 to f32
    %629 = vector.extract_strided_slice %21 {offsets = [0, 2], sizes = [2, 1], strides = [1, 1]} : vector<2x4xf32> to vector<2x1xf32>
    %630 = vector.broadcast %628 : f32 to vector<2x1xf32>
    %631 = arith.mulf %630, %629 : vector<2x1xf32>
    %cst_136 = arith.constant 1.000000e+00 : f32
    %632 = arith.subf %cst_136, %628 : f32
    %633 = vector.broadcast %632 : f32 to vector<2x1xf32>
    %634 = arith.mulf %633, %624 : vector<2x1xf32>
    %635 = arith.addf %631, %634 : vector<2x1xf32>
    %636 = arith.truncf %619 : vector<2x32xf32> to vector<2x32xbf16>
    %cst_137 = arith.constant dense<0.000000e+00> : vector<2x32xf32>
    %637 = tpu.matmul %636, %4, %cst_137 {dimension_numbers = #tpu.dot_dimension_numbers<[1], [0], [0], [1], [0, 0, 1, 1], [], []>} : vector<2x32xbf16>, vector<32x32xbf16>, vector<2x32xf32> -> vector<2x32xf32>
    %638 = tpu.concatenate %637, %637, %637, %637, %637, %637, %637, %637 in 0 : vector<2x32xf32>, vector<2x32xf32>, vector<2x32xf32>, vector<2x32xf32>, vector<2x32xf32>, vector<2x32xf32>, vector<2x32xf32>, vector<2x32xf32> -> vector<16x32xf32>
    %639 = arith.addf %638, %433 : vector<16x32xf32>
    %640 = math.tanh %639 : vector<16x32xf32>
    %641 = arith.truncf %640 : vector<16x32xf32> to vector<16x32xbf16>
    %cst_138 = arith.constant dense<0.000000e+00> : vector<16x1xf32>
    %642 = tpu.matmul %641, %6, %cst_138 {dimension_numbers = #tpu.dot_dimension_numbers<[1], [0], [0], [1], [0, 0, 1, 1], [], []>} : vector<16x32xbf16>, vector<32x1xbf16>, vector<16x1xf32> -> vector<16x1xf32>
    %cst_139 = arith.constant dense<0xFF800000> : vector<1xf32>
    %643 = vector.multi_reduction <maximumf>, %642, %cst_139 [0] : vector<16x1xf32> to vector<1xf32>
    %644 = vector.shape_cast %643 : vector<1xf32> to vector<1x1xf32>
    %645 = vector.broadcast %644 : vector<1x1xf32> to vector<16x1xf32>
    %646 = arith.subf %642, %645 : vector<16x1xf32>
    %647 = math.exp %646 : vector<16x1xf32>
    %cst_140 = arith.constant dense<0.000000e+00> : vector<16x1xf32>
    %648 = tpu.matmul %7, %647, %cst_140 {dimension_numbers = #tpu.dot_dimension_numbers<[1], [0], [0], [1], [0, 0, 1, 1], [], []>} : vector<16x16xf32>, vector<16x1xf32>, vector<16x1xf32> -> vector<16x1xf32>
    %649 = arith.divf %647, %648 : vector<16x1xf32>
    %650 = vector.broadcast %649 : vector<16x1xf32> to vector<16x64xf32>
    %651 = arith.mulf %650, %426 : vector<16x64xf32>
    %cst_141 = arith.constant dense<0.000000e+00> : vector<2x64xf32>
    %652 = tpu.matmul %8, %651, %cst_141 {dimension_numbers = #tpu.dot_dimension_numbers<[1], [0], [0], [1], [0, 0, 1, 1], [], []>} : vector<2x16xf32>, vector<16x64xf32>, vector<2x64xf32> -> vector<2x64xf32>
    %653 = vector.broadcast %635 : vector<2x1xf32> to vector<2x16xf32>
    %654 = vector.broadcast %9 : vector<1x16xf32> to vector<2x16xf32>
    %655 = arith.mulf %653, %654 : vector<2x16xf32>
    %656 = vector.broadcast %10 : vector<1x16xf32> to vector<2x16xf32>
    %657 = arith.addf %655, %656 : vector<2x16xf32>
    %cst_142 = arith.constant 0.000000e+00 : f32
    %658 = vector.broadcast %cst_142 : f32 to vector<2x16xf32>
    %659 = arith.maximumf %657, %658 : vector<2x16xf32>
    %660 = tpu.concatenate %659, %652 in 1 : vector<2x16xf32>, vector<2x64xf32> -> vector<2x80xf32>
    %661 = arith.truncf %660 : vector<2x80xf32> to vector<2x80xbf16>
    %cst_143 = arith.constant dense<0.000000e+00> : vector<2x96xf32>
    %662 = tpu.matmul %661, %11, %cst_143 {dimension_numbers = #tpu.dot_dimension_numbers<[1], [0], [0], [1], [0, 0, 1, 1], [], []>} : vector<2x80xbf16>, vector<80x96xbf16>, vector<2x96xf32> -> vector<2x96xf32>
    %663 = vector.broadcast %18 : vector<1x96xf32> to vector<2x96xf32>
    %664 = arith.addf %662, %663 : vector<2x96xf32>
    %665 = arith.truncf %619 : vector<2x32xf32> to vector<2x32xbf16>
    %cst_144 = arith.constant dense<0.000000e+00> : vector<2x96xf32>
    %666 = tpu.matmul %665, %12, %cst_144 {dimension_numbers = #tpu.dot_dimension_numbers<[1], [0], [0], [1], [0, 0, 1, 1], [], []>} : vector<2x32xbf16>, vector<32x96xbf16>, vector<2x96xf32> -> vector<2x96xf32>
    %667 = vector.broadcast %19 : vector<1x96xf32> to vector<2x96xf32>
    %668 = arith.addf %666, %667 : vector<2x96xf32>
    %669 = vector.extract_strided_slice %664 {offsets = [0, 0], sizes = [2, 64], strides = [1, 1]} : vector<2x96xf32> to vector<2x64xf32>
    %670 = vector.extract_strided_slice %668 {offsets = [0, 0], sizes = [2, 64], strides = [1, 1]} : vector<2x96xf32> to vector<2x64xf32>
    %671 = arith.addf %669, %670 : vector<2x64xf32>
    %672 = arith.negf %671 : vector<2x64xf32>
    %673 = math.exp %672 : vector<2x64xf32>
    %cst_145 = arith.constant 1.000000e+00 : f32
    %674 = vector.broadcast %cst_145 : f32 to vector<2x64xf32>
    %675 = arith.addf %674, %673 : vector<2x64xf32>
    %676 = arith.divf %674, %675 : vector<2x64xf32>
    %677 = vector.extract_strided_slice %676 {offsets = [0, 0], sizes = [2, 32], strides = [1, 1]} : vector<2x64xf32> to vector<2x32xf32>
    %678 = vector.extract_strided_slice %676 {offsets = [0, 32], sizes = [2, 32], strides = [1, 1]} : vector<2x64xf32> to vector<2x32xf32>
    %679 = vector.extract_strided_slice %664 {offsets = [0, 64], sizes = [2, 32], strides = [1, 1]} : vector<2x96xf32> to vector<2x32xf32>
    %680 = vector.extract_strided_slice %668 {offsets = [0, 64], sizes = [2, 32], strides = [1, 1]} : vector<2x96xf32> to vector<2x32xf32>
    %681 = arith.mulf %677, %680 : vector<2x32xf32>
    %682 = arith.addf %679, %681 : vector<2x32xf32>
    %683 = math.tanh %682 : vector<2x32xf32>
    %684 = arith.subf %619, %683 : vector<2x32xf32>
    %685 = arith.mulf %678, %684 : vector<2x32xf32>
    %686 = arith.addf %683, %685 : vector<2x32xf32>
    %687 = tpu.concatenate %686, %652, %659 in 1 : vector<2x32xf32>, vector<2x64xf32>, vector<2x16xf32> -> vector<2x112xf32>
    %688 = arith.truncf %687 : vector<2x112xf32> to vector<2x112xbf16>
    %cst_146 = arith.constant dense<0.000000e+00> : vector<2x1xf32>
    %689 = tpu.matmul %688, %13, %cst_146 {dimension_numbers = #tpu.dot_dimension_numbers<[1], [0], [0], [1], [0, 0, 1, 1], [], []>} : vector<2x112xbf16>, vector<112x1xbf16>, vector<2x1xf32> -> vector<2x1xf32>
    %690 = vector.broadcast %20 : vector<1x1xf32> to vector<2x1xf32>
    %691 = arith.addf %689, %690 : vector<2x1xf32>
    %692 = tpu.concatenate %490, %557, %624, %691 in 1 : vector<2x1xf32>, vector<2x1xf32>, vector<2x1xf32>, vector<2x1xf32> -> vector<2x4xf32>
    %c0_147 = arith.constant 0 : index
    %c0_148 = arith.constant 0 : index
    %693 = vector.load %arg24[%c0_147, %c0_148] : memref<2x4xf32, #tpu.memory_space<vmem>>, vector<2x4xf32>
    tpu.vector_store %arg24[%c0_147, %c0_148], %692 {strides = array<i32>} : memref<2x4xf32, #tpu.memory_space<vmem>>, vector<2x4xf32>,
    return
  }
}

</mosaic_0001>

<bundles_post_ra>
// kernel: seq2seq_att_forward.1
= control target key start
LH: loop header
LB: loop body
LE: loop exit
PB: predicated region body
PF: predicated region fallthrough
CT: control target
= control target key end

     0   :  { %s5746_s0 = inlined_call_operand.vmem [shape: s32[4], index: 0, kind: input, shape index: {}]   ;;  %s5747_s1 = inlined_call_operand.vmem [shape: f32[16,4], index: 1, kind: input, shape index: {}]   ;;  %s5748_s2 = inlined_call_operand.vmem [shape: f32[2,4], index: 2, kind: input, shape index: {}]   ;;  %s5749_s3 = inlined_call_operand.vmem [shape: bf16[4,16], index: 3, kind: input, shape index: {}]   ;;  %s5750_s4 = inlined_call_operand.vmem [shape: f32[1,16], index: 4, kind: input, shape index: {}]   ;;  %s5751_s5 = inlined_call_operand.vmem [shape: bf16[16,192], index: 5, kind: input, shape index: {}]   ;;  %s5752_s6 = inlined_call_operand.vmem [shape: f32[1,192], index: 6, kind: input, shape index: {}]   ;;  %s5753_s7 = inlined_call_operand.vmem [shape: bf16[64,192], index: 7, kind: input, shape index: {}]   ;;  %s5754_s8 = inlined_call_operand.vmem [shape: f32[1,192], index: 8, kind: input, shape index: {}]   ;;  %s5755_s9 = inlined_call_operand.vmem [shape: bf16[64,32], index: 9, kind: input, shape index: {}]   ;;  %s5756_s10 = inlined_call_operand.vmem [shape: f32[1,32], index: 10, kind: input, shape index: {}]   ;;  %s5757_s11 = inlined_call_operand.vmem [shape: bf16[32,32], index: 11, kind: input, shape index: {}]   ;;  %s5758_s12 = inlined_call_operand.vmem [shape: bf16[64,32], index: 12, kind: input, shape index: {}]   ;;  %s5759_s13 = inlined_call_operand.vmem [shape: bf16[32,1], index: 13, kind: input, shape index: {}]   ;;  %s5760_s14 = inlined_call_operand.vmem [shape: f32[16,16], index: 14, kind: input, shape index: {}]   ;;  %s5761_s15 = inlined_call_operand.vmem [shape: f32[2,16], index: 15, kind: input, shape index: {}]   ;;  %s5762_s16 = inlined_call_operand.vmem [shape: f32[1,16], index: 16, kind: input, shape index: {}]   ;;  %s5763_s17 = inlined_call_operand.vmem [shape: f32[1,16], index: 17, kind: input, shape index: {}]   ;;  %s5764_s18 = inlined_call_operand.vmem [shape: bf16[80,96], index: 18, kind: input, shape index: {}]   ;;  %s5765_s19 = inlined_call_operand.vmem [shape: f32[1,96], index: 19, kind: input, shape index: {}]   ;;  %s5766_s20 = inlined_call_operand.vmem [shape: bf16[32,96], index: 20, kind: input, shape index: {}]   ;;  %s5767_s21 = inlined_call_operand.vmem [shape: f32[1,96], index: 21, kind: input, shape index: {}]   ;;  %s5768_s22 = inlined_call_operand.vmem [shape: bf16[112,1], index: 22, kind: input, shape index: {}]   ;;  %s5769_s23 = inlined_call_operand.<no memory space> [shape: f32[1,1], index: 23, kind: input, shape index: {}]   ;;  %s5770_s24 = inlined_call_operand.hbm [shape: f32[2,4], index: 24, kind: output, shape index: {}]  }
   0x1   :  { %5774 = sst [smem:[#allocation10_spill]] %s5746_s0  ;;  %v29_v0 = vstv %s5769_s23 }
   0x2   :  { %5775 = sst [smem:[#allocation11_spill]] %s5747_s1  ;;  %30 = vst [vmem:[#allocation3] sm:$0x1] %v29_v0 }
   0x3   :  { %5776 = sst [smem:[#allocation12_spill]] %s5748_s2 }
   0x4   :  { %5777 = sst [smem:[#allocation13_spill]] %s5749_s3 }
   0x5   :  { %5778 = sst [smem:[#allocation14_spill]] %s5750_s4 }
   0x6   :  { %5779 = sst [smem:[#allocation15_spill]] %s5751_s5 }
   0x7   :  { %5780 = sst [smem:[#allocation16_spill]] %s5752_s6 }
   0x8   :  { %5781 = sst [smem:[#allocation17_spill]] %s5753_s7 }
   0x9   :  { %5782 = sst [smem:[#allocation18_spill]] %s5754_s8 }
   0xa   :  { %31 = vsyncpa [#allocation6], 0 }
   0xb   :  { %32 = vsyncpa [#allocation5], 0  ;;  %s5783_s6 = sld [smem:[#allocation10_spill]] }
  0x11   :  { %s39_s2 = sshll.u32 %s5783_s6, 4  ;;  %s40_s2 = int_to_ptr.vmem [resolvable:$true] %s39_s2 }
  0x12   :  { %s4541_s29 = scalar_lea.vmem %s40_s2, 16  ;;  %p4546_p1 = scmp.lt.s32.totalorder %s40_s2, %s40_s2 }
  0x13   :  { %p4542_p0 = scmp.ne.s32.totalorder %s40_s2, %s4541_s29  ;;  %p4547_p2 = scmp.lt.s32.totalorder %s4541_s29, %s4541_s29 }
  0x15   :  { %p4548_p3 = por %p4547_p2, %p4546_p1 }
  0x17   :  { %p4549_p4 = pnand %p4548_p3, %p4542_p0 }
  0x19   :  { %4552 = shalt.err (!%p4549_p4)
}
  0x1a   :  { %s4579_s0 = smov [#allocation4]  }
  0x1b   :  { %42 = dma.vmem_to_smem %s40_s2, 16, %s4579_s0, [#allocation6]  }
  0x1c   :  { %4575 = dma.done.wait [#allocation6], 16  }
  0x1d   :  { %4576 = vsyncadd [#allocation6], 4294967280 }
  0x1e   :  { %92 = sfence }
  0x1f   :  { %s5784_s30 = sld [smem:[#allocation13_spill]]  ;;  %vm183_vm0 = vcmask 1041408   ;;  %s5785_s8 = sld [smem:[#allocation11_spill]]  ;;  %v4580_v3 = vmov 0.0   ;;  %vm4581_vm1 = vmmov 0   ;;  %vm179_vm2 = vcmask 31744  }
  0x20   :  { %3909 = vmatprep.subr.bf16.mxu0 %v4580_v3  ;;  %3911 = vmatprep.mubr.msk.bf16.mxu0 %vm4581_vm1, %v4580_v3  ;;  %s5786_s27 = sld [smem:[#allocation17_spill]]  ;;  %v4582_v9 = vmov 0   ;;  %s5787_s2 = sld [smem:[#allocation15_spill]]  ;;  %v232_v22 = vlaneseq  ;;  %vm252_vm3 = vcmask 130048   ;;  %vm475_vm4 = vcmask 523526  }
  0x21   :  { %288 = vmatprep.mubr.bf16.mxu1 %v4582_v9  ;;  %4263 = vset.pattern.permute.xlu0 %v4582_v9  ;;  %s5789_s4 = sld [smem:[#allocation18_spill]]  ;;  %s4583_s1 = smov 64   ;;  %vm471_vm5 = vcmask 261120   ;;  %vm473_vm6 = vcmask 254976   ;;  %vm350_vm7 = vcmask 523264   ;;  %vm613_vm8 = vcmask 521476  }
  0x22   :  { %4262 = vset.pattern.permute.xlu1 %v4582_v9  ;;  %v233_v28 = vshrl.u32 %v232_v22, 7  ;;  %s5790_s28 = sld [smem:[#allocation16_spill]]  ;;  %s4584_s6 = smov 96   ;;  %vm611_vm9 = vcmask 257026   ;;  %vm749_vm10 = vcmask 519426   ;;  %vm747_vm11 = vcmask 259076  }
  0x23   :  { %vm885_vm12 = vcmask 517376   ;;  %vm883_vm13 = vcmask 261126   ;;  %vm1635_vm14 = vcmask 1043456   ;;  %vm1637_vm15 = vcmask 1045504   ;;  %s2194_s29 = sld [smem:[#allocation4]]  ;;  %s5791_s3 = sld [smem:[#allocation12_spill]] }
  0x24   :  { %v234_v30 = vsub.s32 0, %v233_v28  ;;  %v238_v32 = vsub.s32 1, %v233_v28 }
  0x25   :  { %v94_v1 = vld [vmem:[%s5784_s30] sm:$0x3]  ;;  %v171_v5 = vld [vmem:[%s5785_s8 + $0x8] sm:$0xff]  ;;  %s5788_s30 = sld [smem:[#allocation14_spill]] }
  0x26   :  { %v170_v2 = vld [vmem:[%s5785_s8] sm:$0xff]  ;;  %v185_v4 = vsel %vm183_vm0, %v94_v1, 0  ;;  %v4752_v10 = vld [vmem:[%s5786_s27 + $0x14] ss:$8 sps:$4 sm:$0xff]   ;;  %v4761_v11 = vld [vmem:[%s5786_s27 + $0x10] ss:$8 sps:$4 sm:$0xff]  }
  0x27   :  { %3910 = vmatpush3.bf16.msra.mxu0 %v185_v4  ;;  %v172_v6 = vpack.c.bf16 %v171_v5, %v170_v2  ;;  %v4741_v7 = vld [vmem:[%s5786_s27 + $0x4] ss:$8 sps:$4 sm:$0xff]   ;;  %v4746_v8 = vld [vmem:[%s5786_s27] ss:$8 sps:$4 sm:$0xff]   ;;  %v4778_v14 = vld [vmem:[%s5786_s27 + $0x34] ss:$8 sps:$4 sm:$0xff]  }
  0x28   :  { %354 = vmatprep.subr.bf16.mxu0 %v4741_v7  ;;  %v4766_v12 = vld [vmem:[%s5786_s27 + $0x24] ss:$8 sps:$4 sm:$0xff]   ;;  %v4773_v13 = vld [vmem:[%s5786_s27 + $0x20] ss:$8 sps:$4 sm:$0xff]   ;;  %v4785_v15 = vld [vmem:[%s5786_s27 + $0x30] ss:$8 sps:$4 sm:$0xff]  }
  0x29   :  { %v4280_v16 = vld [vmem:[%s5787_s2 + $0x4] ss:$8 sps:$4 sm:$0xff]   ;;  %v4282_v17 = vld [vmem:[%s5787_s2] ss:$8 sps:$4 sm:$0xff]   ;;  %s4585_s2 = smov 32   ;;  %p2195_p5 = scmp.ne.s32.totalorder %s2194_s29, 0 }
  0x2a   :  { %3912 = vmatmul.mubr.msk.bf16.vlgmr.msra.gmra.mrb[0].mxu0 %vm179_vm2, %v172_v6  ;;  %256 = vmatprep.subr.bf16.mxu1 %v4280_v16  ;;  %v164_v31 = vld [vmem:[%s5789_s4] sm:$0x3]  ;;  %vm1700_vm2 = vcmask 7168  }
  0x2b   :  { %355 = vmatpush1.bf16.msra.mxu0 %v4746_v8  ;;  %386 = vmatprep.mubr.bf16.mxu0 %v4582_v9  ;;  %v3661_v18 = vld [vmem:[%s5788_s30] ss:$0 sm:$0xff]  ;;  %v4818_v33 = vrot.slane %v164_v31, %v234_v30  ;;  %v4820_v34 = vrot.slane %v164_v31, %v238_v32  ;;  %s2196_s0 = scalar_select %p2195_p5, 1, 0 }
  0x2c   :  { %356 = vmatprep.subr.bf16.mxu0 %v4752_v10  ;;  %257 = vmatpush1.bf16.msra.mxu1 %v4282_v17  ;;  %v163_v42 = vld [vmem:[%s5790_s28] sm:$0x3] }
  0x2d   :  { %481 = vmatprep.subr.bf16.mxu1 %v4741_v7  ;;  %v235_v43 = vrot.slane %v163_v42, %v234_v30  ;;  %v239_v44 = vrot.slane %v163_v42, %v238_v32  ;;  %s2197_s23 = scvt.s32.f32 %s2196_s0  ;;  %s3767_s0 = sld [smem:[#allocation4 + $0x2]] }
  0x2f   :  { %357 = vmatpush1.bf16.msra.mxu0 %v4761_v11 }
  0x30   :  { %358 = vmatprep.subr.bf16.mxu0 %v4766_v12 }
  0x33   :  { %359 = vmatpush1.bf16.msra.mxu0 %v4773_v13  ;;  %p3149_p7 = scmp.ne.s32.totalorder %s3767_s0, 0 }
  0x34   :  { %360 = vmatprep.subr.bf16.mxu0 %v4778_v14 }
  0x37   :  { %361 = vmatpush1.bf16.msra.mxu0 %v4785_v15 }
  0x38   :  { %621 = vmatprep.subr.bf16.mxu0 %v4741_v7 }
  0x3a   :  { %387 = vmatmul.mubr.bf16.vlgmr.msra.gmra.mrb[4].mxu0 %v4582_v9 }
  0x3b   :  { %622 = vmatpush1.bf16.msra.mxu0 %v4746_v8  ;;  %653 = vmatprep.mubr.bf16.mxu0 %v4582_v9 }
  0x3c   :  { %623 = vmatprep.subr.bf16.mxu0 %v4752_v10 }
  0x3f   :  { %624 = vmatpush1.bf16.msra.mxu0 %v4761_v11 }
  0x40   :  { %625 = vmatprep.subr.bf16.mxu0 %v4766_v12 }
  0x43   :  { %626 = vmatpush1.bf16.msra.mxu0 %v4773_v13 }
  0x44   :  { %627 = vmatprep.subr.bf16.mxu0 %v4778_v14 }
  0x47   :  { %628 = vmatpush1.bf16.msra.mxu0 %v4785_v15 }
  0x48   :  { %893 = vmatprep.subr.bf16.mxu0 %v4741_v7 }
  0xfd   :  { %v221_v19 = vpop.f32.mrb[0].mxu0 }
  0xfe   :  { %v222_v20 = vadd.f32 %v3661_v18, %v221_v19  ;;  %v3913_v21 = vpop.f32.mrb[1].mxu0 }
  0xff   :  { %v224_v23 = vpop.f32.mrb[2].mxu0 }
 0x100   :  { %v225_v24 = vadd.f32 %v3661_v18, %v224_v23  ;;  %v3914_v25 = vpop.f32.mrb[3].mxu0  ;;  %v228_v26 = vmax.f32 %v222_v20, 0.0 }
 0x102   :  { %v229_v27 = vmax.f32 %v225_v24, 0.0 }
 0x104   :  { %v230_v29 = vpack.c.bf16 %v229_v27, %v228_v26 }
 0x106   :  { %3665 = vmatmul.mubr.msk.bf16.vlgmr.msra.gmra.mrb[0].mxu1 %vm252_vm3, %v230_v29 }
 0x107   :  { %482 = vmatpush1.bf16.msra.mxu1 %v4746_v8  ;;  %513 = vmatprep.mubr.bf16.mxu1 %v4582_v9 }
 0x108   :  { %483 = vmatprep.subr.bf16.mxu1 %v4752_v10 }
 0x10b   :  { %484 = vmatpush1.bf16.msra.mxu1 %v4761_v11 }
 0x10c   :  { %485 = vmatprep.subr.bf16.mxu1 %v4766_v12 }
 0x10d   :  { %v388_v35 = vpop.f32.mrb[4].mxu0 }
 0x10e   :  { %v389_v36 = vadd.f32 %v388_v35, %v4818_v33  ;;  %v390_v37 = vpop.f32.mrb[5].mxu0 }
 0x10f   :  { %v391_v38 = vadd.f32 %v390_v37, %v4820_v34  ;;  %v392_v39 = vpop.f32.mrb[6].mxu0  ;;  %486 = vmatpush1.bf16.msra.mxu1 %v4773_v13 }
 0x110   :  { %v393_v40 = vpop.f32.mrb[7].mxu0  ;;  %403 = vrot.lane.b32.xlu0 %v389_v36, %s4583_s1  ;;  %487 = vmatprep.subr.bf16.mxu1 %v4778_v14  ;;  %v425_v50 = vrot.slane %v389_v36, 2 }
 0x111   :  { %v426_v41 = vrot.slane %v391_v38, 2 }
 0x113   :  { %488 = vmatpush1.bf16.msra.mxu1 %v4785_v15 }
 0x114   :  { %443 = vrot.lane.b32.xlu0 %v426_v41, %s4583_s1  ;;  %757 = vmatprep.subr.bf16.mxu1 %v4741_v7 }
 0x182   :  { %v404_v61 = vpop.permute.xlu0 %403 }
 0x186   :  { %v444_v1 = vpop.permute.xlu0 %443 }
 0x1d9   :  { %v290_v45 = vpop.f32.mrb[0].mxu1 }
 0x1da   :  { %v4835_v46 = vadd.f32 %v290_v45, %v235_v43  ;;  %v292_v47 = vpop.f32.mrb[1].mxu1 }
 0x1db   :  { %v4837_v48 = vadd.f32 %v292_v47, %v239_v44  ;;  %v294_v49 = vpop.f32.mrb[2].mxu1 }
 0x1dc   :  { %v4839_v51 = vadd.f32 %v294_v49, %v235_v43  ;;  %v296_v52 = vpop.f32.mrb[3].mxu1  ;;  %v395_v53 = vadd.f32 %v389_v36, %v4835_v46 }
 0x1dd   :  { %v4846_v6 = vadd.f32 %v296_v52, %v239_v44 }
 0x1de   :  { %v429_v54 = vadd.f32 %v425_v50, %v4839_v51  ;;  %v3674_v55 = vmul.f32 -1.442695, %v395_v53 }
 0x1df   :  { %v430_v22 = vadd.f32 %v426_v41, %v4846_v6 }
 0x1e0   :  { %v3675_v56 = vmul.f32 -1.442695, %v429_v54  ;;  %4309 = vpow2.f32 %v3674_v55 }
 0x1e1   :  { %v3676_v23 = vmul.f32 -1.442695, %v430_v22 }
 0x1e2   :  { %4311 = vpow2.f32 %v3675_v56 }
 0x1ea   :  { %v4310_v57 = vpop.eup %4309 }
 0x1eb   :  { %v399_v58 = vadd.f32 1.0, %v4310_v57 }
 0x1ec   :  { %v4312_v59 = vpop.eup %4311 }
 0x1ed   :  { %v437_v60 = vadd.f32 1.0, %v4312_v59  ;;  %4313 = vrcp.f32 %v399_v58 }
 0x1ef   :  { %4315 = vrcp.f32 %v437_v60 }
 0x1f7   :  { %v4314_v62 = vpop.eup %4313 }
 0x1f8   :  { %v406_v63 = vmul.f32 %v4314_v62, %v404_v61 }
 0x1f9   :  { %v4316_v0 = vpop.eup %4315 }
 0x1fa   :  { %408 = vrot.lane.b32.xlu1 %v406_v63, %s4583_s1  ;;  %v446_v2 = vmul.f32 %v4316_v0, %v444_v1 }
 0x1fe   :  { %448 = vrot.lane.b32.xlu1 %v446_v2, %s4583_s1 }
 0x26c   :  { %v409_v4 = vpop.permute.xlu1 %408 }
 0x26d   :  { %v411_v5 = vadd.f32 %v409_v4, %v4835_v46 }
 0x26f   :  { %4317 = vtanh.f32 %v411_v5 }
 0x270   :  { %v449_v16 = vpop.permute.xlu1 %448 }
 0x271   :  { %v451_v17 = vadd.f32 %v449_v16, %v4846_v6 }
 0x273   :  { %4319 = vtanh.f32 %v451_v17 }
 0x274   :  { %4321 = vpow2.f32 %v3676_v23 }
 0x279   :  { %v4318_v18 = vpop.eup %4317 }
 0x27a   :  { %v413_v19 = vsub.f32 0.0, %v4318_v18 }
 0x27c   :  { %415 = vrot.lane.b32.xlu0 %v413_v19, %s4584_s6 }
 0x27d   :  { %v4320_v20 = vpop.eup %4319 }
 0x27e   :  { %v453_v21 = vsub.f32 0.0, %v4320_v20  ;;  %v4322_v24 = vpop.eup %4321 }
 0x27f   :  { %v438_v25 = vadd.f32 1.0, %v4322_v24 }
 0x280   :  { %455 = vrot.lane.b32.xlu1 %v453_v21, %s4584_s6 }
 0x281   :  { %4323 = vrcp.f32 %v438_v25 }
 0x28b   :  { %v4324_v28 = vpop.eup %4323 }
 0x2ee   :  { %v416_v26 = vpop.permute.xlu0 %415 }
 0x2ef   :  { %v418_v27 = vmul.f32 %v4314_v62, %v416_v26 }
 0x2f1   :  { %420 = vrot.lane.b32.xlu0 %v418_v27, %s4585_s2 }
 0x2f2   :  { %v456_v29 = vpop.permute.xlu1 %455 }
 0x2f3   :  { %v458_v30 = vmul.f32 %v4324_v28, %v456_v29 }
 0x2f5   :  { %460 = vrot.lane.b32.xlu1 %v458_v30, %s4585_s2 }
 0x363   :  { %v421_v31 = vpop.permute.xlu0 %420 }
 0x364   :  { %v423_v32 = vadd.f32 %v4318_v18, %v421_v31 }
 0x366   :  { %465 = vrot.lane.b32.xlu0 %v423_v32, %s4583_s1 }
 0x367   :  { %v461_v35 = vpop.permute.xlu1 %460 }
 0x368   :  { %v463_v36 = vadd.f32 %v4320_v20, %v461_v35 }
 0x36a   :  { %476 = vst.msk [vmem:[#allocation2 + $0x8] sm:$0xc0] %vm475_vm4, %v463_v36  ;;  %v469_v37 = vrot.slane %v463_v36, 6 }
 0x3d8   :  { %v466_v38 = vpop.permute.xlu0 %465 }
 0x3d9   :  { %v4857_v39 = vsel %vm471_vm5, %v466_v38, %v469_v37  ;;  %474 = vst.msk [vmem:[#allocation2] sm:$0x3] %vm473_vm6, %v466_v38 }
 0x3da   :  { %v477_v40 = vpack.c.bf16 %v4857_v39, %v4857_v39 }
 0x3dc   :  { %3677 = vmatmul.mubr.msk.bf16.vlgmr.msra.gmra.mrb[4].mxu1 %vm350_vm7, %v477_v40 }
 0x3dd   :  { %758 = vmatpush1.bf16.msra.mxu1 %v4746_v8  ;;  %789 = vmatprep.mubr.bf16.mxu1 %v4582_v9 }
 0x3de   :  { %759 = vmatprep.subr.bf16.mxu1 %v4752_v10 }
 0x3e1   :  { %760 = vmatpush1.bf16.msra.mxu1 %v4761_v11 }
 0x3e2   :  { %761 = vmatprep.subr.bf16.mxu1 %v4766_v12 }
 0x3e5   :  { %762 = vmatpush1.bf16.msra.mxu1 %v4773_v13 }
 0x3e6   :  { %763 = vmatprep.subr.bf16.mxu1 %v4778_v14 }
 0x3e9   :  { %764 = vmatpush1.bf16.msra.mxu1 %v4785_v15 }
 0x3ea   :  { %1023 = vmatprep.subr.bf16.mxu1 %v4741_v7 }
 0x4af   :  { %v515_v41 = vpop.f32.mrb[4].mxu1 }
 0x4b0   :  { %v516_v42 = vadd.f32 %v515_v41, %v4818_v33  ;;  %v517_v43 = vpop.f32.mrb[5].mxu1 }
 0x4b1   :  { %v519_v44 = vpop.f32.mrb[6].mxu1  ;;  %v518_v47 = vadd.f32 %v517_v43, %v4820_v34 }
 0x4b2   :  { %v523_v45 = vrot.slane %v516_v42, 6  ;;  %v520_v49 = vpop.f32.mrb[7].mxu1  ;;  %v560_v53 = vrot.slane %v516_v42, 4 }
 0x4b3   :  { %v561_v50 = vrot.slane %v518_v47, 4 }
 0x4b4   :  { %532 = vrot.lane.b32.xlu1 %v523_v45, %s4583_s1  ;;  %v525_v52 = vadd.f32 %v523_v45, %v4835_v46  ;;  %v564_v55 = vadd.f32 %v560_v53, %v4839_v51 }
 0x4b5   :  { %v565_v24 = vadd.f32 %v561_v50, %v4846_v6 }
 0x4b6   :  { %v3678_v54 = vmul.f32 -1.442695, %v525_v52  ;;  %v3679_v56 = vmul.f32 -1.442695, %v564_v55 }
 0x4b7   :  { %v3680_v25 = vmul.f32 -1.442695, %v565_v24 }
 0x4b8   :  { %578 = vrot.lane.b32.xlu1 %v561_v50, %s4583_s1  ;;  %4325 = vpow2.f32 %v3678_v54 }
 0x4b9   :  { %4327 = vpow2.f32 %v3679_v56 }
 0x4c2   :  { %v4326_v57 = vpop.eup %4325 }
 0x4c3   :  { %v529_v58 = vadd.f32 1.0, %v4326_v57  ;;  %v4328_v59 = vpop.eup %4327 }
 0x4c4   :  { %v572_v60 = vadd.f32 1.0, %v4328_v59 }
 0x4c5   :  { %4329 = vrcp.f32 %v529_v58 }
 0x4c6   :  { %4331 = vrcp.f32 %v572_v60 }
 0x4cf   :  { %v4330_v61 = vpop.eup %4329 }
 0x4d0   :  { %v4332_v0 = vpop.eup %4331 }
 0x526   :  { %v533_v62 = vpop.permute.xlu1 %532 }
 0x527   :  { %v535_v63 = vmul.f32 %v4330_v61, %v533_v62 }
 0x529   :  { %537 = vrot.lane.b32.xlu0 %v535_v63, %s4583_s1 }
 0x52a   :  { %v579_v1 = vpop.permute.xlu1 %578 }
 0x52b   :  { %v581_v2 = vmul.f32 %v4332_v0, %v579_v1 }
 0x52d   :  { %583 = vrot.lane.b32.xlu1 %v581_v2, %s4583_s1 }
 0x59b   :  { %v538_v4 = vpop.permute.xlu0 %537 }
 0x59c   :  { %v540_v5 = vadd.f32 %v538_v4, %v4835_v46 }
 0x59e   :  { %4333 = vtanh.f32 %v540_v5 }
 0x59f   :  { %v584_v16 = vpop.permute.xlu1 %583 }
 0x5a0   :  { %v586_v17 = vadd.f32 %v584_v16, %v4846_v6 }
 0x5a2   :  { %4335 = vtanh.f32 %v586_v17 }
 0x5a3   :  { %4337 = vpow2.f32 %v3680_v25 }
 0x5a8   :  { %v4334_v18 = vpop.eup %4333 }
 0x5a9   :  { %v543_v19 = vrot.slane %v4334_v18, 2 }
 0x5ab   :  { %544 = vrot.lane.b32.xlu0 %v543_v19, %s4583_s1 }
 0x5ac   :  { %v4336_v20 = vpop.eup %4335 }
 0x5ad   :  { %v589_v21 = vrot.slane %v4336_v20, 4  ;;  %v4338_v26 = vpop.eup %4337 }
 0x5ae   :  { %v573_v27 = vadd.f32 1.0, %v4338_v26 }
 0x5af   :  { %v591_v22 = vsub.f32 %v4857_v39, %v589_v21 }
 0x5b0   :  { %4339 = vrcp.f32 %v573_v27 }
 0x5b1   :  { %v593_v23 = vrot.slane %v591_v22, 4 }
 0x5b3   :  { %594 = vrot.lane.b32.xlu1 %v593_v23, %s4584_s6 }
 0x5ba   :  { %v4340_v31 = vpop.eup %4339 }
 0x61d   :  { %v545_v28 = vpop.permute.xlu0 %544 }
 0x61e   :  { %v547_v29 = vsub.f32 %v4857_v39, %v545_v28 }
 0x620   :  { %v549_v30 = vrot.slane %v547_v29, 6 }
 0x622   :  { %550 = vrot.lane.b32.xlu0 %v549_v30, %s4585_s2 }
 0x625   :  { %v595_v32 = vpop.permute.xlu1 %594 }
 0x626   :  { %v597_v35 = vmul.f32 %v4340_v31, %v595_v32 }
 0x628   :  { %599 = vrot.lane.b32.xlu1 %v597_v35, %s4585_s2 }
 0x694   :  { %v551_v36 = vpop.permute.xlu0 %550 }
 0x695   :  { %v553_v37 = vmul.f32 %v4330_v61, %v551_v36 }
 0x697   :  { %555 = vrot.lane.b32.xlu0 %v553_v37, %s4585_s2 }
 0x69a   :  { %v600_v38 = vpop.permute.xlu1 %599 }
 0x69b   :  { %v602_v40 = vadd.f32 %v4336_v20, %v600_v38 }
 0x69d   :  { %614 = vst.msk [vmem:[#allocation2 + $0x8] sm:$0x30] %vm613_vm8, %v602_v40  ;;  %v608_v39 = vrot.slane %v602_v40, 2 }
 0x709   :  { %v556_v41 = vpop.permute.xlu0 %555 }
 0x70a   :  { %v558_v42 = vadd.f32 %v4334_v18, %v556_v41 }
 0x70c   :  { %604 = vrot.lane.b32.xlu0 %v558_v42, %s4583_s1 }
 0x77e   :  { %v605_v43 = vpop.permute.xlu0 %604 }
 0x77f   :  { %v4893_v44 = vsel %vm471_vm5, %v605_v43, %v608_v39  ;;  %612 = vst.msk [vmem:[#allocation2] sm:$0xc] %vm611_vm9, %v605_v43 }
 0x780   :  { %v615_v45 = vpack.c.bf16 %v4893_v44, %v4893_v44 }
 0x782   :  { %v617_v47 = vrot.slane %v615_v45, 1 }
 0x784   :  { %3681 = vmatmul.mubr.msk.bf16.vlgmr.msra.gmra.mrb[8].mxu0 %vm350_vm7, %v617_v47 }
 0x785   :  { %894 = vmatpush1.bf16.msra.mxu0 %v4746_v8  ;;  %925 = vmatprep.mubr.bf16.mxu0 %v4582_v9 }
 0x786   :  { %895 = vmatprep.subr.bf16.mxu0 %v4752_v10 }
 0x789   :  { %896 = vmatpush1.bf16.msra.mxu0 %v4761_v11 }
 0x78a   :  { %897 = vmatprep.subr.bf16.mxu0 %v4766_v12 }
 0x78d   :  { %898 = vmatpush1.bf16.msra.mxu0 %v4773_v13 }
 0x78e   :  { %899 = vmatprep.subr.bf16.mxu0 %v4778_v14 }
 0x791   :  { %900 = vmatpush1.bf16.msra.mxu0 %v4785_v15 }
 0x792   :  { %1161 = vmatprep.subr.bf16.mxu0 %v4741_v7 }
 0x857   :  { %v655_v49 = vpop.f32.mrb[8].mxu0 }
 0x858   :  { %v656_v50 = vadd.f32 %v655_v49, %v4818_v33  ;;  %v657_v52 = vpop.f32.mrb[9].mxu0 }
 0x859   :  { %v659_v53 = vpop.f32.mrb[10].mxu0  ;;  %v658_v55 = vadd.f32 %v657_v52, %v4820_v34 }
 0x85a   :  { %v663_v54 = vrot.slane %v656_v50, 4  ;;  %v660_v56 = vpop.f32.mrb[11].mxu0  ;;  %v700_v59 = vrot.slane %v656_v50, 6 }
 0x85b   :  { %v701_v57 = vrot.slane %v658_v55, 6 }
 0x85c   :  { %672 = vrot.lane.b32.xlu1 %v663_v54, %s4583_s1  ;;  %v665_v58 = vadd.f32 %v663_v54, %v4835_v46  ;;  %v704_v61 = vadd.f32 %v700_v59, %v4839_v51 }
 0x85d   :  { %v705_v28 = vadd.f32 %v701_v57, %v4846_v6 }
 0x85e   :  { %v3682_v60 = vmul.f32 -1.442695, %v665_v58  ;;  %v3683_v62 = vmul.f32 -1.442695, %v704_v61 }
 0x85f   :  { %v3684_v29 = vmul.f32 -1.442695, %v705_v28 }
 0x860   :  { %718 = vrot.lane.b32.xlu1 %v701_v57, %s4583_s1  ;;  %4341 = vpow2.f32 %v3682_v60 }
 0x861   :  { %4343 = vpow2.f32 %v3683_v62 }
 0x86a   :  { %v4342_v63 = vpop.eup %4341 }
 0x86b   :  { %v669_v0 = vadd.f32 1.0, %v4342_v63  ;;  %v4344_v1 = vpop.eup %4343 }
 0x86c   :  { %v712_v2 = vadd.f32 1.0, %v4344_v1 }
 0x86d   :  { %4345 = vrcp.f32 %v669_v0 }
 0x86e   :  { %4347 = vrcp.f32 %v712_v2 }
 0x877   :  { %v4346_v4 = vpop.eup %4345 }
 0x878   :  { %v4348_v17 = vpop.eup %4347 }
 0x8ce   :  { %v673_v5 = vpop.permute.xlu1 %672 }
 0x8cf   :  { %v675_v16 = vmul.f32 %v4346_v4, %v673_v5 }
 0x8d1   :  { %677 = vrot.lane.b32.xlu0 %v675_v16, %s4583_s1 }
 0x8d2   :  { %v719_v18 = vpop.permute.xlu1 %718 }
 0x8d3   :  { %v721_v19 = vmul.f32 %v4348_v17, %v719_v18 }
 0x8d5   :  { %723 = vrot.lane.b32.xlu1 %v721_v19, %s4583_s1 }
 0x943   :  { %v678_v20 = vpop.permute.xlu0 %677 }
 0x944   :  { %v680_v21 = vadd.f32 %v678_v20, %v4835_v46 }
 0x946   :  { %4349 = vtanh.f32 %v680_v21 }
 0x947   :  { %v724_v22 = vpop.permute.xlu1 %723 }
 0x948   :  { %v726_v23 = vadd.f32 %v724_v22, %v4846_v6 }
 0x94a   :  { %4351 = vtanh.f32 %v726_v23 }
 0x94b   :  { %4353 = vpow2.f32 %v3684_v29 }
 0x950   :  { %v4350_v24 = vpop.eup %4349 }
 0x951   :  { %v683_v25 = vrot.slane %v4350_v24, 2 }
 0x953   :  { %684 = vrot.lane.b32.xlu0 %v683_v25, %s4583_s1 }
 0x954   :  { %v4352_v26 = vpop.eup %4351 }
 0x955   :  { %v728_v27 = vsub.f32 %v4893_v44, %v4352_v26  ;;  %v4354_v30 = vpop.eup %4353 }
 0x956   :  { %v713_v31 = vadd.f32 1.0, %v4354_v30 }
 0x957   :  { %730 = vrot.lane.b32.xlu1 %v728_v27, %s4584_s6 }
 0x958   :  { %4355 = vrcp.f32 %v713_v31 }
 0x962   :  { %v4356_v37 = vpop.eup %4355 }
 0x9c5   :  { %v685_v32 = vpop.permute.xlu0 %684 }
 0x9c6   :  { %v687_v35 = vsub.f32 %v4893_v44, %v685_v32 }
 0x9c8   :  { %v689_v36 = vrot.slane %v687_v35, 6 }
 0x9c9   :  { %v731_v38 = vpop.permute.xlu1 %730 }
 0x9ca   :  { %v733_v40 = vmul.f32 %v4356_v37, %v731_v38  ;;  %690 = vrot.lane.b32.xlu0 %v689_v36, %s4585_s2 }
 0x9cc   :  { %735 = vrot.lane.b32.xlu1 %v733_v40, %s4585_s2 }
 0xa3c   :  { %v691_v41 = vpop.permute.xlu0 %690 }
 0xa3d   :  { %v693_v42 = vmul.f32 %v4346_v4, %v691_v41 }
 0xa3e   :  { %v736_v39 = vpop.permute.xlu1 %735 }
 0xa3f   :  { %v738_v43 = vadd.f32 %v4352_v26, %v736_v39  ;;  %695 = vrot.lane.b32.xlu0 %v693_v42, %s4585_s2 }
 0xa41   :  { %750 = vst.msk [vmem:[#allocation2 + $0x8] sm:$0xc] %vm749_vm10, %v738_v43  ;;  %v744_v44 = vrot.slane %v738_v43, 6 }
 0xab1   :  { %v696_v45 = vpop.permute.xlu0 %695 }
 0xab2   :  { %v698_v47 = vadd.f32 %v4350_v24, %v696_v45 }
 0xab4   :  { %740 = vrot.lane.b32.xlu0 %v698_v47, %s4583_s1 }
 0xb26   :  { %v741_v49 = vpop.permute.xlu0 %740 }
 0xb27   :  { %v4929_v50 = vsel %vm471_vm5, %v741_v49, %v744_v44  ;;  %748 = vst.msk [vmem:[#allocation2] sm:$0x30] %vm747_vm11, %v741_v49 }
 0xb28   :  { %v751_v52 = vpack.c.bf16 %v4929_v50, %v4929_v50 }
 0xb2a   :  { %v753_v53 = vrot.slane %v751_v52, 2 }
 0xb2c   :  { %3685 = vmatmul.mubr.msk.bf16.vlgmr.msra.gmra.mrb[8].mxu1 %vm350_vm7, %v753_v53 }
 0xb2d   :  { %1024 = vmatpush1.bf16.msra.mxu1 %v4746_v8  ;;  %1055 = vmatprep.mubr.bf16.mxu1 %v4582_v9 }
 0xb2e   :  { %1025 = vmatprep.subr.bf16.mxu1 %v4752_v10 }
 0xb31   :  { %1026 = vmatpush1.bf16.msra.mxu1 %v4761_v11 }
 0xb32   :  { %1027 = vmatprep.subr.bf16.mxu1 %v4766_v12 }
 0xb35   :  { %1028 = vmatpush1.bf16.msra.mxu1 %v4773_v13 }
 0xb36   :  { %1029 = vmatprep.subr.bf16.mxu1 %v4778_v14 }
 0xb39   :  { %1030 = vmatpush1.bf16.msra.mxu1 %v4785_v15 }
 0xb3a   :  { %1295 = vmatprep.subr.bf16.mxu1 %v4741_v7 }
 0xbff   :  { %v791_v54 = vpop.f32.mrb[8].mxu1 }
 0xc00   :  { %v792_v55 = vadd.f32 %v791_v54, %v4818_v33  ;;  %v793_v56 = vpop.f32.mrb[9].mxu1 }
 0xc01   :  { %v795_v57 = vpop.f32.mrb[10].mxu1  ;;  %v794_v60 = vadd.f32 %v793_v56, %v4820_v34 }
 0xc02   :  { %v799_v58 = vrot.slane %v792_v55, 2  ;;  %v796_v59 = vpop.f32.mrb[11].mxu1  ;;  %v835_v63 = vadd.f32 %v792_v55, %v4839_v51 }
 0xc03   :  { %v836_v31 = vadd.f32 %v794_v60, %v4846_v6 }
 0xc04   :  { %808 = vrot.lane.b32.xlu1 %v799_v58, %s4583_s1  ;;  %v801_v61 = vadd.f32 %v799_v58, %v4835_v46  ;;  %v3687_v7 = vmul.f32 -1.442695, %v835_v63 }
 0xc05   :  { %v3688_v32 = vmul.f32 -1.442695, %v836_v31 }
 0xc06   :  { %v3686_v62 = vmul.f32 -1.442695, %v801_v61 }
 0xc08   :  { %850 = vrot.lane.b32.xlu1 %v794_v60, %s4583_s1  ;;  %4357 = vpow2.f32 %v3686_v62 }
 0xc09   :  { %4359 = vpow2.f32 %v3687_v7 }
 0xc12   :  { %v4358_v0 = vpop.eup %4357 }
 0xc13   :  { %v805_v1 = vadd.f32 1.0, %v4358_v0  ;;  %v4360_v2 = vpop.eup %4359 }
 0xc14   :  { %v843_v4 = vadd.f32 1.0, %v4360_v2 }
 0xc15   :  { %4361 = vrcp.f32 %v805_v1 }
 0xc16   :  { %4363 = vrcp.f32 %v843_v4 }
 0xc1f   :  { %v4362_v5 = vpop.eup %4361 }
 0xc20   :  { %v4364_v18 = vpop.eup %4363 }
 0xc76   :  { %v809_v16 = vpop.permute.xlu1 %808 }
 0xc77   :  { %v811_v17 = vmul.f32 %v4362_v5, %v809_v16 }
 0xc79   :  { %813 = vrot.lane.b32.xlu0 %v811_v17, %s4583_s1 }
 0xc7a   :  { %v851_v19 = vpop.permute.xlu1 %850 }
 0xc7b   :  { %v853_v20 = vmul.f32 %v4364_v18, %v851_v19 }
 0xc7d   :  { %855 = vrot.lane.b32.xlu1 %v853_v20, %s4583_s1 }
 0xceb   :  { %v814_v21 = vpop.permute.xlu0 %813 }
 0xcec   :  { %v816_v22 = vadd.f32 %v814_v21, %v4835_v46 }
 0xcee   :  { %4365 = vtanh.f32 %v816_v22 }
 0xcef   :  { %v856_v23 = vpop.permute.xlu1 %855 }
 0xcf0   :  { %v858_v24 = vadd.f32 %v856_v23, %v4846_v6 }
 0xcf2   :  { %4367 = vtanh.f32 %v858_v24 }
 0xcf3   :  { %4369 = vpow2.f32 %v3688_v32 }
 0xcf8   :  { %v4366_v25 = vpop.eup %4365 }
 0xcf9   :  { %v819_v26 = vrot.slane %v4366_v25, 2 }
 0xcfb   :  { %820 = vrot.lane.b32.xlu0 %v819_v26, %s4583_s1 }
 0xcfc   :  { %v4368_v27 = vpop.eup %4367 }
 0xcfd   :  { %v861_v28 = vrot.slane %v4368_v27, 4  ;;  %v4370_v35 = vpop.eup %4369 }
 0xcfe   :  { %v844_v36 = vadd.f32 1.0, %v4370_v35 }
 0xcff   :  { %v863_v29 = vsub.f32 %v4929_v50, %v861_v28 }
 0xd00   :  { %4371 = vrcp.f32 %v844_v36 }
 0xd01   :  { %v865_v30 = vrot.slane %v863_v29, 4 }
 0xd03   :  { %866 = vrot.lane.b32.xlu1 %v865_v30, %s4584_s6 }
 0xd0a   :  { %v4372_v41 = vpop.eup %4371 }
 0xd6d   :  { %v821_v37 = vpop.permute.xlu0 %820 }
 0xd6e   :  { %v823_v38 = vsub.f32 %v4929_v50, %v821_v37 }
 0xd70   :  { %v825_v40 = vrot.slane %v823_v38, 6 }
 0xd72   :  { %826 = vrot.lane.b32.xlu0 %v825_v40, %s4585_s2 }
 0xd75   :  { %v867_v42 = vpop.permute.xlu1 %866 }
 0xd76   :  { %v869_v39 = vmul.f32 %v4372_v41, %v867_v42 }
 0xd78   :  { %871 = vrot.lane.b32.xlu1 %v869_v39, %s4585_s2 }
 0xde4   :  { %v827_v43 = vpop.permute.xlu0 %826 }
 0xde5   :  { %v829_v45 = vmul.f32 %v4362_v5, %v827_v43 }
 0xde7   :  { %831 = vrot.lane.b32.xlu0 %v829_v45, %s4585_s2 }
 0xdea   :  { %v872_v6 = vpop.permute.xlu1 %871 }
 0xdeb   :  { %v874_v47 = vadd.f32 %v4368_v27, %v872_v6 }
 0xded   :  { %886 = vst.msk [vmem:[#allocation2 + $0x8] sm:$0x3] %vm885_vm12, %v874_v47  ;;  %v880_v50 = vrot.slane %v874_v47, 2 }
 0xe59   :  { %v832_v44 = vpop.permute.xlu0 %831 }
 0xe5a   :  { %v834_v49 = vadd.f32 %v4366_v25, %v832_v44  ;;  %v4511_v44 = vld [vmem:[%s5786_s27] ss:$8 sps:$4 sm:$0xff]  }
 0xe5c   :  { %876 = vrot.lane.b32.xlu0 %v834_v49, %s4583_s1  ;;  %v4512_v49 = vld [vmem:[%s5786_s27 + $0x14] ss:$8 sps:$4 sm:$0xff]  }
 0xece   :  { %v877_v52 = vpop.permute.xlu0 %876 }
 0xecf   :  { %v4965_v53 = vsel %vm471_vm5, %v877_v52, %v880_v50  ;;  %884 = vst.msk [vmem:[#allocation2] sm:$0xc0] %vm883_vm13, %v877_v52  ;;  %v4513_v50 = vld [vmem:[%s5786_s27 + $0x10] ss:$8 sps:$4 sm:$0xff]   ;;  %v4514_v52 = vld [vmem:[%s5786_s27 + $0x24] ss:$8 sps:$4 sm:$0xff]  }
 0xed0   :  { %v887_v54 = vpack.c.bf16 %v4965_v53, %v4965_v53 }
 0xed2   :  { %v889_v55 = vrot.slane %v887_v54, 3  ;;  %v4516_v54 = vld [vmem:[%s5786_s27 + $0x34] ss:$8 sps:$4 sm:$0xff]  }
 0xed4   :  { %3689 = vmatmul.mubr.msk.bf16.vlgmr.msra.gmra.mrb[12].mxu0 %vm350_vm7, %v889_v55  ;;  %v4517_v55 = vld [vmem:[%s5786_s27 + $0x30] ss:$8 sps:$4 sm:$0xff]  }
 0xed5   :  { %1162 = vmatpush1.bf16.msra.mxu0 %v4746_v8  ;;  %1193 = vmatprep.mubr.bf16.mxu0 %v4582_v9 }
 0xed6   :  { %1163 = vmatprep.subr.bf16.mxu0 %v4752_v10 }
 0xed9   :  { %1164 = vmatpush1.bf16.msra.mxu0 %v4761_v11 }
 0xeda   :  { %1165 = vmatprep.subr.bf16.mxu0 %v4766_v12 }
 0xedd   :  { %1166 = vmatpush1.bf16.msra.mxu0 %v4773_v13 }
 0xede   :  { %1167 = vmatprep.subr.bf16.mxu0 %v4778_v14 }
 0xee1   :  { %1168 = vmatpush1.bf16.msra.mxu0 %v4785_v15 }
 0xee2   :  { %3915 = vmatprep.subr.bf16.mxu0 %v4580_v3 }
 0xfa7   :  { %v927_v56 = vpop.f32.mrb[12].mxu0 }
 0xfa8   :  { %v928_v57 = vadd.f32 %v927_v56, %v4818_v33  ;;  %v929_v8 = vpop.f32.mrb[13].mxu0 }
 0xfa9   :  { %v930_v58 = vadd.f32 %v929_v8, %v4820_v34  ;;  %v931_v59 = vpop.f32.mrb[14].mxu0 }
 0xfaa   :  { %v932_v10 = vpop.f32.mrb[15].mxu0  ;;  %942 = vrot.lane.b32.xlu1 %v928_v57, %s4583_s1  ;;  %v934_v12 = vadd.f32 %v928_v57, %v4839_v51  ;;  %v970_v13 = vrot.slane %v928_v57, 2 }
 0xfab   :  { %v971_v11 = vrot.slane %v930_v58, 2 }
 0xfac   :  { %v3690_v14 = vmul.f32 -1.442695, %v934_v12  ;;  %v974_v15 = vadd.f32 %v970_v13, %v4835_v46 }
 0xfad   :  { %v975_v25 = vadd.f32 %v971_v11, %v4837_v48 }
 0xfae   :  { %988 = vrot.lane.b32.xlu1 %v971_v11, %s4583_s1  ;;  %4373 = vpow2.f32 %v3690_v14  ;;  %v3691_v60 = vmul.f32 -1.442695, %v974_v15 }
 0xfaf   :  { %v3692_v26 = vmul.f32 -1.442695, %v975_v25 }
 0xfb0   :  { %4375 = vpow2.f32 %v3691_v60 }
 0xfb8   :  { %v4374_v61 = vpop.eup %4373 }
 0xfb9   :  { %v938_v62 = vadd.f32 1.0, %v4374_v61 }
 0xfba   :  { %v4376_v63 = vpop.eup %4375 }
 0xfbb   :  { %4377 = vrcp.f32 %v938_v62  ;;  %v982_v7 = vadd.f32 1.0, %v4376_v63 }
 0xfbd   :  { %4379 = vrcp.f32 %v982_v7 }
 0xfc5   :  { %v4378_v0 = vpop.eup %4377 }
 0xfc7   :  { %v4380_v4 = vpop.eup %4379 }
0x101c   :  { %v943_v1 = vpop.permute.xlu1 %942 }
0x101d   :  { %v945_v2 = vmul.f32 %v4378_v0, %v943_v1 }
0x101f   :  { %947 = vrot.lane.b32.xlu0 %v945_v2, %s4583_s1 }
0x1020   :  { %v989_v5 = vpop.permute.xlu1 %988 }
0x1021   :  { %v991_v16 = vmul.f32 %v4380_v4, %v989_v5 }
0x1023   :  { %993 = vrot.lane.b32.xlu1 %v991_v16, %s4583_s1 }
0x1091   :  { %v948_v17 = vpop.permute.xlu0 %947 }
0x1092   :  { %v950_v18 = vadd.f32 %v948_v17, %v4839_v51 }
0x1094   :  { %4381 = vtanh.f32 %v950_v18 }
0x1095   :  { %v994_v19 = vpop.permute.xlu1 %993 }
0x1096   :  { %v996_v20 = vadd.f32 %v994_v19, %v4837_v48 }
0x1098   :  { %4383 = vtanh.f32 %v996_v20 }
0x1099   :  { %4385 = vpow2.f32 %v3692_v26 }
0x109e   :  { %v4382_v21 = vpop.eup %4381 }
0x109f   :  { %v953_v22 = vrot.slane %v4382_v21, 2 }
0x10a1   :  { %954 = vrot.lane.b32.xlu0 %v953_v22, %s4583_s1 }
0x10a2   :  { %v4384_v23 = vpop.eup %4383 }
0x10a3   :  { %v998_v24 = vsub.f32 %v4965_v53, %v4384_v23  ;;  %v4386_v27 = vpop.eup %4385 }
0x10a4   :  { %v983_v28 = vadd.f32 1.0, %v4386_v27 }
0x10a5   :  { %1000 = vrot.lane.b32.xlu1 %v998_v24, %s4584_s6 }
0x10a6   :  { %4387 = vrcp.f32 %v983_v28 }
0x10b0   :  { %v4388_v32 = vpop.eup %4387 }
0x1113   :  { %v955_v29 = vpop.permute.xlu0 %954 }
0x1114   :  { %v957_v30 = vsub.f32 %v4965_v53, %v955_v29  ;;  %v4515_v53 = vld [vmem:[%s5786_s27 + $0x20] ss:$8 sps:$4 sm:$0xff]   ;;  %s2200_s27 = ssub.f32 1.0, %s2197_s23 }
0x1116   :  { %v959_v31 = vrot.slane %v957_v30, 6 }
0x1117   :  { %v1001_v35 = vpop.permute.xlu1 %1000 }
0x1118   :  { %v1003_v36 = vmul.f32 %v4388_v32, %v1001_v35  ;;  %960 = vrot.lane.b32.xlu0 %v959_v31, %s4585_s2 }
0x111a   :  { %1005 = vrot.lane.b32.xlu1 %v1003_v36, %s4585_s2 }
0x118a   :  { %v961_v37 = vpop.permute.xlu0 %960 }
0x118b   :  { %v963_v38 = vmul.f32 %v4378_v0, %v961_v37 }
0x118c   :  { %v1006_v40 = vpop.permute.xlu1 %1005 }
0x118d   :  { %v1008_v41 = vadd.f32 %v4384_v23, %v1006_v40  ;;  %965 = vrot.lane.b32.xlu0 %v963_v38, %s4585_s2 }
0x118f   :  { %1018 = vst.msk [vmem:[#allocation2] sm:$0xc0] %vm475_vm4, %v1008_v41  ;;  %v1014_v43 = vrot.slane %v1008_v41, 6  ;;  %vm1951_vm4 = vcmask 654336  }
0x11ff   :  { %v966_v42 = vpop.permute.xlu0 %965 }
0x1200   :  { %v968_v39 = vadd.f32 %v4382_v21, %v966_v42 }
0x1202   :  { %1010 = vrot.lane.b32.xlu0 %v968_v39, %s4583_s1 }
0x1274   :  { %v1011_v45 = vpop.permute.xlu0 %1010 }
0x1275   :  { %v5001_v6 = vsel %vm471_vm5, %v1011_v45, %v1014_v43  ;;  %1017 = vst.msk [vmem:[#allocation2 + $0x8] sm:$0x3] %vm473_vm6, %v1011_v45  ;;  %vm2099_vm6 = vcmask 785408  }
0x1276   :  { %v1019_v47 = vpack.c.bf16 %v5001_v6, %v5001_v6 }
0x1278   :  { %3693 = vmatmul.mubr.msk.bf16.vlgmr.msra.gmra.mrb[12].mxu1 %vm350_vm7, %v1019_v47 }
0x1279   :  { %1296 = vmatpush1.bf16.msra.mxu1 %v4511_v44  ;;  %1327 = vmatprep.mubr.bf16.mxu1 %v4582_v9 }
0x127a   :  { %1297 = vmatprep.subr.bf16.mxu1 %v4512_v49 }
0x127d   :  { %1298 = vmatpush1.bf16.msra.mxu1 %v4513_v50 }
0x127e   :  { %1299 = vmatprep.subr.bf16.mxu1 %v4514_v52 }
0x1281   :  { %1300 = vmatpush1.bf16.msra.mxu1 %v4515_v53 }
0x1282   :  { %1301 = vmatprep.subr.bf16.mxu1 %v4516_v54 }
0x1285   :  { %1302 = vmatpush1.bf16.msra.mxu1 %v4517_v55 }
0x1286   :  { %3927 = vmatprep.subr.bf16.mxu1 %v4580_v3 }
0x134b   :  { %v1057_v56 = vpop.f32.mrb[12].mxu1 }
0x134c   :  { %v1058_v57 = vadd.f32 %v1057_v56, %v4818_v33  ;;  %v1059_v8 = vpop.f32.mrb[13].mxu1 }
0x134d   :  { %v1061_v58 = vpop.f32.mrb[14].mxu1  ;;  %v1060_v10 = vadd.f32 %v1059_v8, %v4820_v34 }
0x134e   :  { %v1065_v59 = vrot.slane %v1058_v57, 6  ;;  %v1062_v11 = vpop.f32.mrb[15].mxu1  ;;  %v1102_v14 = vrot.slane %v1058_v57, 4 }
0x134f   :  { %v1103_v12 = vrot.slane %v1060_v10, 4 }
0x1350   :  { %1074 = vrot.lane.b32.xlu1 %v1065_v59, %s4583_s1  ;;  %v1067_v13 = vadd.f32 %v1065_v59, %v4839_v51  ;;  %v1106_v60 = vadd.f32 %v1102_v14, %v4835_v46 }
0x1351   :  { %v1107_v28 = vadd.f32 %v1103_v12, %v4837_v48 }
0x1352   :  { %v3694_v15 = vmul.f32 -1.442695, %v1067_v13  ;;  %v3695_v61 = vmul.f32 -1.442695, %v1106_v60 }
0x1353   :  { %v3696_v29 = vmul.f32 -1.442695, %v1107_v28 }
0x1354   :  { %1120 = vrot.lane.b32.xlu1 %v1103_v12, %s4583_s1  ;;  %4389 = vpow2.f32 %v3694_v15 }
0x1355   :  { %4391 = vpow2.f32 %v3695_v61 }
0x135e   :  { %v4390_v62 = vpop.eup %4389 }
0x135f   :  { %v1071_v63 = vadd.f32 1.0, %v4390_v62  ;;  %v4392_v7 = vpop.eup %4391 }
0x1360   :  { %v1114_v0 = vadd.f32 1.0, %v4392_v7 }
0x1361   :  { %4393 = vrcp.f32 %v1071_v63 }
0x1362   :  { %4395 = vrcp.f32 %v1114_v0 }
0x136b   :  { %v4394_v1 = vpop.eup %4393 }
0x136c   :  { %v4396_v5 = vpop.eup %4395 }
0x13c2   :  { %v1075_v2 = vpop.permute.xlu1 %1074 }
0x13c3   :  { %v1077_v4 = vmul.f32 %v4394_v1, %v1075_v2 }
0x13c5   :  { %1079 = vrot.lane.b32.xlu0 %v1077_v4, %s4583_s1 }
0x13c6   :  { %v1121_v16 = vpop.permute.xlu1 %1120 }
0x13c7   :  { %v1123_v17 = vmul.f32 %v4396_v5, %v1121_v16 }
0x13c9   :  { %1125 = vrot.lane.b32.xlu1 %v1123_v17, %s4583_s1 }
0x1437   :  { %v1080_v18 = vpop.permute.xlu0 %1079 }
0x1438   :  { %v1082_v19 = vadd.f32 %v1080_v18, %v4839_v51 }
0x143a   :  { %4397 = vtanh.f32 %v1082_v19 }
0x143b   :  { %v1126_v20 = vpop.permute.xlu1 %1125 }
0x143c   :  { %v1128_v21 = vadd.f32 %v1126_v20, %v4837_v48 }
0x143e   :  { %4399 = vtanh.f32 %v1128_v21 }
0x143f   :  { %4401 = vpow2.f32 %v3696_v29 }
0x1444   :  { %v4398_v22 = vpop.eup %4397 }
0x1445   :  { %v1085_v23 = vrot.slane %v4398_v22, 2 }
0x1447   :  { %1086 = vrot.lane.b32.xlu0 %v1085_v23, %s4583_s1 }
0x1448   :  { %v4400_v24 = vpop.eup %4399 }
0x1449   :  { %v1131_v25 = vrot.slane %v4400_v24, 4  ;;  %v4402_v30 = vpop.eup %4401 }
0x144a   :  { %v1115_v31 = vadd.f32 1.0, %v4402_v30 }
0x144b   :  { %v1133_v26 = vsub.f32 %v5001_v6, %v1131_v25 }
0x144c   :  { %4403 = vrcp.f32 %v1115_v31 }
0x144d   :  { %v1135_v27 = vrot.slane %v1133_v26, 4 }
0x144f   :  { %1136 = vrot.lane.b32.xlu1 %v1135_v27, %s4584_s6 }
0x1456   :  { %v4404_v37 = vpop.eup %4403 }
0x14b9   :  { %v1087_v32 = vpop.permute.xlu0 %1086 }
0x14ba   :  { %v1089_v35 = vsub.f32 %v5001_v6, %v1087_v32 }
0x14bc   :  { %v1091_v36 = vrot.slane %v1089_v35, 6 }
0x14be   :  { %1092 = vrot.lane.b32.xlu0 %v1091_v36, %s4585_s2 }
0x14c1   :  { %v1137_v38 = vpop.permute.xlu1 %1136 }
0x14c2   :  { %v1139_v40 = vmul.f32 %v4404_v37, %v1137_v38 }
0x14c4   :  { %1141 = vrot.lane.b32.xlu1 %v1139_v40, %s4585_s2 }
0x1530   :  { %v1093_v41 = vpop.permute.xlu0 %1092 }
0x1531   :  { %v1095_v42 = vmul.f32 %v4394_v1, %v1093_v41 }
0x1533   :  { %1097 = vrot.lane.b32.xlu0 %v1095_v42, %s4585_s2 }
0x1536   :  { %v1142_v39 = vpop.permute.xlu1 %1141 }
0x1537   :  { %v1144_v43 = vadd.f32 %v4400_v24, %v1142_v39 }
0x1539   :  { %1154 = vst.msk [vmem:[#allocation2] sm:$0x30] %vm613_vm8, %v1144_v43  ;;  %v1150_v6 = vrot.slane %v1144_v43, 2 }
0x15a5   :  { %v1098_v45 = vpop.permute.xlu0 %1097 }
0x15a6   :  { %v1100_v47 = vadd.f32 %v4398_v22, %v1098_v45 }
0x15a8   :  { %1146 = vrot.lane.b32.xlu0 %v1100_v47, %s4583_s1 }
0x161a   :  { %v1147_v44 = vpop.permute.xlu0 %1146 }
0x161b   :  { %v1152_v49 = vsel %vm471_vm5, %v1147_v44, %v1150_v6  ;;  %1153 = vst.msk [vmem:[#allocation2 + $0x8] sm:$0xc] %vm611_vm9, %v1147_v44 }
0x161c   :  { %v1155_v50 = vpack.c.bf16 %v1152_v49, %v1152_v49 }
0x161e   :  { %v1157_v52 = vrot.slane %v1155_v50, 1 }
0x1620   :  { %3697 = vmatmul.mubr.msk.bf16.vlgmr.msra.gmra.mrb[16].mxu0 %vm350_vm7, %v1157_v52 }
0x1621   :  { %3923 = vmatprep.mubr.msk.bf16.mxu0 %vm4581_vm1, %v4580_v3 }
0x16f3   :  { %v1195_v53 = vpop.f32.mrb[16].mxu0 }
0x16f4   :  { %v1196_v54 = vadd.f32 %v1195_v53, %v4818_v33  ;;  %v1197_v55 = vpop.f32.mrb[17].mxu0 }
0x16f5   :  { %v1199_v56 = vpop.f32.mrb[18].mxu0  ;;  %v1198_v8 = vadd.f32 %v1197_v55, %v4820_v34 }
0x16f6   :  { %v1203_v57 = vrot.slane %v1196_v54, 4  ;;  %v1200_v58 = vpop.f32.mrb[19].mxu0  ;;  %v1240_v11 = vrot.slane %v1196_v54, 6 }
0x16f7   :  { %v1241_v59 = vrot.slane %v1198_v8, 6 }
0x16f8   :  { %1212 = vrot.lane.b32.xlu1 %v1203_v57, %s4583_s1  ;;  %v1205_v10 = vadd.f32 %v1203_v57, %v4839_v51  ;;  %v1244_v13 = vadd.f32 %v1240_v11, %v4835_v46 }
0x16f9   :  { %v1245_v23 = vadd.f32 %v1241_v59, %v4837_v48 }
0x16fa   :  { %v3698_v12 = vmul.f32 -1.442695, %v1205_v10  ;;  %v3699_v14 = vmul.f32 -1.442695, %v1244_v13 }
0x16fb   :  { %v3700_v24 = vmul.f32 -1.442695, %v1245_v23 }
0x16fc   :  { %1258 = vrot.lane.b32.xlu1 %v1241_v59, %s4583_s1  ;;  %4405 = vpow2.f32 %v3698_v12 }
0x16fd   :  { %4407 = vpow2.f32 %v3699_v14 }
0x1706   :  { %v4406_v15 = vpop.eup %4405 }
0x1707   :  { %v1209_v60 = vadd.f32 1.0, %v4406_v15  ;;  %v4408_v61 = vpop.eup %4407 }
0x1708   :  { %v1252_v62 = vadd.f32 1.0, %v4408_v61 }
0x1709   :  { %4409 = vrcp.f32 %v1209_v60 }
0x170a   :  { %4411 = vrcp.f32 %v1252_v62 }
0x1713   :  { %v4410_v63 = vpop.eup %4409 }
0x1714   :  { %v4412_v1 = vpop.eup %4411 }
0x176a   :  { %v1213_v7 = vpop.permute.xlu1 %1212 }
0x176b   :  { %v1215_v0 = vmul.f32 %v4410_v63, %v1213_v7 }
0x176d   :  { %1217 = vrot.lane.b32.xlu0 %v1215_v0, %s4583_s1 }
0x176e   :  { %v1259_v2 = vpop.permute.xlu1 %1258 }
0x176f   :  { %v1261_v4 = vmul.f32 %v4412_v1, %v1259_v2 }
0x1771   :  { %1263 = vrot.lane.b32.xlu1 %v1261_v4, %s4583_s1 }
0x17df   :  { %v1218_v5 = vpop.permute.xlu0 %1217 }
0x17e0   :  { %v1220_v16 = vadd.f32 %v1218_v5, %v4839_v51 }
0x17e2   :  { %4413 = vtanh.f32 %v1220_v16 }
0x17e3   :  { %v1264_v17 = vpop.permute.xlu1 %1263 }
0x17e4   :  { %v1266_v18 = vadd.f32 %v1264_v17, %v4837_v48 }
0x17e6   :  { %4415 = vtanh.f32 %v1266_v18 }
0x17e7   :  { %4417 = vpow2.f32 %v3700_v24  ;;  %v4283_v24 = vld [vmem:[%s5755_s9] sm:$0xff]  }
0x17e8   :  { %3916 = vmatpush3.bf16.msra.mxu0 %v4283_v24 }
0x17e9   :  { %3917 = vmatprep.subr.bf16.mxu0 %v4580_v3 }
0x17ec   :  { %v4414_v19 = vpop.eup %4413 }
0x17ed   :  { %v1223_v20 = vrot.slane %v4414_v19, 2 }
0x17ef   :  { %1224 = vrot.lane.b32.xlu0 %v1223_v20, %s4583_s1 }
0x17f0   :  { %v4416_v21 = vpop.eup %4415 }
0x17f1   :  { %v1268_v22 = vsub.f32 %v1152_v49, %v4416_v21  ;;  %v4418_v25 = vpop.eup %4417 }
0x17f2   :  { %v1253_v26 = vadd.f32 1.0, %v4418_v25  ;;  %v4284_v25 = vld [vmem:[%s5755_s9 + $0x8] sm:$0xff]  }
0x17f3   :  { %1270 = vrot.lane.b32.xlu1 %v1268_v22, %s4584_s6  ;;  %3918 = vmatpush3.bf16.msra.mxu0 %v4284_v25 }
0x17f4   :  { %4419 = vrcp.f32 %v1253_v26  ;;  %v4287_v26 = vld [vmem:[%s5758_s12 + $0x8] sm:$0xff]   ;;  %3919 = vmatprep.subr.bf16.mxu0 %v4580_v3 }
0x17fe   :  { %v4420_v30 = vpop.eup %4419 }
0x1861   :  { %v1225_v27 = vpop.permute.xlu0 %1224 }
0x1862   :  { %v1227_v28 = vsub.f32 %v1152_v49, %v1225_v27  ;;  %v4286_v27 = vld [vmem:[%s5755_s9 + $0x10] sm:$0xff]  }
0x1863   :  { %3920 = vmatpush3.bf16.msra.mxu0 %v4286_v27 }
0x1864   :  { %v1229_v29 = vrot.slane %v1227_v28, 6  ;;  %3921 = vmatprep.subr.bf16.mxu0 %v4580_v3 }
0x1865   :  { %v1271_v31 = vpop.permute.xlu1 %1270 }
0x1866   :  { %v1273_v32 = vmul.f32 %v4420_v30, %v1271_v31  ;;  %1230 = vrot.lane.b32.xlu0 %v1229_v29, %s4585_s2 }
0x1868   :  { %1275 = vrot.lane.b32.xlu1 %v1273_v32, %s4585_s2  ;;  %v4288_v32 = vld [vmem:[%s5755_s9 + $0x18] sm:$0xff]   ;;  %s3757_s9 = sld [smem:[#allocation4 + $0x1]] }
0x1869   :  { %3922 = vmatpush3.bf16.msra.mxu0 %v4288_v32 }
0x186a   :  { %3939 = vmatprep.subr.bf16.mxu0 %v4580_v3 }
0x186e   :  { %p2670_p6 = scmp.ne.s32.totalorder %s3757_s9, 0 }
0x1870   :  { %s2671_s25 = scalar_select %p2670_p6, 1, 0 }
0x1872   :  { %s2672_s4 = scvt.s32.f32 %s2671_s25 }
0x1874   :  { %s2675_s5 = ssub.f32 1.0, %s2672_s4 }
0x18d8   :  { %v1231_v35 = vpop.permute.xlu0 %1230 }
0x18d9   :  { %v1233_v36 = vmul.f32 %v4410_v63, %v1231_v35  ;;  %v4289_v35 = vld [vmem:[%s5758_s12 + $0x10] sm:$0xff]  }
0x18da   :  { %v1276_v37 = vpop.permute.xlu1 %1275 }
0x18db   :  { %v1278_v38 = vadd.f32 %v4416_v21, %v1276_v37  ;;  %1235 = vrot.lane.b32.xlu0 %v1233_v36, %s4585_s2  ;;  %v4290_v36 = vld [vmem:[%s5758_s12 + $0x18] sm:$0xff]  }
0x18dd   :  { %1288 = vst.msk [vmem:[#allocation2] sm:$0xc] %vm749_vm10, %v1278_v38  ;;  %v1284_v42 = vrot.slane %v1278_v38, 6 }
0x194d   :  { %v1236_v40 = vpop.permute.xlu0 %1235 }
0x194e   :  { %v1238_v41 = vadd.f32 %v4414_v19, %v1236_v40 }
0x1950   :  { %1280 = vrot.lane.b32.xlu0 %v1238_v41, %s4583_s1 }
0x19c2   :  { %v1281_v39 = vpop.permute.xlu0 %1280 }
0x19c3   :  { %v1286_v43 = vsel %vm471_vm5, %v1281_v39, %v1284_v42  ;;  %1287 = vst.msk [vmem:[#allocation2 + $0x8] sm:$0x30] %vm747_vm11, %v1281_v39 }
0x19c4   :  { %v1289_v45 = vpack.c.bf16 %v1286_v43, %v1286_v43 }
0x19c6   :  { %v1291_v47 = vrot.slane %v1289_v45, 2 }
0x19c8   :  { %3701 = vmatmul.mubr.msk.bf16.vlgmr.msra.gmra.mrb[16].mxu1 %vm350_vm7, %v1291_v47 }
0x19c9   :  { %3935 = vmatprep.mubr.msk.bf16.mxu1 %vm4581_vm1, %v4580_v3 }
0x1a9b   :  { %v1329_v6 = vpop.f32.mrb[16].mxu1 }
0x1a9c   :  { %v1330_v44 = vadd.f32 %v1329_v6, %v4818_v33  ;;  %v1331_v49 = vpop.f32.mrb[17].mxu1 }
0x1a9d   :  { %v1333_v50 = vpop.f32.mrb[18].mxu1  ;;  %v1332_v54 = vadd.f32 %v1331_v49, %v4820_v34  ;;  %v5150_v49 = vld [vmem:[%s5757_s11 + $0x8] sm:$0xff]  }
0x1a9e   :  { %v1337_v52 = vrot.slane %v1330_v44, 2  ;;  %v1334_v53 = vpop.f32.mrb[19].mxu1  ;;  %v1373_v57 = vadd.f32 %v1330_v44, %v4835_v46  ;;  %v5144_v44 = vld [vmem:[%s5757_s11] sm:$0xff]  }
0x1a9f   :  { %v1374_v5 = vadd.f32 %v1332_v54, %v4837_v48  ;;  %v3705_v50 = vld [vmem:[%s5756_s10] ss:$0 sm:$0xff] }
0x1aa0   :  { %1346 = vrot.lane.b32.xlu1 %v1337_v52, %s4583_s1  ;;  %v1339_v55 = vadd.f32 %v1337_v52, %v4839_v51  ;;  %v3703_v8 = vmul.f32 -1.442695, %v1373_v57 }
0x1aa1   :  { %v3704_v16 = vmul.f32 -1.442695, %v1374_v5 }
0x1aa2   :  { %v3702_v56 = vmul.f32 -1.442695, %v1339_v55 }
0x1aa4   :  { %1388 = vrot.lane.b32.xlu1 %v1332_v54, %s4583_s1  ;;  %4421 = vpow2.f32 %v3702_v56 }
0x1aa5   :  { %4423 = vpow2.f32 %v3703_v8 }
0x1aae   :  { %v4422_v58 = vpop.eup %4421 }
0x1aaf   :  { %v1343_v33 = vadd.f32 1.0, %v4422_v58  ;;  %v4424_v59 = vpop.eup %4423 }
0x1ab0   :  { %v1381_v10 = vadd.f32 1.0, %v4424_v59 }
0x1ab1   :  { %4425 = vrcp.f32 %v1343_v33 }
0x1ab2   :  { %4427 = vrcp.f32 %v1381_v10 }
0x1abb   :  { %v4426_v11 = vpop.eup %4425 }
0x1abc   :  { %v4428_v34 = vpop.eup %4427 }
0x1b12   :  { %v1347_v12 = vpop.permute.xlu1 %1346 }
0x1b13   :  { %v1349_v13 = vmul.f32 %v4426_v11, %v1347_v12  ;;  %v5181_v12 = vld [vmem:[%s5759_s13 + $0x8] sm:$0xff]  }
0x1b15   :  { %1351 = vrot.lane.b32.xlu0 %v1349_v13, %s4583_s1 }
0x1b16   :  { %v1389_v14 = vpop.permute.xlu1 %1388 }
0x1b17   :  { %v1391_v15 = vmul.f32 %v4428_v34, %v1389_v14 }
0x1b19   :  { %1393 = vrot.lane.b32.xlu1 %v1391_v15, %s4583_s1 }
0x1b87   :  { %v1352_v46 = vpop.permute.xlu0 %1351 }
0x1b88   :  { %v1354_v60 = vadd.f32 %v1352_v46, %v4839_v51 }
0x1b8a   :  { %4429 = vtanh.f32 %v1354_v60 }
0x1b8b   :  { %v1394_v61 = vpop.permute.xlu1 %1393 }
0x1b8c   :  { %v1396_v62 = vadd.f32 %v1394_v61, %v4837_v48  ;;  %v4285_v48 = vld [vmem:[%s5758_s12] sm:$0xff]   ;;  %s4587_s12 = smov 16  }
0x1b8d   :  { %3928 = vmatpush3.bf16.msra.mxu1 %v4285_v48 }
0x1b8e   :  { %4431 = vtanh.f32 %v1396_v62  ;;  %3929 = vmatprep.subr.bf16.mxu1 %v4580_v3 }
0x1b8f   :  { %4433 = vpow2.f32 %v3704_v16  ;;  %v5194_v16 = vld [vmem:[%s5760_s14] sm:$0xff] }
0x1b91   :  { %3930 = vmatpush3.bf16.msra.mxu1 %v4287_v26 }
0x1b92   :  { %3931 = vmatprep.subr.bf16.mxu1 %v4580_v3 }
0x1b94   :  { %v4430_v63 = vpop.eup %4429 }
0x1b95   :  { %v1357_v7 = vrot.slane %v4430_v63, 2  ;;  %3932 = vmatpush3.bf16.msra.mxu1 %v4289_v35 }
0x1b96   :  { %3933 = vmatprep.subr.bf16.mxu1 %v4580_v3 }
0x1b97   :  { %1358 = vrot.lane.b32.xlu0 %v1357_v7, %s4583_s1 }
0x1b98   :  { %v4432_v0 = vpop.eup %4431 }
0x1b99   :  { %v1399_v1 = vrot.slane %v4432_v0, 4  ;;  %v4434_v51 = vpop.eup %4433  ;;  %3934 = vmatpush3.bf16.msra.mxu1 %v4290_v36 }
0x1b9a   :  { %v1382_v17 = vadd.f32 1.0, %v4434_v51 }
0x1b9b   :  { %v1401_v2 = vsub.f32 %v1286_v43, %v1399_v1 }
0x1b9c   :  { %4435 = vrcp.f32 %v1382_v17 }
0x1b9d   :  { %v1403_v4 = vrot.slane %v1401_v2, 4 }
0x1b9f   :  { %1404 = vrot.lane.b32.xlu1 %v1403_v4, %s4584_s6 }
0x1ba6   :  { %v4436_v21 = vpop.eup %4435 }
0x1c09   :  { %v1359_v18 = vpop.permute.xlu0 %1358 }
0x1c0a   :  { %v1361_v19 = vsub.f32 %v1286_v43, %v1359_v18 }
0x1c0c   :  { %v1363_v20 = vrot.slane %v1361_v19, 6 }
0x1c0e   :  { %1364 = vrot.lane.b32.xlu0 %v1363_v20, %s4585_s2 }
0x1c11   :  { %v1405_v22 = vpop.permute.xlu1 %1404 }
0x1c12   :  { %v1407_v23 = vmul.f32 %v4436_v21, %v1405_v22 }
0x1c14   :  { %1409 = vrot.lane.b32.xlu1 %v1407_v23, %s4585_s2 }
0x1c80   :  { %v1365_v28 = vpop.permute.xlu0 %1364 }
0x1c81   :  { %v1367_v29 = vmul.f32 %v4426_v11, %v1365_v28  ;;  %v5175_v11 = vld [vmem:[%s5759_s13] sm:$0xff]  }
0x1c83   :  { %1369 = vrot.lane.b32.xlu0 %v1367_v29, %s4585_s2 }
0x1c86   :  { %v1410_v30 = vpop.permute.xlu1 %1409 }
0x1c87   :  { %v1412_v31 = vadd.f32 %v4432_v0, %v1410_v30 }
0x1c89   :  { %1422 = vst.msk [vmem:[#allocation2] sm:$0x3] %vm885_vm12, %v1412_v31  ;;  %v1418_v40 = vrot.slane %v1412_v31, 2 }
0x1c90   :  { %v5132_v45 = vld [vmem:[#allocation2] sm:$0xff] }
0x1cf5   :  { %v1370_v37 = vpop.permute.xlu0 %1369 }
0x1cf6   :  { %v1372_v38 = vadd.f32 %v4430_v63, %v1370_v37  ;;  %v5203_v37 = vld [vmem:[%s5760_s14 + $0x8] sm:$0xff] }
0x1cf8   :  { %1414 = vrot.lane.b32.xlu0 %v1372_v38, %s4583_s1 }
0x1d6a   :  { %v1415_v41 = vpop.permute.xlu0 %1414 }
0x1d6b   :  { %v1420_v42 = vsel %vm471_vm5, %v1415_v41, %v1418_v40  ;;  %1421 = vst.msk [vmem:[#allocation2 + $0x8] sm:$0xc0] %vm883_vm13, %v1415_v41 }
0x1d6c   :  { %v1425_v39 = vpack.c.bf16 %v1420_v42, %v1420_v42 }
0x1d6e   :  { %v1433_v43 = vrot.slane %v1425_v39, 3 }
0x1d70   :  { %3924 = vmatmul.mubr.msk.bf16.vlgmr.msra.gmra.mrb[20].mxu0 %vm350_vm7, %v1433_v43 }
0x1d71   :  { %3943 = vmatprep.mubr.msk.bf16.mxu0 %vm4581_vm1, %v4580_v3  ;;  %3940 = vmatpush3.bf16.msra.mxu0 %v5144_v44 }
0x1d72   :  { %v5134_v47 = vld [vmem:[#allocation2 + $0x8] sm:$0xff]  ;;  %3941 = vmatprep.subr.bf16.mxu0 %v4580_v3 }
0x1d73   :  { %v1502_v6 = vpack.c.bf16 %v5134_v47, %v5132_v45 }
0x1d75   :  { %3936 = vmatmul.mubr.msk.bf16.vlgmr.msra.gmra.mrb[20].mxu1 %vm350_vm7, %v1502_v6  ;;  %3942 = vmatpush3.bf16.msra.mxu0 %v5150_v49  ;;  %v4586_v6 = vmov 0.0|0.0   ;;  %vm2150_vm7 = vcmask 916480  }
0x1d76   :  { %3966 = vmatprep.mubr.msk.f32.mxu1 %vm4581_vm1, %v4580_v3  ;;  %3947 = vmatprep.subr.bf16.mxu0 %v4580_v3 }
0x1d77   :  { %4223 = vmatprep.subr.bf16.mxu1 %v4586_v6 }
0x1e43   :  { %v1495_v52 = vpop.f32.mrb[20].mxu0 }
0x1e44   :  { %v1496_v53 = vadd.f32 %v3705_v50, %v1495_v52  ;;  %v3925_v54 = vpop.f32.mrb[21].mxu0  ;;  %v4518_v50 = vld [vmem:[%s5785_s8 + $0x8] sm:$0xff]  ;;  %s4588_s8 = smov 1  }
0x1e45   :  { %v1498_v55 = vpop.f32.mrb[22].mxu0 }
0x1e46   :  { %4437 = vtanh.f32 %v1496_v53  ;;  %v3926_v56 = vpop.f32.mrb[23].mxu0 }
0x1e48   :  { %v5158_v57 = vpop.f32.mrb[20].mxu1 }
0x1e49   :  { %v3937_v8 = vpop.f32.mrb[21].mxu1 }
0x1e4a   :  { %v5160_v58 = vpop.f32.mrb[22].mxu1  ;;  %v5219_v8 = vld [vmem:[%s5761_s15] sm:$0x3] }
0x1e4b   :  { %v3938_v33 = vpop.f32.mrb[23].mxu1 }
0x1e4c   :  { %v5224_v33 = vld [vmem:[%s5766_s20] sm:$0xff]  }
0x1e50   :  { %v5162_v59 = vpop.eup %4437 }
0x1e51   :  { %v5166_v10 = vpack.c.bf16 %v5162_v59, %v5162_v59 }
0x1e53   :  { %3944 = vmatmul.mubr.msk.bf16.vlgmr.msra.gmra.mrb[24].mxu0 %vm471_vm5, %v5166_v10 }
0x1e54   :  { %3951 = vmatprep.mubr.msk.bf16.mxu0 %vm4581_vm1, %v4580_v3  ;;  %3948 = vmatpush3.bf16.msra.mxu0 %v5175_v11 }
0x1e55   :  { %3949 = vmatprep.subr.bf16.mxu0 %v4580_v3 }
0x1e58   :  { %3950 = vmatpush3.bf16.msra.mxu0 %v5181_v12 }
0x1f26   :  { %v1621_v13 = vpop.f32.mrb[24].mxu0 }
0x1f27   :  { %v1628_v34 = vrot.slane %v1621_v13, 6  ;;  %v1630_v14 = vrot.slane %v1621_v13, 4  ;;  %v3945_v15 = vpop.f32.mrb[25].mxu0  ;;  %v1632_v60 = vrot.slane %v1621_v13, 2 }
0x1f28   :  { %v1624_v46 = vpop.f32.mrb[26].mxu0  ;;  %v5267_v15 = vld [vmem:[%s5764_s18 + $0x18] sm:$0xff]  }
0x1f29   :  { %v1634_v61 = vsel %vm183_vm0, %v1621_v13, %v1628_v34  ;;  %v3946_v62 = vpop.f32.mrb[27].mxu0  ;;  %v5233_v13 = vld [vmem:[%s5766_s20 + $0x8] sm:$0xff]   ;;  %v5247_v34 = vld [vmem:[%s5764_s18] sm:$0xff]  }
0x1f2a   :  { %v1636_v63 = vsel %vm1635_vm14, %v1634_v61, %v1630_v14  ;;  %v5253_v14 = vld [vmem:[%s5764_s18 + $0x8] sm:$0xff]   ;;  %v5275_v46 = vld [vmem:[%s5764_s18 + $0x20] sm:$0xff]  }
0x1f2b   :  { %v1638_v7 = vsel %vm1637_vm15, %v1636_v63, %v1632_v60  ;;  %v5286_v63 = vld [vmem:[%s5767_s21] ss:$0 sm:$0xff] }
0x1f2c   :  { %v1639_v0 = vadd.f32 %v1638_v7, %v5158_v57  ;;  %v1640_v1 = vadd.f32 %v1638_v7, %v5160_v58 }
0x1f2e   :  { %4439 = vtanh.f32 %v1639_v0 }
0x1f2f   :  { %4441 = vtanh.f32 %v1640_v1 }
0x1f38   :  { %v4440_v2 = vpop.eup %4439 }
0x1f39   :  { %v4442_v4 = vpop.eup %4441 }
0x1f3a   :  { %v1643_v5 = vpack.c.bf16 %v4442_v4, %v4440_v2 }
0x1f3c   :  { %3952 = vmatmul.mubr.msk.bf16.vlgmr.msra.gmra.mrb[28].mxu0 %vm471_vm5, %v1643_v5  ;;  %v5293_v5 = vld [vmem:[%s5762_s16] ss:$0 sm:$0xff] }
0x1f3d   :  { %3959 = vmatprep.mubr.msk.f32.mxu0 %vm252_vm3, %v5194_v16 }
0x200f   :  { %v1693_v51 = vpop.f32.mrb[28].mxu0 }
0x2010   :  { %v3953_v17 = vpop.f32.mrb[29].mxu0  ;;  %v1701_v19 = vsel %vm1700_vm2, %v1693_v51, -inf }
0x2011   :  { %v1696_v18 = vpop.f32.mrb[30].mxu0 }
0x2012   :  { %v1702_v20 = vsel %vm1700_vm2, %v1696_v18, -inf  ;;  %v3954_v21 = vpop.f32.mrb[31].mxu0 }
0x2013   :  { %v1703_v22 = vmax.f32 %v1701_v19, %v1702_v20 }
0x2015   :  { %v1704_v23 = vrot.slane %v1703_v22, 4 }
0x2017   :  { %v1705_v24 = vmax.f32 %v1703_v22, %v1704_v23 }
0x2019   :  { %v1706_v48 = vrot.slane %v1705_v24, 2 }
0x201b   :  { %v1707_v25 = vmax.f32 %v1705_v24, %v1706_v48  ;;  %v5318_v48 = vld [vmem:[%s5765_s19] ss:$0 sm:$0xff] }
0x201d   :  { %v1708_v26 = vrot.slane %v1707_v25, 1 }
0x201f   :  { %v1709_v27 = vmax.f32 %v1707_v25, %v1708_v26 }
0x2021   :  { %v1710_v28 = vsub.f32 %v1693_v51, %v1709_v27  ;;  %v1711_v29 = vsub.f32 %v1696_v18, %v1709_v27  ;;  %v5299_v18 = vld [vmem:[%s5763_s17] ss:$0 sm:$0xff] }
0x2023   :  { %v1712_v30 = vmul.f32 1.442695, %v1710_v28  ;;  %v1714_v31 = vmul.f32 1.442695, %v1711_v29 }
0x2025   :  { %4443 = vpow2.f32 %v1712_v30 }
0x2026   :  { %4445 = vpow2.f32 %v1714_v31 }
0x202f   :  { %v4444_v32 = vpop.eup %4443 }
0x2030   :  { %v4446_v35 = vpop.eup %4445 }
0x2031   :  { %v4219_v36 = vpack.c.bf16 %v4446_v35, %v4444_v32 }
0x2033   :  { %4220 = vmatprep.subr.bf16.mxu0 %v4219_v36 }
0x2034   :  { %4222 = vmatpush3.bf16.msra.mxu0 %v4219_v36 }
0x2035   :  { %3969 = vmatprep.subr.bf16.mxu0 %v4580_v3 }
0x2037   :  { %3960 = vmatmul.mubr.msk.f32.vlgmr.msra.gmra.mrb[32].mxu0 %vm252_vm3, %v5203_v37 }
0x2038   :  { %3979 = vmatprep.mubr.msk.bf16.mxu0 %vm4581_vm1, %v4580_v3  ;;  %3970 = vmatpush3.bf16.msra.mxu0 %v5247_v34 }
0x2039   :  { %3971 = vmatprep.subr.bf16.mxu0 %v4580_v3 }
0x203c   :  { %3972 = vmatpush3.bf16.msra.mxu0 %v5253_v14 }
0x203d   :  { %3973 = vmatprep.subr.bf16.mxu0 %v4580_v3 }
0x210a   :  { %v3961_v38 = vpop.f32.mrb[32].mxu0 }
0x210b   :  { %4447 = vrcp.f32 %v3961_v38  ;;  %v1788_v40 = vpop.f32.mrb[33].mxu0 }
0x210c   :  { %4449 = vrcp.f32 %v1788_v40 }
0x2115   :  { %v4448_v41 = vpop.eup %4447 }
0x2116   :  { %v4450_v42 = vpop.eup %4449  ;;  %v1800_v39 = vmul.f32 %v4448_v41, %v4446_v35 }
0x2117   :  { %v1798_v43 = vmul.f32 %v4450_v42, %v4444_v32 }
0x2118   :  { %1808 = vperm.xlu0 %4263, %v1800_v39  }
0x2119   :  { %1803 = vperm.xlu1 %4262, %v1798_v43  }
0x211d   :  { %1888 = vperm.xlu1 %4262, %v4518_v50  }
0x2197   :  { %v1809_v52 = vpop.permute.xlu0 %1808 }
0x2198   :  { %v1812_v53 = vmul.f32 %v1809_v52, %v5134_v47  ;;  %v1804_v54 = vpop.permute.xlu1 %1803  ;;  %v5328_v52 = vld [vmem:[%s5768_s22] sm:$0xff]  }
0x2199   :  { %v1811_v55 = vmul.f32 %v1804_v54, %v5132_v45  ;;  %v5334_v54 = vld [vmem:[%s5768_s22 + $0x8] sm:$0xff]  }
0x219b   :  { %v4224_v56 = vpack.c.bf16 %v1812_v53, %v1811_v55 }
0x219c   :  { %v1889_v51 = vpop.permute.xlu1 %1888 }
0x219d   :  { %4225 = vmatpush3.bf16.msra.mxu1 %v4224_v56  ;;  %v1897_v17 = vmul.f32 %v5293_v5, %v1889_v51  ;;  %v5349_v56 = vld [vmem:[%s5768_s22 + $0x18] sm:$0xff]  }
0x219e   :  { %3983 = vmatprep.subr.bf16.mxu1 %v4580_v3 }
0x219f   :  { %v5302_v19 = vadd.f32 %v5299_v18, %v1897_v17 }
0x21a0   :  { %3967 = vmatmul.mubr.msk.f32.vlgmr.msra.gmra.mrb[24].mxu1 %vm252_vm3, %v5219_v8 }
0x21a1   :  { %3984 = vmatpush3.bf16.msra.mxu1 %v5224_v33  ;;  %3987 = vmatprep.mubr.msk.bf16.mxu1 %vm4581_vm1, %v4580_v3  ;;  %v1905_v20 = vmax.f32 %v5302_v19, 0.0 }
0x21a2   :  { %3985 = vmatprep.subr.bf16.mxu1 %v4580_v3 }
0x21a5   :  { %3986 = vmatpush3.bf16.msra.mxu1 %v5233_v13 }
0x21a6   :  { %3991 = vmatprep.subr.bf16.mxu1 %v4580_v3 }
0x21a8   :  { %3988 = vmatmul.mubr.msk.bf16.vlgmr.msra.gmra.mrb[28].mxu1 %vm471_vm5, %v5166_v10  ;;  %v5260_v10 = vld [vmem:[%s5764_s18 + $0x10] sm:$0xff]  }
0x21a9   :  { %4005 = vmatprep.mubr.msk.bf16.mxu1 %vm4581_vm1, %v4580_v3  ;;  %3974 = vmatpush3.bf16.msra.mxu0 %v5260_v10 }
0x21aa   :  { %3975 = vmatprep.subr.bf16.mxu0 %v4580_v3  ;;  %3992 = vmatpush3.bf16.msra.mxu1 %v5328_v52 }
0x21ab   :  { %3993 = vmatprep.subr.bf16.mxu1 %v4580_v3 }
0x21ad   :  { %3976 = vmatpush3.bf16.msra.mxu0 %v5267_v15 }
0x21ae   :  { %3977 = vmatprep.subr.bf16.mxu0 %v4580_v3  ;;  %3994 = vmatpush3.bf16.msra.mxu1 %v5334_v54 }
0x21af   :  { %3995 = vmatprep.subr.bf16.mxu1 %v4580_v3 }
0x21b1   :  { %3978 = vmatpush3.bf16.msra.mxu0 %v5275_v46 }
0x21b2   :  { %4009 = vmatprep.subr.bf16.mxu0 %v4580_v3 }
0x2273   :  { %v5279_v60 = vpop.f32.mrb[24].mxu1 }
0x2274   :  { %v1907_v61 = vrot.slane %v5279_v60, 2  ;;  %v3968_v62 = vpop.f32.mrb[25].mxu1 }
0x2275   :  { %v5364_v62 = vld [vmem:[%s5768_s22 + $0x28] sm:$0xff]  }
0x2276   :  { %1908 = vrot.lane.b32.xlu1 %v1907_v61, %s4587_s12  ;;  %v5356_v61 = vld [vmem:[%s5768_s22 + $0x20] sm:$0xff]  }
0x227b   :  { %v2047_v7 = vpop.f32.mrb[28].mxu1 }
0x227c   :  { %v2048_v0 = vadd.f32 %v5286_v63, %v2047_v7  ;;  %v3989_v1 = vpop.f32.mrb[29].mxu1  ;;  %v5371_v7 = vld [vmem:[%s5768_s22 + $0x30] sm:$0xff]  }
0x227d   :  { %v2050_v2 = vpop.f32.mrb[30].mxu1 }
0x227e   :  { %2061 = vrot.lane.b32.xlu0 %v2048_v0, %s4583_s1  ;;  %v3990_v4 = vpop.f32.mrb[31].mxu1 }
0x227f   :  { %v2094_v4 = vrot.slane %v1905_v20, 6 }
0x22e8   :  { %v1909_v21 = vpop.permute.xlu1 %1908 }
0x22e9   :  { %v1911_v22 = vsel %vm252_vm3, %v1905_v20, %v1909_v21 }
0x22ea   :  { %v1912_v23 = vpack.c.bf16 %v1911_v22, %v1911_v22 }
0x22ec   :  { %v1920_v24 = vrot.slane %v1912_v23, 3 }
0x22ee   :  { %3980 = vmatmul.mubr.msk.bf16.vlgmr.msra.gmra.mrb[36].mxu0 %vm1951_vm4, %v1920_v24 }
0x22ef   :  { %4010 = vmatpush3.bf16.msra.mxu0 %v5144_v44  ;;  %4013 = vmatprep.mubr.msk.bf16.mxu0 %vm4581_vm1, %v4580_v3 }
0x22f0   :  { %4011 = vmatprep.subr.bf16.mxu0 %v4580_v3  ;;  %v2062_v38 = vpop.permute.xlu0 %2061 }
0x22f3   :  { %4012 = vmatpush3.bf16.msra.mxu0 %v5150_v49 }
0x22f4   :  { %4017 = vmatprep.subr.bf16.mxu0 %v4580_v3 }
0x23c1   :  { %v1989_v25 = vpop.f32.mrb[36].mxu0 }
0x23c2   :  { %v1990_v26 = vadd.f32 %v5318_v48, %v1989_v25  ;;  %v3981_v27 = vpop.f32.mrb[37].mxu0 }
0x23c3   :  { %v1992_v28 = vpop.f32.mrb[38].mxu0 }
0x23c4   :  { %v2053_v29 = vadd.f32 %v2048_v0, %v1990_v26  ;;  %v3982_v30 = vpop.f32.mrb[39].mxu0 }
0x23c6   :  { %v3738_v31 = vmul.f32 -1.442695, %v2053_v29 }
0x23c8   :  { %4451 = vpow2.f32 %v3738_v31 }
0x23d2   :  { %v4452_v32 = vpop.eup %4451 }
0x23d3   :  { %v2057_v35 = vadd.f32 1.0, %v4452_v32 }
0x23d5   :  { %4453 = vrcp.f32 %v2057_v35 }
0x23df   :  { %v4454_v36 = vpop.eup %4453 }
0x23e0   :  { %v2064_v40 = vmul.f32 %v4454_v36, %v2062_v38 }
0x23e2   :  { %2066 = vrot.lane.b32.xlu1 %v2064_v40, %s4583_s1 }
0x2454   :  { %v2067_v41 = vpop.permute.xlu1 %2066 }
0x2455   :  { %v2069_v42 = vadd.f32 %v2067_v41, %v1990_v26 }
0x2457   :  { %4455 = vtanh.f32 %v2069_v42 }
0x2461   :  { %v4456_v39 = vpop.eup %4455 }
0x2462   :  { %2072 = vrot.lane.b32.xlu0 %v4456_v39, %s4583_s1 }
0x24d4   :  { %v2073_v43 = vpop.permute.xlu0 %2072 }
0x24d5   :  { %v2075_v50 = vsub.f32 %v5162_v59, %v2073_v43  ;;  %v5342_v59 = vld [vmem:[%s5768_s22 + $0x10] sm:$0xff]  }
0x24d6   :  { %3996 = vmatpush3.bf16.msra.mxu1 %v5342_v59 }
0x24d7   :  { %2077 = vrot.lane.b32.xlu1 %v2075_v50, %s4585_s2  ;;  %3997 = vmatprep.subr.bf16.mxu1 %v4580_v3 }
0x24da   :  { %3998 = vmatpush3.bf16.msra.mxu1 %v5349_v56 }
0x24db   :  { %3999 = vmatprep.subr.bf16.mxu1 %v4580_v3 }
0x24de   :  { %4000 = vmatpush3.bf16.msra.mxu1 %v5356_v61 }
0x24df   :  { %4001 = vmatprep.subr.bf16.mxu1 %v4580_v3 }
0x24e2   :  { %4002 = vmatpush3.bf16.msra.mxu1 %v5364_v62 }
0x24e3   :  { %4003 = vmatprep.subr.bf16.mxu1 %v4580_v3 }
0x24e6   :  { %4004 = vmatpush3.bf16.msra.mxu1 %v5371_v7 }
0x24e7   :  { %4230 = vmatprep.subr.bf16.mxu1 %v4586_v6 }
0x2549   :  { %v2078_v53 = vpop.permute.xlu1 %2077 }
0x254a   :  { %v2080_v55 = vmul.f32 %v4454_v36, %v2078_v53 }
0x254c   :  { %2082 = vrot.lane.b32.xlu0 %v2080_v55, %s4585_s2 }
0x25be   :  { %v2083_v0 = vpop.permute.xlu0 %2082 }
0x25bf   :  { %v5375_v1 = vadd.f32 %v4456_v39, %v2083_v0 }
0x25c1   :  { %2087 = vrot.lane.b32.xlu0 %v5375_v1, %s4583_s1  ;;  %v2204_v2 = vpack.c.bf16 %v5375_v1, %v5375_v1 }
0x25c3   :  { %2206 = vrot.lane.b32.xlu1 %v2204_v2, %s4583_s1 }
0x25c5   :  { %2095 = vrot.lane.b32.xlu0 %v2094_v4, %s4584_s6 }
0x25c7   :  { %2090 = vrot.lane.b32.xlu1 %v5279_v60, %s4585_s2 }
0x2633   :  { %v2088_v51 = vpop.permute.xlu0 %2087 }
0x2635   :  { %v5387_v17 = vpop.permute.xlu1 %2206 }
0x2636   :  { %4014 = vmatmul.mubr.msk.bf16.vlgmr.msra.gmra.mrb[40].mxu0 %vm471_vm5, %v5387_v17 }
0x2637   :  { %4018 = vmatpush3.bf16.msra.mxu0 %v5175_v11  ;;  %4021 = vmatprep.mubr.msk.bf16.mxu0 %vm4581_vm1, %v4580_v3  ;;  %v2096_v20 = vpop.permute.xlu0 %2095 }
0x2638   :  { %4019 = vmatprep.subr.bf16.mxu0 %v4580_v3 }
0x2639   :  { %v2091_v19 = vpop.permute.xlu1 %2090 }
0x263a   :  { %v2098_v21 = vsel %vm471_vm5, %v2088_v51, %v2091_v19 }
0x263b   :  { %v2100_v60 = vsel %vm2099_vm6, %v2098_v21, %v2096_v20  ;;  %4020 = vmatpush3.bf16.msra.mxu0 %v5181_v12 }
0x263c   :  { %v2101_v22 = vpack.c.bf16 %v2100_v60, %v2100_v60 }
0x263e   :  { %4006 = vmatmul.mubr.msk.bf16.vlgmr.msra.gmra.mrb[32].mxu1 %vm2150_vm7, %v2101_v22 }
0x263f   :  { %4036 = vmatprep.mubr.msk.f32.mxu1 %vm4581_vm1, %v4580_v3 }
0x2709   :  { %v2245_v23 = vpop.f32.mrb[40].mxu0 }
0x270a   :  { %v2252_v24 = vrot.slane %v2245_v23, 6  ;;  %v2254_v25 = vrot.slane %v2245_v23, 4  ;;  %v4015_v26 = vpop.f32.mrb[41].mxu0  ;;  %v2256_v28 = vrot.slane %v2245_v23, 2 }
0x270b   :  { %v2248_v27 = vpop.f32.mrb[42].mxu0 }
0x270c   :  { %v2258_v29 = vsel %vm183_vm0, %v2245_v23, %v2252_v24  ;;  %v4016_v30 = vpop.f32.mrb[43].mxu0 }
0x270d   :  { %v2259_v31 = vsel %vm1635_vm14, %v2258_v29, %v2254_v25 }
0x270e   :  { %v2260_v32 = vsel %vm1637_vm15, %v2259_v31, %v2256_v28 }
0x270f   :  { %v2261_v35 = vadd.f32 %v2260_v32, %v5158_v57  ;;  %v2262_v36 = vadd.f32 %v2260_v32, %v5160_v58 }
0x2711   :  { %4457 = vtanh.f32 %v2261_v35  ;;  %v2188_v38 = vpop.f32.mrb[32].mxu1 }
0x2712   :  { %4459 = vtanh.f32 %v2262_v36  ;;  %v4007_v40 = vpop.f32.mrb[33].mxu1  ;;  %v5426_v36 = vld [vmem:[#allocation3] ss:$0 sm:$0xff] }
0x2713   :  { %v2191_v41 = vpop.f32.mrb[34].mxu1  ;;  %v5429_v40 = vadd.f32 %v5426_v36, %v2188_v38 }
0x2714   :  { %v4008_v42 = vpop.f32.mrb[35].mxu1  ;;  %v2201_v41 = vstv %s2200_s27 }
0x2715   :  { %v5434_v42 = vld [vmem:[%s5791_s3] sm:$0x3] }
0x271b   :  { %v4458_v39 = vpop.eup %4457 }
0x271c   :  { %v4460_v43 = vpop.eup %4459 }
0x271d   :  { %v2265_v50 = vpack.c.bf16 %v4460_v43, %v4458_v39  ;;  %v2198_v39 = vstv %s2197_s23  ;;  %s3150_s23 = scalar_select %p3149_p7, 1, 0 }
0x271f   :  { %4022 = vmatmul.mubr.msk.bf16.vlgmr.msra.gmra.mrb[44].mxu0 %vm471_vm5, %v2265_v50  ;;  %s3151_s27 = scvt.s32.f32 %s3150_s23 }
0x2720   :  { %4029 = vmatprep.mubr.msk.f32.mxu0 %vm252_vm3, %v5194_v16 }
0x27f2   :  { %v2303_v53 = vpop.f32.mrb[44].mxu0 }
0x27f3   :  { %v4023_v55 = vpop.f32.mrb[45].mxu0  ;;  %v2310_v2 = vsel %vm1700_vm2, %v2303_v53, -inf }
0x27f4   :  { %v2306_v0 = vpop.f32.mrb[46].mxu0  ;;  %v2202_v55 = vmul.f32 %v2201_v41, %v5429_v40 }
0x27f5   :  { %v2311_v4 = vsel %vm1700_vm2, %v2306_v0, -inf  ;;  %v4024_v51 = vpop.f32.mrb[47].mxu0 }
0x27f6   :  { %v2312_v19 = vmax.f32 %v2310_v2, %v2311_v4  ;;  %v2199_v2 = vmul.f32 %v2198_v39, %v5434_v42 }
0x27f8   :  { %v2313_v20 = vrot.slane %v2312_v19, 4  ;;  %v2203_v4 = vadd.f32 %v2202_v55, %v2199_v2 }
0x27fa   :  { %v2314_v21 = vmax.f32 %v2312_v19, %v2313_v20 }
0x27fc   :  { %v2315_v60 = vrot.slane %v2314_v21, 2 }
0x27fe   :  { %v2316_v22 = vmax.f32 %v2314_v21, %v2315_v60 }
0x2800   :  { %v2317_v23 = vrot.slane %v2316_v22, 1 }
0x2802   :  { %v2318_v24 = vmax.f32 %v2316_v22, %v2317_v23 }
0x2804   :  { %v2319_v25 = vsub.f32 %v2303_v53, %v2318_v24  ;;  %v2320_v26 = vsub.f32 %v2306_v0, %v2318_v24 }
0x2806   :  { %v2321_v27 = vmul.f32 1.442695, %v2319_v25  ;;  %v2323_v28 = vmul.f32 1.442695, %v2320_v26 }
0x2808   :  { %4461 = vpow2.f32 %v2321_v27 }
0x2809   :  { %4463 = vpow2.f32 %v2323_v28 }
0x2812   :  { %v4462_v29 = vpop.eup %4461 }
0x2813   :  { %v4464_v30 = vpop.eup %4463 }
0x2814   :  { %v4226_v31 = vpack.c.bf16 %v4464_v30, %v4462_v29 }
0x2816   :  { %4227 = vmatprep.subr.bf16.mxu0 %v4226_v31 }
0x2817   :  { %4229 = vmatpush3.bf16.msra.mxu0 %v4226_v31 }
0x2818   :  { %4039 = vmatprep.subr.bf16.mxu0 %v4580_v3 }
0x281a   :  { %4030 = vmatmul.mubr.msk.f32.vlgmr.msra.gmra.mrb[34].mxu0 %vm252_vm3, %v5203_v37 }
0x281b   :  { %4040 = vmatpush3.bf16.msra.mxu0 %v5247_v34  ;;  %4049 = vmatprep.mubr.msk.bf16.mxu0 %vm4581_vm1, %v4580_v3 }
0x281c   :  { %4041 = vmatprep.subr.bf16.mxu0 %v4580_v3 }
0x281f   :  { %4042 = vmatpush3.bf16.msra.mxu0 %v5253_v14 }
0x2820   :  { %4043 = vmatprep.subr.bf16.mxu0 %v4580_v3 }
0x2823   :  { %4044 = vmatpush3.bf16.msra.mxu0 %v5260_v10 }
0x2824   :  { %4045 = vmatprep.subr.bf16.mxu0 %v4580_v3 }
0x2827   :  { %4046 = vmatpush3.bf16.msra.mxu0 %v5267_v15 }
0x2828   :  { %4047 = vmatprep.subr.bf16.mxu0 %v4580_v3 }
0x282b   :  { %4048 = vmatpush3.bf16.msra.mxu0 %v5275_v46 }
0x282c   :  { %4079 = vmatprep.subr.bf16.mxu0 %v4580_v3 }
0x28ed   :  { %v4031_v32 = vpop.f32.mrb[34].mxu0 }
0x28ee   :  { %4465 = vrcp.f32 %v4031_v32  ;;  %v2391_v35 = vpop.f32.mrb[35].mxu0 }
0x28ef   :  { %4467 = vrcp.f32 %v2391_v35 }
0x28f8   :  { %v4466_v43 = vpop.eup %4465 }
0x28f9   :  { %v4468_v50 = vpop.eup %4467  ;;  %v2403_v53 = vmul.f32 %v4466_v43, %v4464_v30 }
0x28fa   :  { %v2401_v0 = vmul.f32 %v4468_v50, %v4462_v29 }
0x28fb   :  { %2411 = vperm.xlu0 %4263, %v2403_v53  }
0x28fc   :  { %2406 = vperm.xlu1 %4262, %v2401_v0  }
0x2900   :  { %2488 = vperm.xlu1 %4262, %v2203_v4  }
0x297a   :  { %v2412_v38 = vpop.permute.xlu0 %2411 }
0x297b   :  { %v2415_v51 = vmul.f32 %v2412_v38, %v5134_v47  ;;  %v2407_v19 = vpop.permute.xlu1 %2406 }
0x297c   :  { %v2414_v20 = vmul.f32 %v2407_v19, %v5132_v45 }
0x297e   :  { %v4231_v21 = vpack.c.bf16 %v2415_v51, %v2414_v20 }
0x297f   :  { %v2489_v27 = vpop.permute.xlu1 %2488 }
0x2980   :  { %4232 = vmatpush3.bf16.msra.mxu1 %v4231_v21  ;;  %v2491_v28 = vmul.f32 %v5293_v5, %v2489_v27 }
0x2981   :  { %4053 = vmatprep.subr.bf16.mxu1 %v4580_v3 }
0x2982   :  { %v2492_v29 = vadd.f32 %v5299_v18, %v2491_v28 }
0x2983   :  { %4037 = vmatmul.mubr.msk.f32.vlgmr.msra.gmra.mrb[26].mxu1 %vm252_vm3, %v5219_v8 }
0x2984   :  { %4054 = vmatpush3.bf16.msra.mxu1 %v5224_v33  ;;  %4057 = vmatprep.mubr.msk.bf16.mxu1 %vm4581_vm1, %v4580_v3  ;;  %v2493_v30 = vmax.f32 %v2492_v29, 0.0 }
0x2985   :  { %4055 = vmatprep.subr.bf16.mxu1 %v4580_v3 }
0x2988   :  { %4056 = vmatpush3.bf16.msra.mxu1 %v5233_v13 }
0x2989   :  { %4061 = vmatprep.subr.bf16.mxu1 %v4580_v3 }
0x298b   :  { %4058 = vmatmul.mubr.msk.bf16.vlgmr.msra.gmra.mrb[36].mxu1 %vm471_vm5, %v5387_v17 }
0x298c   :  { %4062 = vmatpush3.bf16.msra.mxu1 %v5328_v52  ;;  %4075 = vmatprep.mubr.msk.bf16.mxu1 %vm4581_vm1, %v4580_v3 }
0x298d   :  { %4063 = vmatprep.subr.bf16.mxu1 %v4580_v3 }
0x2990   :  { %4064 = vmatpush3.bf16.msra.mxu1 %v5334_v54 }
0x2991   :  { %4065 = vmatprep.subr.bf16.mxu1 %v4580_v3 }
0x2994   :  { %4066 = vmatpush3.bf16.msra.mxu1 %v5342_v59 }
0x2995   :  { %4067 = vmatprep.subr.bf16.mxu1 %v4580_v3 }
0x2998   :  { %4068 = vmatpush3.bf16.msra.mxu1 %v5349_v56 }
0x2999   :  { %4069 = vmatprep.subr.bf16.mxu1 %v4580_v3 }
0x299c   :  { %4070 = vmatpush3.bf16.msra.mxu1 %v5356_v61 }
0x299d   :  { %4071 = vmatprep.subr.bf16.mxu1 %v4580_v3 }
0x29a0   :  { %4072 = vmatpush3.bf16.msra.mxu1 %v5364_v62 }
0x29a1   :  { %4073 = vmatprep.subr.bf16.mxu1 %v4580_v3 }
0x29a4   :  { %4074 = vmatpush3.bf16.msra.mxu1 %v5371_v7 }
0x29a5   :  { %4237 = vmatprep.subr.bf16.mxu1 %v4586_v6 }
0x2a56   :  { %v2482_v17 = vpop.f32.mrb[26].mxu1 }
0x2a57   :  { %2495 = vrot.lane.b32.xlu0 %v2482_v17, %s4587_s12  ;;  %v4038_v60 = vpop.f32.mrb[27].mxu1 }
0x2a5e   :  { %v2577_v22 = vpop.f32.mrb[36].mxu1 }
0x2a5f   :  { %v2578_v23 = vadd.f32 %v5286_v63, %v2577_v22  ;;  %v4059_v24 = vpop.f32.mrb[37].mxu1 }
0x2a60   :  { %v2580_v25 = vpop.f32.mrb[38].mxu1 }
0x2a61   :  { %2591 = vrot.lane.b32.xlu1 %v2578_v23, %s4583_s1  ;;  %v4060_v26 = vpop.f32.mrb[39].mxu1 }
0x2ac9   :  { %v2496_v31 = vpop.permute.xlu0 %2495 }
0x2aca   :  { %v2498_v32 = vsel %vm252_vm3, %v2493_v30, %v2496_v31 }
0x2acb   :  { %v2499_v35 = vpack.c.bf16 %v2498_v32, %v2498_v32 }
0x2acd   :  { %4050 = vmatmul.mubr.msk.bf16.vlgmr.msra.gmra.mrb[48].mxu0 %vm1951_vm4, %v2499_v35 }
0x2ace   :  { %4080 = vmatpush3.bf16.msra.mxu0 %v5144_v44  ;;  %4083 = vmatprep.mubr.msk.bf16.mxu0 %vm4581_vm1, %v4580_v3 }
0x2acf   :  { %4081 = vmatprep.subr.bf16.mxu0 %v4580_v3 }
0x2ad2   :  { %4082 = vmatpush3.bf16.msra.mxu0 %v5150_v49 }
0x2ad3   :  { %4087 = vmatprep.subr.bf16.mxu0 %v4580_v3  ;;  %v2592_v38 = vpop.permute.xlu1 %2591 }
0x2ba0   :  { %v2537_v41 = vpop.f32.mrb[48].mxu0 }
0x2ba1   :  { %v2538_v39 = vadd.f32 %v5318_v48, %v2537_v41  ;;  %v4051_v43 = vpop.f32.mrb[49].mxu0 }
0x2ba2   :  { %v2540_v50 = vpop.f32.mrb[50].mxu0 }
0x2ba3   :  { %v2583_v53 = vadd.f32 %v2578_v23, %v2538_v39  ;;  %v4052_v55 = vpop.f32.mrb[51].mxu0 }
0x2ba5   :  { %v3755_v0 = vmul.f32 -1.442695, %v2583_v53 }
0x2ba7   :  { %4469 = vpow2.f32 %v3755_v0 }
0x2bb1   :  { %v4470_v2 = vpop.eup %4469 }
0x2bb2   :  { %v2587_v44 = vadd.f32 1.0, %v4470_v2 }
0x2bb4   :  { %4471 = vrcp.f32 %v2587_v44 }
0x2bbe   :  { %v4472_v4 = vpop.eup %4471 }
0x2bbf   :  { %v2594_v51 = vmul.f32 %v4472_v4, %v2592_v38 }
0x2bc1   :  { %2596 = vrot.lane.b32.xlu0 %v2594_v51, %s4583_s1 }
0x2c33   :  { %v2597_v49 = vpop.permute.xlu0 %2596 }
0x2c34   :  { %v2599_v19 = vadd.f32 %v2597_v49, %v2538_v39 }
0x2c36   :  { %4473 = vtanh.f32 %v2599_v19 }
0x2c40   :  { %v4474_v20 = vpop.eup %4473 }
0x2c41   :  { %v2601_v21 = vsub.f32 %v5375_v1, %v4474_v20 }
0x2c43   :  { %2603 = vrot.lane.b32.xlu1 %v2601_v21, %s4584_s6 }
0x2cb5   :  { %v2604_v60 = vpop.permute.xlu1 %2603 }
0x2cb6   :  { %v2606_v22 = vmul.f32 %v4472_v4, %v2604_v60 }
0x2cb8   :  { %2608 = vrot.lane.b32.xlu0 %v2606_v22, %s4585_s2 }
0x2d2a   :  { %v2609_v23 = vpop.permute.xlu0 %2608 }
0x2d2b   :  { %v5485_v24 = vadd.f32 %v4474_v20, %v2609_v23 }
0x2d2d   :  { %v2683_v25 = vpack.c.bf16 %v5485_v24, %v5485_v24  ;;  %2613 = vrot.lane.b32.xlu0 %v5485_v24, %s4583_s1 }
0x2d2f   :  { %2685 = vrot.lane.b32.xlu1 %v2683_v25, %s4583_s1 }
0x2d31   :  { %2620 = vrot.lane.b32.xlu0 %v2493_v30, %s4584_s6 }
0x2d33   :  { %2616 = vrot.lane.b32.xlu1 %v2482_v17, %s4585_s2 }
0x2d9f   :  { %v2614_v1 = vpop.permute.xlu0 %2613 }
0x2da1   :  { %v5494_v26 = vpop.permute.xlu1 %2685 }
0x2da2   :  { %4084 = vmatmul.mubr.msk.bf16.vlgmr.msra.gmra.mrb[52].mxu0 %vm471_vm5, %v5494_v26 }
0x2da3   :  { %4088 = vmatpush3.bf16.msra.mxu0 %v5175_v11  ;;  %4091 = vmatprep.mubr.msk.bf16.mxu0 %vm4581_vm1, %v4580_v3  ;;  %v2621_v28 = vpop.permute.xlu0 %2620 }
0x2da4   :  { %4089 = vmatprep.subr.bf16.mxu0 %v4580_v3 }
0x2da5   :  { %v2617_v27 = vpop.permute.xlu1 %2616 }
0x2da6   :  { %v2623_v29 = vsel %vm471_vm5, %v2614_v1, %v2617_v27 }
0x2da7   :  { %v2624_v30 = vsel %vm2099_vm6, %v2623_v29, %v2621_v28  ;;  %4090 = vmatpush3.bf16.msra.mxu0 %v5181_v12 }
0x2da8   :  { %v2625_v17 = vpack.c.bf16 %v2624_v30, %v2624_v30 }
0x2daa   :  { %4076 = vmatmul.mubr.msk.bf16.vlgmr.msra.gmra.mrb[40].mxu1 %vm2150_vm7, %v2625_v17 }
0x2dab   :  { %4106 = vmatprep.mubr.msk.f32.mxu1 %vm4581_vm1, %v4580_v3 }
0x2e75   :  { %v2724_v11 = vpop.f32.mrb[52].mxu0 }
0x2e76   :  { %v2731_v31 = vrot.slane %v2724_v11, 6  ;;  %v2733_v32 = vrot.slane %v2724_v11, 4  ;;  %v4085_v35 = vpop.f32.mrb[53].mxu0  ;;  %v2735_v39 = vrot.slane %v2724_v11, 2 }
0x2e77   :  { %v2727_v41 = vpop.f32.mrb[54].mxu0 }
0x2e78   :  { %v2737_v43 = vsel %vm183_vm0, %v2724_v11, %v2731_v31  ;;  %v4086_v50 = vpop.f32.mrb[55].mxu0 }
0x2e79   :  { %v2738_v53 = vsel %vm1635_vm14, %v2737_v43, %v2733_v32 }
0x2e7a   :  { %v2739_v55 = vsel %vm1637_vm15, %v2738_v53, %v2735_v39 }
0x2e7b   :  { %v2740_v12 = vadd.f32 %v2739_v55, %v5158_v57  ;;  %v2741_v0 = vadd.f32 %v2739_v55, %v5160_v58  ;;  %v2676_v55 = vstv %s2675_s5 }
0x2e7d   :  { %4475 = vtanh.f32 %v2740_v12  ;;  %v2663_v2 = vpop.f32.mrb[40].mxu1  ;;  %v4589_v12 = vmov 1  }
0x2e7e   :  { %4477 = vtanh.f32 %v2741_v0  ;;  %v4077_v44 = vpop.f32.mrb[41].mxu1  ;;  %v2673_v0 = vstv %s2672_s4 }
0x2e7f   :  { %v2666_v4 = vpop.f32.mrb[42].mxu1 }
0x2e80   :  { %v4078_v38 = vpop.f32.mrb[43].mxu1 }
0x2e87   :  { %v4476_v51 = vpop.eup %4475 }
0x2e88   :  { %v4478_v49 = vpop.eup %4477 }
0x2e89   :  { %v2744_v19 = vpack.c.bf16 %v4478_v49, %v4476_v51 }
0x2e8b   :  { %4092 = vmatmul.mubr.msk.bf16.vlgmr.msra.gmra.mrb[56].mxu0 %vm471_vm5, %v2744_v19 }
0x2e8c   :  { %4099 = vmatprep.mubr.msk.f32.mxu0 %vm252_vm3, %v5194_v16 }
0x2f5e   :  { %v2782_v20 = vpop.f32.mrb[56].mxu0 }
0x2f5f   :  { %v4093_v21 = vpop.f32.mrb[57].mxu0  ;;  %v2789_v22 = vsel %vm1700_vm2, %v2782_v20, -inf }
0x2f60   :  { %v2785_v60 = vpop.f32.mrb[58].mxu0 }
0x2f61   :  { %v2790_v23 = vsel %vm1700_vm2, %v2785_v60, -inf  ;;  %v4094_v25 = vpop.f32.mrb[59].mxu0 }
0x2f62   :  { %v2791_v1 = vmax.f32 %v2789_v22, %v2790_v23 }
0x2f64   :  { %v2792_v27 = vrot.slane %v2791_v1, 4 }
0x2f66   :  { %v2793_v28 = vmax.f32 %v2791_v1, %v2792_v27 }
0x2f68   :  { %v2794_v29 = vrot.slane %v2793_v28, 2 }
0x2f6a   :  { %v2795_v30 = vmax.f32 %v2793_v28, %v2794_v29 }
0x2f6c   :  { %v2796_v17 = vrot.slane %v2795_v30, 1 }
0x2f6e   :  { %v2797_v11 = vmax.f32 %v2795_v30, %v2796_v17 }
0x2f70   :  { %v2798_v31 = vsub.f32 %v2782_v20, %v2797_v11  ;;  %v2799_v32 = vsub.f32 %v2785_v60, %v2797_v11 }
0x2f72   :  { %v2800_v35 = vmul.f32 1.442695, %v2798_v31  ;;  %v2802_v41 = vmul.f32 1.442695, %v2799_v32 }
0x2f74   :  { %4479 = vpow2.f32 %v2800_v35 }
0x2f75   :  { %4481 = vpow2.f32 %v2802_v41 }
0x2f7e   :  { %v4480_v16 = vpop.eup %4479 }
0x2f7f   :  { %v4482_v39 = vpop.eup %4481 }
0x2f80   :  { %v4233_v43 = vpack.c.bf16 %v4482_v39, %v4480_v16 }
0x2f82   :  { %4234 = vmatprep.subr.bf16.mxu0 %v4233_v43 }
0x2f83   :  { %4236 = vmatpush3.bf16.msra.mxu0 %v4233_v43 }
0x2f84   :  { %4109 = vmatprep.subr.bf16.mxu0 %v4580_v3 }
0x2f86   :  { %4100 = vmatmul.mubr.msk.f32.vlgmr.msra.gmra.mrb[60].mxu0 %vm252_vm3, %v5203_v37 }
0x2f87   :  { %4110 = vmatpush3.bf16.msra.mxu0 %v5247_v34  ;;  %4119 = vmatprep.mubr.msk.bf16.mxu0 %vm4581_vm1, %v4580_v3 }
0x2f88   :  { %4111 = vmatprep.subr.bf16.mxu0 %v4580_v3 }
0x2f8b   :  { %4112 = vmatpush3.bf16.msra.mxu0 %v5253_v14 }
0x2f8c   :  { %4113 = vmatprep.subr.bf16.mxu0 %v4580_v3 }
0x2f8f   :  { %4114 = vmatpush3.bf16.msra.mxu0 %v5260_v10 }
0x2f90   :  { %4115 = vmatprep.subr.bf16.mxu0 %v4580_v3 }
0x2f93   :  { %4116 = vmatpush3.bf16.msra.mxu0 %v5267_v15  ;;  %v5534_v15 = vadd.f32 %v5426_v36, %v2663_v2  ;;  %v2674_v2 = vmul.f32 %v2673_v0, %v5434_v42 }
0x2f94   :  { %4117 = vmatprep.subr.bf16.mxu0 %v4580_v3 }
0x2f97   :  { %4118 = vmatpush3.bf16.msra.mxu0 %v5275_v46  ;;  %v2677_v46 = vmul.f32 %v2676_v55, %v5534_v15 }
0x2f98   :  { %4149 = vmatprep.subr.bf16.mxu0 %v4580_v3 }
0x3059   :  { %v4101_v37 = vpop.f32.mrb[60].mxu0 }
0x305a   :  { %4483 = vrcp.f32 %v4101_v37  ;;  %v2870_v34 = vpop.f32.mrb[61].mxu0 }
0x305b   :  { %4485 = vrcp.f32 %v2870_v34 }
0x3064   :  { %v4484_v14 = vpop.eup %4483 }
0x3065   :  { %v4486_v10 = vpop.eup %4485  ;;  %v2882_v50 = vmul.f32 %v4484_v14, %v4482_v39 }
0x3066   :  { %v2880_v53 = vmul.f32 %v4486_v10, %v4480_v16 }
0x3067   :  { %2890 = vperm.xlu0 %4263, %v2882_v50  }
0x3068   :  { %2885 = vperm.xlu1 %4262, %v2880_v53   ;;  %v4521_v53 = vld [vmem:[%s5759_s13] sm:$0xff]  }
0x306b   :  { %4264 = vset.pattern.permute.xlu0 %v4589_v12 }
0x306c   :  { %2679 = vrot.lane.b32.xlu1 %v2677_v46, %s4588_s8 }
0x30e6   :  { %v2891_v44 = vpop.permute.xlu0 %2890 }
0x30e7   :  { %v2894_v4 = vmul.f32 %v2891_v44, %v5134_v47  ;;  %v2886_v38 = vpop.permute.xlu1 %2885  ;;  %v4522_v44 = vld [vmem:[%s5759_s13 + $0x8] sm:$0xff]   ;;  %s3154_s13 = ssub.f32 1.0, %s3151_s27 }
0x30e8   :  { %v2893_v51 = vmul.f32 %v2886_v38, %v5132_v45 }
0x30ea   :  { %v4238_v49 = vpack.c.bf16 %v2894_v4, %v2893_v51 }
0x30eb   :  { %v2680_v19 = vpop.permute.xlu1 %2679 }
0x30ec   :  { %v2682_v20 = vadd.f32 %v2680_v19, %v2674_v2  ;;  %4239 = vmatpush3.bf16.msra.mxu1 %v4238_v49 }
0x30ed   :  { %4123 = vmatprep.subr.bf16.mxu1 %v4580_v3 }
0x30ee   :  { %2967 = vperm.xlu0 %4264, %v2682_v20  }
0x30ef   :  { %4107 = vmatmul.mubr.msk.f32.vlgmr.msra.gmra.mrb[44].mxu1 %vm252_vm3, %v5219_v8 }
0x30f0   :  { %4124 = vmatpush3.bf16.msra.mxu1 %v5224_v33  ;;  %4127 = vmatprep.mubr.msk.bf16.mxu1 %vm4581_vm1, %v4580_v3 }
0x30f1   :  { %4125 = vmatprep.subr.bf16.mxu1 %v4580_v3 }
0x30f2   :  { %4265 = vset.pattern.permute.xlu0 %v4582_v9 }
0x30f4   :  { %4126 = vmatpush3.bf16.msra.mxu1 %v5233_v13 }
0x30f5   :  { %4131 = vmatprep.subr.bf16.mxu1 %v4580_v3 }
0x30f7   :  { %4128 = vmatmul.mubr.msk.bf16.vlgmr.msra.gmra.mrb[48].mxu1 %vm471_vm5, %v5494_v26 }
0x30f8   :  { %4132 = vmatpush3.bf16.msra.mxu1 %v5328_v52  ;;  %4145 = vmatprep.mubr.msk.bf16.mxu1 %vm4581_vm1, %v4580_v3 }
0x30f9   :  { %4133 = vmatprep.subr.bf16.mxu1 %v4580_v3 }
0x30fc   :  { %4134 = vmatpush3.bf16.msra.mxu1 %v5334_v54 }
0x30fd   :  { %4135 = vmatprep.subr.bf16.mxu1 %v4580_v3 }
0x3100   :  { %4136 = vmatpush3.bf16.msra.mxu1 %v5342_v59 }
0x3101   :  { %4137 = vmatprep.subr.bf16.mxu1 %v4580_v3 }
0x3104   :  { %4138 = vmatpush3.bf16.msra.mxu1 %v5349_v56 }
0x3105   :  { %4139 = vmatprep.subr.bf16.mxu1 %v4580_v3 }
0x3108   :  { %4140 = vmatpush3.bf16.msra.mxu1 %v5356_v61 }
0x3109   :  { %4141 = vmatprep.subr.bf16.mxu1 %v4580_v3 }
0x310c   :  { %4142 = vmatpush3.bf16.msra.mxu1 %v5364_v62 }
0x310d   :  { %4143 = vmatprep.subr.bf16.mxu1 %v4580_v3 }
0x3110   :  { %4144 = vmatpush3.bf16.msra.mxu1 %v5371_v7 }
0x3111   :  { %4244 = vmatprep.subr.bf16.mxu1 %v4586_v6 }
0x316d   :  { %v2968_v54 = vpop.permute.xlu0 %2967 }
0x316e   :  { %v2970_v26 = vmul.f32 %v5293_v5, %v2968_v54  ;;  %v4520_v5 = vld [vmem:[%s5757_s11 + $0x8] sm:$0xff]  }
0x3170   :  { %v2971_v21 = vadd.f32 %v5299_v18, %v2970_v26 }
0x3172   :  { %v2972_v60 = vmax.f32 %v2971_v21, 0.0 }
0x31c2   :  { %v2961_v9 = vpop.f32.mrb[44].mxu1 }
0x31c3   :  { %2974 = vrot.lane.b32.xlu1 %v2961_v9, %s4587_s12  ;;  %v4108_v45 = vpop.f32.mrb[45].mxu1 }
0x31ca   :  { %v3056_v47 = vpop.f32.mrb[48].mxu1 }
0x31cb   :  { %v3057_v8 = vadd.f32 %v5286_v63, %v3056_v47  ;;  %v4129_v33 = vpop.f32.mrb[49].mxu1  ;;  %v4519_v63 = vld [vmem:[%s5757_s11] sm:$0xff]  }
0x31cc   :  { %v3059_v13 = vpop.f32.mrb[50].mxu1 }
0x31cd   :  { %3070 = vrot.lane.b32.xlu1 %v3057_v8, %s4583_s1  ;;  %v4130_v52 = vpop.f32.mrb[51].mxu1 }
0x3235   :  { %v2975_v22 = vpop.permute.xlu1 %2974 }
0x3236   :  { %v2977_v6 = vsel %vm252_vm3, %v2972_v60, %v2975_v22 }
0x3237   :  { %v2978_v23 = vpack.c.bf16 %v2977_v6, %v2977_v6 }
0x3239   :  { %4120 = vmatmul.mubr.msk.bf16.vlgmr.msra.gmra.mrb[64].mxu0 %vm1951_vm4, %v2978_v23  ;;  %v4523_v23 = vld [vmem:[%s5760_s14] sm:$0xff] }
0x323a   :  { %4150 = vmatpush3.bf16.msra.mxu0 %v4519_v63  ;;  %4153 = vmatprep.mubr.msk.bf16.mxu0 %vm4581_vm1, %v4580_v3 }
0x323b   :  { %4151 = vmatprep.subr.bf16.mxu0 %v4580_v3 }
0x323e   :  { %4152 = vmatpush3.bf16.msra.mxu0 %v4520_v5 }
0x323f   :  { %4157 = vmatprep.subr.bf16.mxu0 %v4580_v3  ;;  %v3071_v32 = vpop.permute.xlu1 %3070 }
0x330c   :  { %v3016_v18 = vpop.f32.mrb[64].mxu0 }
0x330d   :  { %v3017_v25 = vadd.f32 %v5318_v48, %v3016_v18  ;;  %v4121_v1 = vpop.f32.mrb[65].mxu0 }
0x330e   :  { %v3019_v27 = vpop.f32.mrb[66].mxu0 }
0x330f   :  { %v3062_v28 = vadd.f32 %v3057_v8, %v3017_v25  ;;  %v4122_v29 = vpop.f32.mrb[67].mxu0 }
0x3311   :  { %v3765_v30 = vmul.f32 -1.442695, %v3062_v28 }
0x3313   :  { %4487 = vpow2.f32 %v3765_v30 }
0x331d   :  { %v4488_v17 = vpop.eup %4487 }
0x331e   :  { %v3066_v11 = vadd.f32 1.0, %v4488_v17 }
0x3320   :  { %4489 = vrcp.f32 %v3066_v11 }
0x332a   :  { %v4490_v31 = vpop.eup %4489 }
0x332b   :  { %v3073_v35 = vmul.f32 %v4490_v31, %v3071_v32 }
0x332d   :  { %3075 = vrot.lane.b32.xlu0 %v3073_v35, %s4583_s1 }
0x339f   :  { %v3076_v41 = vpop.permute.xlu0 %3075 }
0x33a0   :  { %v3078_v16 = vadd.f32 %v3076_v41, %v3017_v25 }
0x33a2   :  { %4491 = vtanh.f32 %v3078_v16 }
0x33ac   :  { %v4492_v39 = vpop.eup %4491 }
0x33ad   :  { %v3080_v48 = vsub.f32 %v5485_v24, %v4492_v39 }
0x33af   :  { %3082 = vrot.lane.b32.xlu1 %v3080_v48, %s4584_s6 }
0x3421   :  { %v3083_v43 = vpop.permute.xlu1 %3082 }
0x3422   :  { %v3085_v37 = vmul.f32 %v4490_v31, %v3083_v43  ;;  %v4524_v43 = vld [vmem:[%s5760_s14 + $0x8] sm:$0xff] }
0x3424   :  { %3087 = vrot.lane.b32.xlu0 %v3085_v37, %s4585_s2  ;;  %v4525_v37 = vld [vmem:[%s5764_s18] sm:$0xff]  }
0x3496   :  { %v3088_v34 = vpop.permute.xlu0 %3087 }
0x3497   :  { %v5591_v14 = vadd.f32 %v4492_v39, %v3088_v34  ;;  %v4526_v34 = vld [vmem:[%s5764_s18 + $0x8] sm:$0xff]  }
0x3499   :  { %v3162_v10 = vpack.c.bf16 %v5591_v14, %v5591_v14  ;;  %3092 = vrot.lane.b32.xlu0 %v5591_v14, %s4583_s1 }
0x349b   :  { %3164 = vrot.lane.b32.xlu1 %v3162_v10, %s4583_s1  ;;  %v4527_v10 = vld [vmem:[%s5764_s18 + $0x10] sm:$0xff]  }
0x349d   :  { %3099 = vrot.lane.b32.xlu0 %v2972_v60, %s4584_s6 }
0x349f   :  { %3095 = vrot.lane.b32.xlu1 %v2961_v9, %s4585_s2 }
0x350b   :  { %v3093_v24 = vpop.permute.xlu0 %3092 }
0x350d   :  { %v5600_v50 = vpop.permute.xlu1 %3164 }
0x350e   :  { %4154 = vmatmul.mubr.msk.bf16.vlgmr.msra.gmra.mrb[68].mxu0 %vm471_vm5, %v5600_v50 }
0x350f   :  { %4158 = vmatpush3.bf16.msra.mxu0 %v4521_v53  ;;  %4161 = vmatprep.mubr.msk.bf16.mxu0 %vm4581_vm1, %v4580_v3  ;;  %v3100_v46 = vpop.permute.xlu0 %3099  ;;  %v4529_v53 = vld [vmem:[%s5764_s18 + $0x20] sm:$0xff]  }
0x3510   :  { %4159 = vmatprep.subr.bf16.mxu0 %v4580_v3 }
0x3511   :  { %v3096_v55 = vpop.permute.xlu1 %3095 }
0x3512   :  { %v3102_v12 = vsel %vm471_vm5, %v3093_v24, %v3096_v55  ;;  %v4528_v24 = vld [vmem:[%s5764_s18 + $0x18] sm:$0xff]   ;;  %s4590_s18 = smov 2  }
0x3513   :  { %v3103_v0 = vsel %vm2099_vm6, %v3102_v12, %v3100_v46  ;;  %4160 = vmatpush3.bf16.msra.mxu0 %v4522_v44 }
0x3514   :  { %v3104_v4 = vpack.c.bf16 %v3103_v0, %v3103_v0 }
0x3516   :  { %4146 = vmatmul.mubr.msk.bf16.vlgmr.msra.gmra.mrb[52].mxu1 %vm2150_vm7, %v3104_v4 }
0x3517   :  { %4176 = vmatprep.mubr.msk.f32.mxu1 %vm4581_vm1, %v4580_v3 }
0x35e1   :  { %v3203_v38 = vpop.f32.mrb[68].mxu0 }
0x35e2   :  { %v3210_v51 = vrot.slane %v3203_v38, 6  ;;  %v3212_v2 = vrot.slane %v3203_v38, 4  ;;  %v4155_v49 = vpop.f32.mrb[69].mxu0  ;;  %v3214_v20 = vrot.slane %v3203_v38, 2 }
0x35e3   :  { %v3206_v19 = vpop.f32.mrb[70].mxu0  ;;  %v4591_v49 = vmov 2  }
0x35e4   :  { %v3216_v9 = vsel %vm183_vm0, %v3203_v38, %v3210_v51  ;;  %v4156_v45 = vpop.f32.mrb[71].mxu0  ;;  %v3155_v51 = vstv %s3154_s13  ;;  %v3152_v19 = vstv %s3151_s27  ;;  %vm3640_vm0 = vcmask 15360  }
0x35e5   :  { %v3217_v47 = vsel %vm1635_vm14, %v3216_v9, %v3212_v2  ;;  %v4530_v9 = vld [vmem:[#allocation2 + $0x8] sm:$0xff] }
0x35e6   :  { %v3218_v8 = vsel %vm1637_vm15, %v3217_v47, %v3214_v20 }
0x35e7   :  { %v3219_v33 = vadd.f32 %v3218_v8, %v5158_v57  ;;  %v3220_v13 = vadd.f32 %v3218_v8, %v5160_v58  ;;  %v4531_v8 = vld [vmem:[#allocation2] sm:$0xff] }
0x35e9   :  { %4493 = vtanh.f32 %v3219_v33  ;;  %v5623_v52 = vpop.f32.mrb[52].mxu1 }
0x35ea   :  { %4495 = vtanh.f32 %v3220_v13  ;;  %v4147_v54 = vpop.f32.mrb[53].mxu1  ;;  %v5660_v4 = vadd.f32 %v5426_v36, %v5623_v52  ;;  %v3153_v13 = vmul.f32 %v3152_v19, %v5434_v42  ;;  %v4534_v42 = vld [vmem:[%s5766_s20 + $0x8] sm:$0xff]  }
0x35eb   :  { %v3145_v26 = vpop.f32.mrb[54].mxu1 }
0x35ec   :  { %v4148_v21 = vpop.f32.mrb[55].mxu1  ;;  %v3156_v2 = vmul.f32 %v3155_v51, %v5660_v4 }
0x35ed   :  { %v4532_v21 = vld [vmem:[%s5761_s15] sm:$0x3] }
0x35f3   :  { %v4494_v60 = vpop.eup %4493 }
0x35f4   :  { %v4496_v22 = vpop.eup %4495 }
0x35f5   :  { %v3223_v6 = vpack.c.bf16 %v4496_v22, %v4494_v60  ;;  %v4533_v60 = vld [vmem:[%s5766_s20] sm:$0xff]  }
0x35f6   :  { %v4535_v22 = vld [vmem:[%s5768_s22] sm:$0xff]  }
0x35f7   :  { %4162 = vmatmul.mubr.msk.bf16.vlgmr.msra.gmra.mrb[72].mxu0 %vm471_vm5, %v3223_v6  ;;  %v4536_v6 = vld [vmem:[%s5768_s22 + $0x8] sm:$0xff]  }
0x35f8   :  { %4169 = vmatprep.mubr.msk.f32.mxu0 %vm252_vm3, %v4523_v23 }
0x36ca   :  { %v3261_v57 = vpop.f32.mrb[72].mxu0 }
0x36cb   :  { %v4163_v58 = vpop.f32.mrb[73].mxu0  ;;  %v3268_v5 = vsel %vm1700_vm2, %v3261_v57, -inf }
0x36cc   :  { %v3264_v63 = vpop.f32.mrb[74].mxu0 }
0x36cd   :  { %v3269_v18 = vsel %vm1700_vm2, %v3264_v63, -inf  ;;  %v4164_v25 = vpop.f32.mrb[75].mxu0 }
0x36ce   :  { %v3270_v1 = vmax.f32 %v3268_v5, %v3269_v18  ;;  %v4539_v5 = vld [vmem:[%s5763_s17] ss:$0 sm:$0xff]  ;;  %s4593_s17 = smov [#allocation7]  }
0x36d0   :  { %v3271_v27 = vrot.slane %v3270_v1, 4 }
0x36d2   :  { %v3272_v28 = vmax.f32 %v3270_v1, %v3271_v27 }
0x36d4   :  { %v3273_v29 = vrot.slane %v3272_v28, 2 }
0x36d6   :  { %v3274_v30 = vmax.f32 %v3272_v28, %v3273_v29 }
0x36d8   :  { %v3275_v17 = vrot.slane %v3274_v30, 1 }
0x36da   :  { %v3276_v11 = vmax.f32 %v3274_v30, %v3275_v17  ;;  %v4540_v30 = vld [vmem:[%s5765_s19] ss:$0 sm:$0xff]  ;;  %s3652_s19 = sshll.u32 %s4593_s17, 4  ;;  %s3653_s19 = int_to_ptr.vmem [resolvable:$true] %s3652_s19 }
0x36db   :  { %p4558_p9 = scmp.lt.s32.totalorder %s3653_s19, %s3653_s19 }
0x36dc   :  { %v3277_v31 = vsub.f32 %v3261_v57, %v3276_v11  ;;  %v3278_v32 = vsub.f32 %v3264_v63, %v3276_v11 }
0x36de   :  { %v3279_v35 = vmul.f32 1.442695, %v3277_v31  ;;  %v3281_v41 = vmul.f32 1.442695, %v3278_v32 }
0x36e0   :  { %4497 = vpow2.f32 %v3279_v35 }
0x36e1   :  { %4499 = vpow2.f32 %v3281_v41 }
0x36ea   :  { %v4498_v16 = vpop.eup %4497 }
0x36eb   :  { %v4500_v39 = vpop.eup %4499 }
0x36ec   :  { %v4240_v48 = vpack.c.bf16 %v4500_v39, %v4498_v16 }
0x36ee   :  { %4241 = vmatprep.subr.bf16.mxu0 %v4240_v48 }
0x36ef   :  { %4243 = vmatpush3.bf16.msra.mxu0 %v4240_v48 }
0x36f0   :  { %4179 = vmatprep.subr.bf16.mxu0 %v4580_v3 }
0x36f2   :  { %4170 = vmatmul.mubr.msk.f32.vlgmr.msra.gmra.mrb[62].mxu0 %vm252_vm3, %v4524_v43 }
0x36f3   :  { %4180 = vmatpush3.bf16.msra.mxu0 %v4525_v37  ;;  %4189 = vmatprep.mubr.msk.bf16.mxu0 %vm4581_vm1, %v4580_v3 }
0x36f4   :  { %4181 = vmatprep.subr.bf16.mxu0 %v4580_v3 }
0x36f7   :  { %4182 = vmatpush3.bf16.msra.mxu0 %v4526_v34 }
0x36f8   :  { %4183 = vmatprep.subr.bf16.mxu0 %v4580_v3 }
0x36fb   :  { %4184 = vmatpush3.bf16.msra.mxu0 %v4527_v10 }
0x36fc   :  { %4185 = vmatprep.subr.bf16.mxu0 %v4580_v3 }
0x36ff   :  { %4186 = vmatpush3.bf16.msra.mxu0 %v4528_v24 }
0x3700   :  { %4187 = vmatprep.subr.bf16.mxu0 %v4580_v3 }
0x3703   :  { %4188 = vmatpush3.bf16.msra.mxu0 %v4529_v53 }
0x37c5   :  { %v4171_v55 = vpop.f32.mrb[62].mxu0 }
0x37c6   :  { %4501 = vrcp.f32 %v4171_v55  ;;  %v3349_v46 = vpop.f32.mrb[63].mxu0 }
0x37c7   :  { %4503 = vrcp.f32 %v3349_v46 }
0x37d0   :  { %v4502_v12 = vpop.eup %4501 }
0x37d1   :  { %v4504_v0 = vpop.eup %4503  ;;  %v3361_v44 = vmul.f32 %v4502_v12, %v4500_v39 }
0x37d2   :  { %v3359_v38 = vmul.f32 %v4504_v0, %v4498_v16 }
0x37d3   :  { %3369 = vperm.xlu0 %4265, %v3361_v44  }
0x37d4   :  { %3364 = vperm.xlu1 %4262, %v3359_v38  }
0x37d7   :  { %4267 = vset.pattern.permute.xlu0 %v4591_v49 }
0x37d8   :  { %3158 = vrot.lane.b32.xlu1 %v3156_v2, %s4590_s18 }
0x37d9   :  { %4266 = vset.pattern.permute.xlu1 %v4591_v49 }
0x3852   :  { %v3370_v20 = vpop.permute.xlu0 %3369 }
0x3853   :  { %v3373_v45 = vmul.f32 %v4530_v9, %v3370_v20  ;;  %v3365_v47 = vpop.permute.xlu1 %3364 }
0x3854   :  { %v3372_v33 = vmul.f32 %v4531_v8, %v3365_v47 }
0x3856   :  { %v4245_v52 = vpack.c.bf16 %v3373_v45, %v3372_v33 }
0x3857   :  { %v3159_v54 = vpop.permute.xlu1 %3158 }
0x3858   :  { %v3161_v26 = vadd.f32 %v3159_v54, %v3153_v13  ;;  %4246 = vmatpush3.bf16.msra.mxu1 %v4245_v52 }
0x3859   :  { %4193 = vmatprep.subr.bf16.mxu1 %v4580_v3 }
0x385a   :  { %3446 = vperm.xlu1 %4266, %v3161_v26  }
0x385b   :  { %4177 = vmatmul.mubr.msk.f32.vlgmr.msra.gmra.mrb[46].mxu1 %vm252_vm3, %v4532_v21 }
0x385c   :  { %4194 = vmatpush3.bf16.msra.mxu1 %v4533_v60  ;;  %4197 = vmatprep.mubr.msk.bf16.mxu1 %vm4581_vm1, %v4580_v3 }
0x385d   :  { %4195 = vmatprep.subr.bf16.mxu1 %v4580_v3 }
0x3860   :  { %4196 = vmatpush3.bf16.msra.mxu1 %v4534_v42 }
0x3861   :  { %4201 = vmatprep.subr.bf16.mxu1 %v4580_v3 }
0x3863   :  { %4198 = vmatmul.mubr.msk.bf16.vlgmr.msra.gmra.mrb[56].mxu1 %vm471_vm5, %v5600_v50 }
0x3864   :  { %4202 = vmatpush3.bf16.msra.mxu1 %v4535_v22  ;;  %4215 = vmatprep.mubr.msk.bf16.mxu1 %vm4581_vm1, %v4580_v3  ;;  %vm3642_vm1 = vcmask 23552  }
0x3865   :  { %4203 = vmatprep.subr.bf16.mxu1 %v4580_v3 }
0x3868   :  { %4204 = vmatpush3.bf16.msra.mxu1 %v4536_v6 }
0x3869   :  { %4205 = vmatprep.subr.bf16.mxu1 %v4580_v3 }
0x386c   :  { %4206 = vmatpush3.bf16.msra.mxu1 %v5342_v59 }
0x386d   :  { %4207 = vmatprep.subr.bf16.mxu1 %v4580_v3 }
0x3870   :  { %4208 = vmatpush3.bf16.msra.mxu1 %v5349_v56  ;;  %v4537_v56 = vld [vmem:[%s5767_s21] ss:$0 sm:$0xff] }
0x3871   :  { %4209 = vmatprep.subr.bf16.mxu1 %v4580_v3 }
0x3874   :  { %4210 = vmatpush3.bf16.msra.mxu1 %v5356_v61 }
0x3875   :  { %4211 = vmatprep.subr.bf16.mxu1 %v4580_v3 }
0x3878   :  { %4212 = vmatpush3.bf16.msra.mxu1 %v5364_v62 }
0x3879   :  { %4213 = vmatprep.subr.bf16.mxu1 %v4580_v3  ;;  %v4538_v3 = vld [vmem:[%s5762_s16] ss:$0 sm:$0xff]  ;;  %s4592_s16 = smov 3  }
0x387c   :  { %4214 = vmatpush3.bf16.msra.mxu1 %v5371_v7 }
0x38d9   :  { %v3447_v62 = vpop.permute.xlu1 %3446 }
0x38da   :  { %v3449_v7 = vmul.f32 %v4538_v3, %v3447_v62 }
0x38dc   :  { %v3450_v18 = vadd.f32 %v4539_v5, %v3449_v7 }
0x38de   :  { %v3451_v25 = vmax.f32 %v3450_v18, 0.0 }
0x392e   :  { %v3440_v50 = vpop.f32.mrb[46].mxu1 }
0x392f   :  { %3453 = vrot.lane.b32.xlu0 %v3440_v50, %s4587_s12  ;;  %v4178_v59 = vpop.f32.mrb[47].mxu1 }
0x3936   :  { %v3535_v23 = vpop.f32.mrb[56].mxu1 }
0x3937   :  { %v3536_v57 = vadd.f32 %v4537_v56, %v3535_v23  ;;  %v4199_v58 = vpop.f32.mrb[57].mxu1 }
0x3938   :  { %v3538_v61 = vpop.f32.mrb[58].mxu1 }
0x3939   :  { %v4200_v63 = vpop.f32.mrb[59].mxu1  ;;  %3549 = vrot.lane.b32.xlu1 %v3536_v57, %s4583_s1 }
0x39a1   :  { %v3454_v1 = vpop.permute.xlu0 %3453 }
0x39a2   :  { %v3456_v27 = vsel %vm252_vm3, %v3451_v25, %v3454_v1  ;;  %vm3644_vm3 = vcmask 25600  }
0x39a3   :  { %v3457_v28 = vpack.c.bf16 %v3456_v27, %v3456_v27 }
0x39a5   :  { %4190 = vmatmul.mubr.msk.bf16.vlgmr.msra.gmra.mrb[76].mxu0 %vm1951_vm4, %v3457_v28 }
0x39ab   :  { %v3550_v43 = vpop.permute.xlu1 %3549 }
0x3a78   :  { %v3495_v29 = vpop.f32.mrb[76].mxu0 }
0x3a79   :  { %v3496_v17 = vadd.f32 %v4540_v30, %v3495_v29  ;;  %v4191_v11 = vpop.f32.mrb[77].mxu0 }
0x3a7a   :  { %v3498_v31 = vpop.f32.mrb[78].mxu0 }
0x3a7b   :  { %v3541_v32 = vadd.f32 %v3536_v57, %v3496_v17  ;;  %v4192_v35 = vpop.f32.mrb[79].mxu0 }
0x3a7d   :  { %v3775_v41 = vmul.f32 -1.442695, %v3541_v32 }
0x3a7f   :  { %4505 = vpow2.f32 %v3775_v41 }
0x3a89   :  { %v4506_v16 = vpop.eup %4505 }
0x3a8a   :  { %v3545_v39 = vadd.f32 1.0, %v4506_v16 }
0x3a8c   :  { %4507 = vrcp.f32 %v3545_v39 }
0x3a96   :  { %v4508_v48 = vpop.eup %4507 }
0x3a97   :  { %v3552_v37 = vmul.f32 %v4508_v48, %v3550_v43 }
0x3a99   :  { %3554 = vrot.lane.b32.xlu0 %v3552_v37, %s4583_s1 }
0x3b0b   :  { %v3555_v34 = vpop.permute.xlu0 %3554 }
0x3b0c   :  { %v3557_v10 = vadd.f32 %v3555_v34, %v3496_v17 }
0x3b0e   :  { %4509 = vtanh.f32 %v3557_v10 }
0x3b18   :  { %v4510_v24 = vpop.eup %4509 }
0x3b19   :  { %v3559_v53 = vsub.f32 %v5591_v14, %v4510_v24 }
0x3b1b   :  { %3561 = vrot.lane.b32.xlu1 %v3559_v53, %s4584_s6 }
0x3b8d   :  { %v3562_v55 = vpop.permute.xlu1 %3561 }
0x3b8e   :  { %v3564_v46 = vmul.f32 %v4508_v48, %v3562_v55 }
0x3b90   :  { %3566 = vrot.lane.b32.xlu0 %v3564_v46, %s4585_s2 }
0x3b94   :  { %3574 = vrot.lane.b32.xlu0 %v3440_v50, %s4585_s2 }
0x3b98   :  { %3628 = vrot.lane.b32.xlu0 %v5534_v15, %s4588_s8 }
0x3c02   :  { %v3567_v12 = vpop.permute.xlu0 %3566 }
0x3c03   :  { %v3569_v0 = vadd.f32 %v4510_v24, %v3567_v12 }
0x3c05   :  { %3571 = vrot.lane.b32.xlu1 %v3569_v0, %s4583_s1  ;;  %s4553_s1 = scalar_lea.vmem %s3653_s19, 32 }
0x3c06   :  { %v3575_v44 = vpop.permute.xlu0 %3574  ;;  %p4554_p8 = scmp.ne.s32.totalorder %s3653_s19, %s4553_s1  ;;  %p4559_p10 = scmp.lt.s32.totalorder %s4553_s1, %s4553_s1 }
0x3c08   :  { %p4560_p11 = por %p4559_p10, %p4558_p9 }
0x3c09   :  { %3578 = vrot.lane.b32.xlu1 %v3451_v25, %s4584_s6 }
0x3c0a   :  { %v3629_v47 = vpop.permute.xlu0 %3628  ;;  %p4561_p12 = pnand %p4560_p11, %p4554_p8 }
0x3c0b   :  { %v3639_v8 = vsel %vm1700_vm2, %v5429_v40, %v3629_v47 }
0x3c0d   :  { %3632 = vrot.lane.b32.xlu1 %v5660_v4, %s4590_s18 }
0x3c77   :  { %v3572_v14 = vpop.permute.xlu1 %3571 }
0x3c78   :  { %v3581_v38 = vsel %vm471_vm5, %v3572_v14, %v3575_v44 }
0x3c7b   :  { %v3579_v51 = vpop.permute.xlu1 %3578 }
0x3c7c   :  { %v3582_v2 = vsel %vm2099_vm6, %v3581_v38, %v3579_v51 }
0x3c7d   :  { %v3583_v49 = vpack.c.bf16 %v3582_v2, %v3582_v2 }
0x3c7f   :  { %4216 = vmatmul.mubr.msk.bf16.vlgmr.msra.gmra.mrb[60].mxu1 %vm2150_vm7, %v3583_v49  ;;  %v3633_v4 = vpop.permute.xlu1 %3632 }
0x3c80   :  { %v3641_v33 = vsel %vm3640_vm0, %v3639_v8, %v3633_v4 }
0x3d52   :  { %v3621_v15 = vpop.f32.mrb[60].mxu1 }
0x3d53   :  { %v3622_v19 = vadd.f32 %v5426_v36, %v3621_v15  ;;  %v4217_v20 = vpop.f32.mrb[61].mxu1 }
0x3d54   :  { %v3624_v9 = vpop.f32.mrb[62].mxu1 }
0x3d55   :  { %3636 = vrot.lane.b32.xlu0 %v3622_v19, %s4592_s16  ;;  %v4218_v45 = vpop.f32.mrb[63].mxu1 }
0x3dc7   :  { %v3637_v13 = vpop.permute.xlu0 %3636 }
0x3dc8   :  { %v3643_v52 = vsel %vm3642_vm1, %v3641_v33, %v3637_v13 }
0x3dc9   :  { %3645 = vst.msk [vmem:[#allocation7] sm:$0x3] %vm3644_vm3, %v3643_v52 }
0x3dca   :  { %4564 = shalt.err (!%p4561_p12)
}
0x3dcb   :  { %s4565_s8 = scalar_lea.hbm %s5770_s24, 32 }
0x3dcc   :  { %p4566_p13 = scmp.ne.s32.totalorder %s5770_s24, %s4565_s8  ;;  %p4569_p0 = scmp.lt.u32.totalorder %s4565_s8, %s5770_s24 }
0x3dce   :  { %p4571_p1 = pnand %p4569_p0, %p4566_p13 }
0x3dd0   :  { %4574 = shalt.err (!%p4571_p1)
}
0x3dd1   :  { %3655 = dma.vmem_to_hbm [thread:$0]  %s3653_s19, 32, %s5770_s24, [#allocation5]  }
0x3dd2   :  { %4577 = dma.done.wait [#allocation5], 32  }
0x3dd3   :  { %4578 = vsyncadd [#allocation5], 4294967264 }
0x3dd4   :  { %3659 = vsyncpa [#allocation5], 1 }
0x3dd5   :  { %3660 = vsyncpa [#allocation6], 1 }

</bundles_post_ra>
